<compile_context>
chip_gen: v6e
topology: v6e:2x2x1
jax: 0.10.0
libtpu: 0.0.40
codegen_flags: <defaults>
</compile_context>

<pallas_src>
import jax
import jax.numpy as jnp
from jax.experimental import pallas as pl
from jax.experimental.pallas import tpu as pltpu

EPS = 1e-5          # nn.GroupNorm default eps
NUM_GROUPS = 16     # from the module: GroupNorm(num_groups=16, ...)


def basic_block_kernel(x_ref, w1_ref, w2_ref, sg_ref, g1_ref, b1_ref,
                       g2_ref, b2_ref, o_ref, pad_ref):
    _, d, h, wc_in = x_ref.shape          # wc_in  = W * Cin  (lane-folded)
    wc_out = o_ref.shape[-1]              # wc_out = W * Cout
    nrows = d * h
    # elements per group = D*H*W*(C/G) = nrows * wc_out / NUM_GROUPS
    denom = float(nrows * wc_out) / NUM_GROUPS

    # Zero the pad scratch once; borders stay zero forever, interior is fully
    # overwritten on every use, and the scratch persists across grid steps.
    @pl.when(pl.program_id(0) == 0)
    def _():
        pad_ref[...] = jnp.zeros(pad_ref.shape, jnp.float32)

    x = x_ref[0]                          # (d, h, W*Cin) f32, lane-dense
    same_group = sg_ref[...]              # (W*Cout, W*Cout) f32

    def conv3d_banded(vol, w_ref):
        """3x3x3 conv, stride 1, pad 1, no bias.

        vol:   (d, h, L) f32, L = W*C (lane-folded)
        w_ref: (9, L, L_out) bf16 banded weights: W taps + W zero-padding are
               baked into the contraction dim, D/H padding comes from pad_ref.
        """
        l_in = vol.shape[-1]
        l_out = w_ref.shape[-1]
        pad_ref[1:d + 1, 1:h + 1, :] = vol            # interior write (lane-aligned)
        vp = pad_ref[...]                              # (d+2, h+2, L) f32
        acc = jnp.zeros((nrows, l_out), jnp.float32)
        for kd in range(3):
            for kh in range(3):
                slab = vp[kd:kd + d, kh:kh + h, :].reshape(nrows, l_in)
                acc = acc + jnp.dot(slab.astype(jnp.bfloat16),
                                    w_ref[kd * 3 + kh],
                                    preferred_element_type=jnp.float32)
        return acc                                     # (nrows, L_out) f32

    def group_norm(a, gamma, beta):
        """GroupNorm on a lane-folded (nrows, W*C) slab; gamma/beta: (1, W*C)."""
        s = jnp.sum(a, axis=0, keepdims=True)                        # (1, W*C)
        mean = jnp.dot(s, same_group,
                       preferred_element_type=jnp.float32) / denom   # group mean / lane
        dev = a - mean
        ssq = jnp.sum(dev * dev, axis=0, keepdims=True)
        var = jnp.dot(ssq, same_group,
                      preferred_element_type=jnp.float32) / denom    # biased var
        return dev * jax.lax.rsqrt(var + EPS) * gamma + beta

    # ---- conv1 -> GN1 -> ReLU ----
    out1 = conv3d_banded(x, w1_ref)
    out1 = jnp.maximum(group_norm(out1, g1_ref[...], b1_ref[...]), 0.0)

    # ---- conv2 -> GN2 -> +residual -> ReLU ----
    out2 = conv3d_banded(out1.reshape(d, h, wc_out), w2_ref)
    out2 = group_norm(out2, g2_ref[...], b2_ref[...])
    residual = x.reshape(nrows, wc_in)     # identity path (Cin == Cout, stride 1)
    out2 = jnp.maximum(out2 + residual, 0.0)

    o_ref[...] = out2.reshape(1, d, h, wc_out).astype(o_ref.dtype)


# ------------------------- wrapper-side weight prep -------------------------

def make_banded_weights(w_oidhw, w_spatial):
    """(O, I, 3, 3, 3) conv weight -> (9, W*I, W*O) banded matrices.

    band[kd*3+kh][wi*I+ci, wo*O+co] = w[co, ci, kd, kh, wi-wo+1]
    (zero outside the 3-wide band), so the W-axis taps and the W zero-padding
    live in the MXU contraction dimension."""
    core = jnp.transpose(w_oidhw, (2, 3, 4, 1, 0)).astype(jnp.float32)  # (kd,kh,kw,I,O)
    bands = []
    for kd in range(3):
        for kh in range(3):
            b = sum(jnp.kron(jnp.eye(w_spatial, k=1 - kw, dtype=jnp.float32),
                             core[kd, kh, kw])
                    for kw in range(3))
            bands.append(b)
    return jnp.stack(bands)                                            # (9, W*I, W*O)


def prepare_params(w1, g1, b1, w2, g2, b2, w_spatial):
    """Pack conv weights (banded, bf16), GN same-group matrix and lane-tiled affines."""
    c_out = w1.shape[0]
    lane_grp = (jnp.arange(w_spatial * c_out) % c_out) // (c_out // NUM_GROUPS)
    same_group = (lane_grp[:, None] == lane_grp[None, :]).astype(jnp.float32)

    def tile_lane(v):
        return jnp.tile(v.astype(jnp.float32), (w_spatial,)).reshape(1, w_spatial * c_out)

    return dict(
        w1=make_banded_weights(w1, w_spatial).astype(jnp.bfloat16),
        w2=make_banded_weights(w2, w_spatial).astype(jnp.bfloat16),
        sg=same_group,
        g1=tile_lane(g1), b1=tile_lane(b1),
        g2=tile_lane(g2), b2=tile_lane(b2),
    )


def spectral_normalize(w, key, n_iter=50):
    """Normalize conv weight (O, I, kd, kh, kw) by its top singular value."""
    # TODO(synk): PyTorch spectral_norm does one stochastic power-iteration step
    # per forward with persistent u/v buffers; here we use a deterministic,
    # converged power iteration (plain-JAX glue, not in the kernel).
    cout = w.shape[0]
    wm = w.reshape(cout, -1)
    u0 = jax.random.normal(key, (cout,), jnp.float32)
    u0 = u0 / (jnp.linalg.norm(u0) + 1e-12)

    def body(_, u):
        v = wm.T @ u
        v = v / (jnp.linalg.norm(v) + 1e-12)
        u = wm @ v
        u = u / (jnp.linalg.norm(u) + 1e-12)
        return u

    u = jax.lax.fori_loop(0, n_iter, body, u0)
    v = wm.T @ u
    v = v / (jnp.linalg.norm(v) + 1e-12)
    sigma = u @ (wm @ v)
    return w / sigma


def basic_block_forward(x_ncdhw, params):
    """x_ncdhw: (N, C, D, H, W) float32 — PyTorch layout in, PyTorch layout out."""
    n, c, d, h, w = x_ncdhw.shape
    wc = w * c
    wcout = params["w1"].shape[-1]
    assert params["w1"].shape[1] == wc and wcout == wc, \
        "identity residual requires Cin == Cout and stride 1"

    # NCDHW -> (N, D, H, W*C): channels-last, lane-folded.
    x = jnp.transpose(x_ncdhw, (0, 2, 3, 4, 1)).reshape(n, d, h, wc)

    flops = n * 2 * 9 * 2 * (d * h) * wc * wcout
    bytes_accessed = ((x.size + n * d * h * wcout) * 4
                      + (params["w1"].size + params["w2"].size) * 2
                      + params["sg"].size * 4)

    grid_spec = pltpu.PrefetchScalarGridSpec(
        num_scalar_prefetch=0,
        grid=(n,),
        in_specs=[
            pl.BlockSpec((1, d, h, wc), lambda b: (b, 0, 0, 0)),       # x
            pl.BlockSpec((9, wc, wcout), lambda b: (0, 0, 0)),         # w1 banded (bf16)
            pl.BlockSpec((9, wcout, wcout), lambda b: (0, 0, 0)),      # w2 banded (bf16)
            pl.BlockSpec((wcout, wcout), lambda b: (0, 0)),            # same-group matrix
            pl.BlockSpec((1, wcout), lambda b: (0, 0)),                # gamma1 (lane-tiled)
            pl.BlockSpec((1, wcout), lambda b: (0, 0)),                # beta1
            pl.BlockSpec((1, wcout), lambda b: (0, 0)),                # gamma2
            pl.BlockSpec((1, wcout), lambda b: (0, 0)),                # beta2
        ],
        out_specs=pl.BlockSpec((1, d, h, wcout), lambda b: (b, 0, 0, 0)),
        scratch_shapes=[pltpu.VMEM((d + 2, h + 2, wc), jnp.float32)],  # D/H pad scratch
    )
    out = pl.pallas_call(
        basic_block_kernel,
        out_shape=jax.ShapeDtypeStruct((n, d, h, wcout), jnp.float32),
        grid_spec=grid_spec,
        compiler_params=pltpu.CompilerParams(
            dimension_semantics=("parallel",),
            vmem_limit_bytes=32 * 1024 * 1024),
        cost_estimate=pl.CostEstimate(
            flops=flops, transcendentals=2 * n * wcout,
            bytes_accessed=bytes_accessed),
    )(x, params["w1"], params["w2"], params["sg"],
      params["g1"], params["b1"], params["g2"], params["b2"])

    # (N, D, H, W*C) -> NCDHW
    out = out.reshape(n, d, h, w, c)
    return jnp.transpose(out, (0, 4, 1, 2, 3))


# ------------------------------ f32 reference ------------------------------

def reference_forward(x, w1, g1, b1, w2, g2, b2):
    """Pure-JAX reference in NCDHW (mirrors the PyTorch forward)."""
    dn = ("NCDHW", "OIDHW", "NCDHW")

    def conv(x_, w_):
        return jax.lax.conv_general_dilated(
            x_, w_, window_strides=(1, 1, 1), padding=((1, 1),) * 3,
            dimension_numbers=dn)

    def gn(x_, gamma, beta):
        n, c, d, h, w = x_.shape
        xr = x_.reshape(n, NUM_GROUPS, c // NUM_GROUPS, d, h, w)
        mean = xr.mean(axis=(2, 3, 4, 5), keepdims=True)
        var = ((xr - mean) ** 2).mean(axis=(2, 3, 4, 5), keepdims=True)
        xr = (xr - mean) * jax.lax.rsqrt(var + EPS)
        xr = xr.reshape(n, c, d, h, w)
        return xr * gamma.reshape(1, c, 1, 1, 1) + beta.reshape(1, c, 1, 1, 1)

    out = jax.nn.relu(gn(conv(x, w1), g1, b1))
    out = gn(conv(out, w2), g2, b2)
    return jax.nn.relu(out + x)


if __name__ == "__main__":
    key = jax.random.PRNGKey(0)
    (k_x, k_w1, k_w2, k_u1, k_u2,
     k_g1, k_b1, k_g2, k_b2) = jax.random.split(key, 9)

    # inplanes = planes = 32 (divisible by 16 groups), stride = stride_t = 1,
    # downsample = None -> identity residual.
    N, C, D, H, W = 2, 32, 4, 8, 8
    x = jax.random.normal(k_x, (N, C, D, H, W), jnp.float32)

    # Conv3d weights: (out_planes, in_planes, 3, 3, 3), bias=False, spectral norm.
    w1_raw = 0.1 * jax.random.normal(k_w1, (C, C, 3, 3, 3), jnp.float32)
    w2_raw = 0.1 * jax.random.normal(k_w2, (C, C, 3, 3, 3), jnp.float32)
    w1_sn = spectral_normalize(w1_raw, k_u1)
    w2_sn = spectral_normalize(w2_raw, k_u2)

    # GroupNorm affine params (C,) — deterministic synthetic init.
    g1 = 1.0 + 0.1 * jax.random.normal(k_g1, (C,), jnp.float32)
    b1 = 0.1 * jax.random.normal(k_b1, (C,), jnp.float32)
    g2 = 1.0 + 0.1 * jax.random.normal(k_g2, (C,), jnp.float32)
    b2 = 0.1 * jax.random.normal(k_b2, (C,), jnp.float32)

    params = prepare_params(w1_sn, g1, b1, w2_sn, g2, b2, W)

    out = basic_block_forward(x, params)
    out = jax.block_until_ready(out)

    ref = reference_forward(x, w1_sn, g1, b1, w2_sn, g2, b2)
    ref = jax.block_until_ready(ref)

    assert out.shape == ref.shape == (N, C, D, H, W)
    max_err = float(jnp.max(jnp.abs(out - ref)))
    mean_err = float(jnp.mean(jnp.abs(out - ref)))
    # bf16 MXU operands with f32 accumulation; GroupNorm rescaling amplifies conv
    # rounding slightly, so allow a modestly larger bound than pure f32.
    assert max_err < 4e-2, f"max abs err too large: {max_err}"
    assert mean_err < 5e-3, f"mean abs err too large: {mean_err}"
    print("KERNEL_OK")
</pallas_src>

<mosaic_0001>
module attributes {stable_mosaic.version = 11 : i64} {
  func.func @basic_block_kernel(%arg0: i32, %arg1: memref<1x4x8x256xf32, #tpu.memory_space<vmem>>, %arg2: memref<9x256x256xbf16, #tpu.memory_space<vmem>>, %arg3: memref<9x256x256xbf16, #tpu.memory_space<vmem>>, %arg4: memref<256x256xf32, #tpu.memory_space<vmem>>, %arg5: memref<1x256xf32, #tpu.memory_space<vmem>>, %arg6: memref<1x256xf32, #tpu.memory_space<vmem>>, %arg7: memref<1x256xf32, #tpu.memory_space<vmem>>, %arg8: memref<1x256xf32, #tpu.memory_space<vmem>>, %arg9: memref<1x4x8x256xf32, #tpu.memory_space<vmem>>, %arg10: memref<6x10x256xf32, #tpu.memory_space<vmem>>) attributes {dimension_semantics = [#tpu.dimension_semantics<parallel>], iteration_bounds = array<i64: 2>, scalar_prefetch = 0 : i64, scratch_operands = 1 : i64, tpu.core_type = #tpu.core_type<tc>, window_params = [{transform_indices = @transform_0, window_bounds = array<i64: 1, 4, 8, 256>}, {pipeline_mode = #tpu.pipeline_mode<synchronous>, transform_indices = @transform_1, window_bounds = array<i64: 9, 256, 256>}, {pipeline_mode = #tpu.pipeline_mode<synchronous>, transform_indices = @transform_2, window_bounds = array<i64: 9, 256, 256>}, {pipeline_mode = #tpu.pipeline_mode<synchronous>, transform_indices = @transform_3, window_bounds = array<i64: 256, 256>}, {pipeline_mode = #tpu.pipeline_mode<synchronous>, transform_indices = @transform_4, window_bounds = array<i64: 1, 256>}, {pipeline_mode = #tpu.pipeline_mode<synchronous>, transform_indices = @transform_5, window_bounds = array<i64: 1, 256>}, {pipeline_mode = #tpu.pipeline_mode<synchronous>, transform_indices = @transform_6, window_bounds = array<i64: 1, 256>}, {pipeline_mode = #tpu.pipeline_mode<synchronous>, transform_indices = @transform_7, window_bounds = array<i64: 1, 256>}, {transform_indices = @transform_8, window_bounds = array<i64: 1, 4, 8, 256>}]} {
    %c0_i32 = arith.constant 0 : i32
    %0 = arith.cmpi eq, %arg0, %c0_i32 : i32
    %1 = arith.extui %0 : i1 to i32
    %c0_i32_0 = arith.constant 0 : i32
    %2 = arith.cmpi ne, %1, %c0_i32_0 : i32
    scf.if %2 {
      %cst_111 = arith.constant 0.000000e+00 : f32
      %195 = vector.broadcast %cst_111 : f32 to vector<6x10x256xf32>
      %c0_112 = arith.constant 0 : index
      %c0_113 = arith.constant 0 : index
      %c0_114 = arith.constant 0 : index
      %196 = vector.load %arg10[%c0_112, %c0_113, %c0_114] : memref<6x10x256xf32, #tpu.memory_space<vmem>>, vector<6x10x256xf32>
      tpu.vector_store %arg10[%c0_112, %c0_113, %c0_114], %195 {strides = array<i32>} : memref<6x10x256xf32, #tpu.memory_space<vmem>>, vector<6x10x256xf32>,
    } else {
    }
    %c0 = arith.constant 0 : index
    %c0_1 = arith.constant 0 : index
    %c0_2 = arith.constant 0 : index
    %c0_3 = arith.constant 0 : index
    %3 = vector.load %arg1[%c0, %c0_1, %c0_2, %c0_3] : memref<1x4x8x256xf32, #tpu.memory_space<vmem>>, vector<1x4x8x256xf32>
    %4 = vector.shape_cast %3 : vector<1x4x8x256xf32> to vector<4x8x256xf32>
    %c0_4 = arith.constant 0 : index
    %c0_5 = arith.constant 0 : index
    %5 = vector.load %arg4[%c0_4, %c0_5] : memref<256x256xf32, #tpu.memory_space<vmem>>, vector<256x256xf32>
    %c1 = arith.constant 1 : index
    %c1_6 = arith.constant 1 : index
    %c0_7 = arith.constant 0 : index
    %6 = vector.load %arg10[%c1, %c1_6, %c0_7] : memref<6x10x256xf32, #tpu.memory_space<vmem>>, vector<4x8x256xf32>
    tpu.vector_store %arg10[%c1, %c1_6, %c0_7], %4 {strides = array<i32>} : memref<6x10x256xf32, #tpu.memory_space<vmem>>, vector<4x8x256xf32>,
    %c0_8 = arith.constant 0 : index
    %c0_9 = arith.constant 0 : index
    %c0_10 = arith.constant 0 : index
    %7 = vector.load %arg10[%c0_8, %c0_9, %c0_10] : memref<6x10x256xf32, #tpu.memory_space<vmem>>, vector<6x10x256xf32>
    %cst = arith.constant 0.000000e+00 : f32
    %8 = vector.broadcast %cst : f32 to vector<32x256xf32>
    %9 = vector.extract_strided_slice %7 {offsets = [0, 0, 0], sizes = [4, 8, 256], strides = [1, 1, 1]} : vector<6x10x256xf32> to vector<4x8x256xf32>
    %10 = vector.shape_cast %9 : vector<4x8x256xf32> to vector<32x256xf32>
    %11 = arith.truncf %10 : vector<32x256xf32> to vector<32x256xbf16>
    %c0_11 = arith.constant 0 : index
    %c0_12 = arith.constant 0 : index
    %c0_13 = arith.constant 0 : index
    %12 = vector.load %arg2[%c0_11, %c0_12, %c0_13] : memref<9x256x256xbf16, #tpu.memory_space<vmem>>, vector<1x256x256xbf16>
    %13 = vector.shape_cast %12 : vector<1x256x256xbf16> to vector<256x256xbf16>
    %cst_14 = arith.constant dense<0.000000e+00> : vector<32x256xf32>
    %14 = tpu.matmul %11, %13, %cst_14 {dimension_numbers = #tpu.dot_dimension_numbers<[1], [0], [0], [1], [0, 0, 1, 1], [], []>} : vector<32x256xbf16>, vector<256x256xbf16>, vector<32x256xf32> -> vector<32x256xf32>
    %15 = arith.addf %8, %14 : vector<32x256xf32>
    %16 = vector.extract_strided_slice %7 {offsets = [0, 1, 0], sizes = [4, 8, 256], strides = [1, 1, 1]} : vector<6x10x256xf32> to vector<4x8x256xf32>
    %17 = vector.shape_cast %16 : vector<4x8x256xf32> to vector<32x256xf32>
    %18 = arith.truncf %17 : vector<32x256xf32> to vector<32x256xbf16>
    %c1_15 = arith.constant 1 : index
    %c0_16 = arith.constant 0 : index
    %c0_17 = arith.constant 0 : index
    %19 = vector.load %arg2[%c1_15, %c0_16, %c0_17] : memref<9x256x256xbf16, #tpu.memory_space<vmem>>, vector<1x256x256xbf16>
    %20 = vector.shape_cast %19 : vector<1x256x256xbf16> to vector<256x256xbf16>
    %cst_18 = arith.constant dense<0.000000e+00> : vector<32x256xf32>
    %21 = tpu.matmul %18, %20, %cst_18 {dimension_numbers = #tpu.dot_dimension_numbers<[1], [0], [0], [1], [0, 0, 1, 1], [], []>} : vector<32x256xbf16>, vector<256x256xbf16>, vector<32x256xf32> -> vector<32x256xf32>
    %22 = arith.addf %15, %21 : vector<32x256xf32>
    %23 = vector.extract_strided_slice %7 {offsets = [0, 2, 0], sizes = [4, 8, 256], strides = [1, 1, 1]} : vector<6x10x256xf32> to vector<4x8x256xf32>
    %24 = vector.shape_cast %23 : vector<4x8x256xf32> to vector<32x256xf32>
    %25 = arith.truncf %24 : vector<32x256xf32> to vector<32x256xbf16>
    %c2 = arith.constant 2 : index
    %c0_19 = arith.constant 0 : index
    %c0_20 = arith.constant 0 : index
    %26 = vector.load %arg2[%c2, %c0_19, %c0_20] : memref<9x256x256xbf16, #tpu.memory_space<vmem>>, vector<1x256x256xbf16>
    %27 = vector.shape_cast %26 : vector<1x256x256xbf16> to vector<256x256xbf16>
    %cst_21 = arith.constant dense<0.000000e+00> : vector<32x256xf32>
    %28 = tpu.matmul %25, %27, %cst_21 {dimension_numbers = #tpu.dot_dimension_numbers<[1], [0], [0], [1], [0, 0, 1, 1], [], []>} : vector<32x256xbf16>, vector<256x256xbf16>, vector<32x256xf32> -> vector<32x256xf32>
    %29 = arith.addf %22, %28 : vector<32x256xf32>
    %30 = vector.extract_strided_slice %7 {offsets = [1, 0, 0], sizes = [4, 8, 256], strides = [1, 1, 1]} : vector<6x10x256xf32> to vector<4x8x256xf32>
    %31 = vector.shape_cast %30 : vector<4x8x256xf32> to vector<32x256xf32>
    %32 = arith.truncf %31 : vector<32x256xf32> to vector<32x256xbf16>
    %c3 = arith.constant 3 : index
    %c0_22 = arith.constant 0 : index
    %c0_23 = arith.constant 0 : index
    %33 = vector.load %arg2[%c3, %c0_22, %c0_23] : memref<9x256x256xbf16, #tpu.memory_space<vmem>>, vector<1x256x256xbf16>
    %34 = vector.shape_cast %33 : vector<1x256x256xbf16> to vector<256x256xbf16>
    %cst_24 = arith.constant dense<0.000000e+00> : vector<32x256xf32>
    %35 = tpu.matmul %32, %34, %cst_24 {dimension_numbers = #tpu.dot_dimension_numbers<[1], [0], [0], [1], [0, 0, 1, 1], [], []>} : vector<32x256xbf16>, vector<256x256xbf16>, vector<32x256xf32> -> vector<32x256xf32>
    %36 = arith.addf %29, %35 : vector<32x256xf32>
    %37 = vector.extract_strided_slice %7 {offsets = [1, 1, 0], sizes = [4, 8, 256], strides = [1, 1, 1]} : vector<6x10x256xf32> to vector<4x8x256xf32>
    %38 = vector.shape_cast %37 : vector<4x8x256xf32> to vector<32x256xf32>
    %39 = arith.truncf %38 : vector<32x256xf32> to vector<32x256xbf16>
    %c4 = arith.constant 4 : index
    %c0_25 = arith.constant 0 : index
    %c0_26 = arith.constant 0 : index
    %40 = vector.load %arg2[%c4, %c0_25, %c0_26] : memref<9x256x256xbf16, #tpu.memory_space<vmem>>, vector<1x256x256xbf16>
    %41 = vector.shape_cast %40 : vector<1x256x256xbf16> to vector<256x256xbf16>
    %cst_27 = arith.constant dense<0.000000e+00> : vector<32x256xf32>
    %42 = tpu.matmul %39, %41, %cst_27 {dimension_numbers = #tpu.dot_dimension_numbers<[1], [0], [0], [1], [0, 0, 1, 1], [], []>} : vector<32x256xbf16>, vector<256x256xbf16>, vector<32x256xf32> -> vector<32x256xf32>
    %43 = arith.addf %36, %42 : vector<32x256xf32>
    %44 = vector.extract_strided_slice %7 {offsets = [1, 2, 0], sizes = [4, 8, 256], strides = [1, 1, 1]} : vector<6x10x256xf32> to vector<4x8x256xf32>
    %45 = vector.shape_cast %44 : vector<4x8x256xf32> to vector<32x256xf32>
    %46 = arith.truncf %45 : vector<32x256xf32> to vector<32x256xbf16>
    %c5 = arith.constant 5 : index
    %c0_28 = arith.constant 0 : index
    %c0_29 = arith.constant 0 : index
    %47 = vector.load %arg2[%c5, %c0_28, %c0_29] : memref<9x256x256xbf16, #tpu.memory_space<vmem>>, vector<1x256x256xbf16>
    %48 = vector.shape_cast %47 : vector<1x256x256xbf16> to vector<256x256xbf16>
    %cst_30 = arith.constant dense<0.000000e+00> : vector<32x256xf32>
    %49 = tpu.matmul %46, %48, %cst_30 {dimension_numbers = #tpu.dot_dimension_numbers<[1], [0], [0], [1], [0, 0, 1, 1], [], []>} : vector<32x256xbf16>, vector<256x256xbf16>, vector<32x256xf32> -> vector<32x256xf32>
    %50 = arith.addf %43, %49 : vector<32x256xf32>
    %51 = vector.extract_strided_slice %7 {offsets = [2, 0, 0], sizes = [4, 8, 256], strides = [1, 1, 1]} : vector<6x10x256xf32> to vector<4x8x256xf32>
    %52 = vector.shape_cast %51 : vector<4x8x256xf32> to vector<32x256xf32>
    %53 = arith.truncf %52 : vector<32x256xf32> to vector<32x256xbf16>
    %c6 = arith.constant 6 : index
    %c0_31 = arith.constant 0 : index
    %c0_32 = arith.constant 0 : index
    %54 = vector.load %arg2[%c6, %c0_31, %c0_32] : memref<9x256x256xbf16, #tpu.memory_space<vmem>>, vector<1x256x256xbf16>
    %55 = vector.shape_cast %54 : vector<1x256x256xbf16> to vector<256x256xbf16>
    %cst_33 = arith.constant dense<0.000000e+00> : vector<32x256xf32>
    %56 = tpu.matmul %53, %55, %cst_33 {dimension_numbers = #tpu.dot_dimension_numbers<[1], [0], [0], [1], [0, 0, 1, 1], [], []>} : vector<32x256xbf16>, vector<256x256xbf16>, vector<32x256xf32> -> vector<32x256xf32>
    %57 = arith.addf %50, %56 : vector<32x256xf32>
    %58 = vector.extract_strided_slice %7 {offsets = [2, 1, 0], sizes = [4, 8, 256], strides = [1, 1, 1]} : vector<6x10x256xf32> to vector<4x8x256xf32>
    %59 = vector.shape_cast %58 : vector<4x8x256xf32> to vector<32x256xf32>
    %60 = arith.truncf %59 : vector<32x256xf32> to vector<32x256xbf16>
    %c7 = arith.constant 7 : index
    %c0_34 = arith.constant 0 : index
    %c0_35 = arith.constant 0 : index
    %61 = vector.load %arg2[%c7, %c0_34, %c0_35] : memref<9x256x256xbf16, #tpu.memory_space<vmem>>, vector<1x256x256xbf16>
    %62 = vector.shape_cast %61 : vector<1x256x256xbf16> to vector<256x256xbf16>
    %cst_36 = arith.constant dense<0.000000e+00> : vector<32x256xf32>
    %63 = tpu.matmul %60, %62, %cst_36 {dimension_numbers = #tpu.dot_dimension_numbers<[1], [0], [0], [1], [0, 0, 1, 1], [], []>} : vector<32x256xbf16>, vector<256x256xbf16>, vector<32x256xf32> -> vector<32x256xf32>
    %64 = arith.addf %57, %63 : vector<32x256xf32>
    %65 = vector.extract_strided_slice %7 {offsets = [2, 2, 0], sizes = [4, 8, 256], strides = [1, 1, 1]} : vector<6x10x256xf32> to vector<4x8x256xf32>
    %66 = vector.shape_cast %65 : vector<4x8x256xf32> to vector<32x256xf32>
    %67 = arith.truncf %66 : vector<32x256xf32> to vector<32x256xbf16>
    %c8 = arith.constant 8 : index
    %c0_37 = arith.constant 0 : index
    %c0_38 = arith.constant 0 : index
    %68 = vector.load %arg2[%c8, %c0_37, %c0_38] : memref<9x256x256xbf16, #tpu.memory_space<vmem>>, vector<1x256x256xbf16>
    %69 = vector.shape_cast %68 : vector<1x256x256xbf16> to vector<256x256xbf16>
    %cst_39 = arith.constant dense<0.000000e+00> : vector<32x256xf32>
    %70 = tpu.matmul %67, %69, %cst_39 {dimension_numbers = #tpu.dot_dimension_numbers<[1], [0], [0], [1], [0, 0, 1, 1], [], []>} : vector<32x256xbf16>, vector<256x256xbf16>, vector<32x256xf32> -> vector<32x256xf32>
    %71 = arith.addf %64, %70 : vector<32x256xf32>
    %c0_40 = arith.constant 0 : index
    %c0_41 = arith.constant 0 : index
    %72 = vector.load %arg5[%c0_40, %c0_41] : memref<1x256xf32, #tpu.memory_space<vmem>>, vector<1x256xf32>
    %c0_42 = arith.constant 0 : index
    %c0_43 = arith.constant 0 : index
    %73 = vector.load %arg6[%c0_42, %c0_43] : memref<1x256xf32, #tpu.memory_space<vmem>>, vector<1x256xf32>
    %cst_44 = arith.constant dense<0.000000e+00> : vector<256xf32>
    %74 = vector.multi_reduction <add>, %71, %cst_44 [0] : vector<32x256xf32> to vector<256xf32>
    %75 = vector.shape_cast %74 : vector<256xf32> to vector<1x256xf32>
    %cst_45 = arith.constant dense<0.000000e+00> : vector<1x256xf32>
    %76 = tpu.matmul %75, %5, %cst_45 {dimension_numbers = #tpu.dot_dimension_numbers<[1], [0], [0], [1], [0, 0, 1, 1], [], []>} : vector<1x256xf32>, vector<256x256xf32>, vector<1x256xf32> -> vector<1x256xf32>
    %cst_46 = arith.constant 5.120000e+02 : f32
    %77 = vector.broadcast %cst_46 : f32 to vector<1x256xf32>
    %78 = arith.divf %76, %77 : vector<1x256xf32>
    %79 = vector.broadcast %78 : vector<1x256xf32> to vector<32x256xf32>
    %80 = arith.subf %71, %79 : vector<32x256xf32>
    %81 = arith.mulf %80, %80 : vector<32x256xf32>
    %cst_47 = arith.constant dense<0.000000e+00> : vector<256xf32>
    %82 = vector.multi_reduction <add>, %81, %cst_47 [0] : vector<32x256xf32> to vector<256xf32>
    %83 = vector.shape_cast %82 : vector<256xf32> to vector<1x256xf32>
    %cst_48 = arith.constant dense<0.000000e+00> : vector<1x256xf32>
    %84 = tpu.matmul %83, %5, %cst_48 {dimension_numbers = #tpu.dot_dimension_numbers<[1], [0], [0], [1], [0, 0, 1, 1], [], []>} : vector<1x256xf32>, vector<256x256xf32>, vector<1x256xf32> -> vector<1x256xf32>
    %cst_49 = arith.constant 5.120000e+02 : f32
    %85 = vector.broadcast %cst_49 : f32 to vector<1x256xf32>
    %86 = arith.divf %84, %85 : vector<1x256xf32>
    %cst_50 = arith.constant 9.99999974E-6 : f32
    %87 = vector.broadcast %cst_50 : f32 to vector<1x256xf32>
    %88 = arith.addf %86, %87 : vector<1x256xf32>
    %89 = math.rsqrt %88 : vector<1x256xf32>
    %90 = vector.broadcast %89 : vector<1x256xf32> to vector<32x256xf32>
    %91 = arith.mulf %80, %90 : vector<32x256xf32>
    %92 = vector.broadcast %72 : vector<1x256xf32> to vector<32x256xf32>
    %93 = arith.mulf %91, %92 : vector<32x256xf32>
    %94 = vector.broadcast %73 : vector<1x256xf32> to vector<32x256xf32>
    %95 = arith.addf %93, %94 : vector<32x256xf32>
    %cst_51 = arith.constant 0.000000e+00 : f32
    %96 = vector.broadcast %cst_51 : f32 to vector<32x256xf32>
    %97 = arith.maximumf %95, %96 : vector<32x256xf32>
    %98 = vector.shape_cast %97 : vector<32x256xf32> to vector<4x8x256xf32>
    %c1_52 = arith.constant 1 : index
    %c1_53 = arith.constant 1 : index
    %c0_54 = arith.constant 0 : index
    %99 = vector.load %arg10[%c1_52, %c1_53, %c0_54] : memref<6x10x256xf32, #tpu.memory_space<vmem>>, vector<4x8x256xf32>
    tpu.vector_store %arg10[%c1_52, %c1_53, %c0_54], %98 {strides = array<i32>} : memref<6x10x256xf32, #tpu.memory_space<vmem>>, vector<4x8x256xf32>,
    %c0_55 = arith.constant 0 : index
    %c0_56 = arith.constant 0 : index
    %c0_57 = arith.constant 0 : index
    %100 = vector.load %arg10[%c0_55, %c0_56, %c0_57] : memref<6x10x256xf32, #tpu.memory_space<vmem>>, vector<6x10x256xf32>
    %cst_58 = arith.constant 0.000000e+00 : f32
    %101 = vector.broadcast %cst_58 : f32 to vector<32x256xf32>
    %102 = vector.extract_strided_slice %100 {offsets = [0, 0, 0], sizes = [4, 8, 256], strides = [1, 1, 1]} : vector<6x10x256xf32> to vector<4x8x256xf32>
    %103 = vector.shape_cast %102 : vector<4x8x256xf32> to vector<32x256xf32>
    %104 = arith.truncf %103 : vector<32x256xf32> to vector<32x256xbf16>
    %c0_59 = arith.constant 0 : index
    %c0_60 = arith.constant 0 : index
    %c0_61 = arith.constant 0 : index
    %105 = vector.load %arg3[%c0_59, %c0_60, %c0_61] : memref<9x256x256xbf16, #tpu.memory_space<vmem>>, vector<1x256x256xbf16>
    %106 = vector.shape_cast %105 : vector<1x256x256xbf16> to vector<256x256xbf16>
    %cst_62 = arith.constant dense<0.000000e+00> : vector<32x256xf32>
    %107 = tpu.matmul %104, %106, %cst_62 {dimension_numbers = #tpu.dot_dimension_numbers<[1], [0], [0], [1], [0, 0, 1, 1], [], []>} : vector<32x256xbf16>, vector<256x256xbf16>, vector<32x256xf32> -> vector<32x256xf32>
    %108 = arith.addf %101, %107 : vector<32x256xf32>
    %109 = vector.extract_strided_slice %100 {offsets = [0, 1, 0], sizes = [4, 8, 256], strides = [1, 1, 1]} : vector<6x10x256xf32> to vector<4x8x256xf32>
    %110 = vector.shape_cast %109 : vector<4x8x256xf32> to vector<32x256xf32>
    %111 = arith.truncf %110 : vector<32x256xf32> to vector<32x256xbf16>
    %c1_63 = arith.constant 1 : index
    %c0_64 = arith.constant 0 : index
    %c0_65 = arith.constant 0 : index
    %112 = vector.load %arg3[%c1_63, %c0_64, %c0_65] : memref<9x256x256xbf16, #tpu.memory_space<vmem>>, vector<1x256x256xbf16>
    %113 = vector.shape_cast %112 : vector<1x256x256xbf16> to vector<256x256xbf16>
    %cst_66 = arith.constant dense<0.000000e+00> : vector<32x256xf32>
    %114 = tpu.matmul %111, %113, %cst_66 {dimension_numbers = #tpu.dot_dimension_numbers<[1], [0], [0], [1], [0, 0, 1, 1], [], []>} : vector<32x256xbf16>, vector<256x256xbf16>, vector<32x256xf32> -> vector<32x256xf32>
    %115 = arith.addf %108, %114 : vector<32x256xf32>
    %116 = vector.extract_strided_slice %100 {offsets = [0, 2, 0], sizes = [4, 8, 256], strides = [1, 1, 1]} : vector<6x10x256xf32> to vector<4x8x256xf32>
    %117 = vector.shape_cast %116 : vector<4x8x256xf32> to vector<32x256xf32>
    %118 = arith.truncf %117 : vector<32x256xf32> to vector<32x256xbf16>
    %c2_67 = arith.constant 2 : index
    %c0_68 = arith.constant 0 : index
    %c0_69 = arith.constant 0 : index
    %119 = vector.load %arg3[%c2_67, %c0_68, %c0_69] : memref<9x256x256xbf16, #tpu.memory_space<vmem>>, vector<1x256x256xbf16>
    %120 = vector.shape_cast %119 : vector<1x256x256xbf16> to vector<256x256xbf16>
    %cst_70 = arith.constant dense<0.000000e+00> : vector<32x256xf32>
    %121 = tpu.matmul %118, %120, %cst_70 {dimension_numbers = #tpu.dot_dimension_numbers<[1], [0], [0], [1], [0, 0, 1, 1], [], []>} : vector<32x256xbf16>, vector<256x256xbf16>, vector<32x256xf32> -> vector<32x256xf32>
    %122 = arith.addf %115, %121 : vector<32x256xf32>
    %123 = vector.extract_strided_slice %100 {offsets = [1, 0, 0], sizes = [4, 8, 256], strides = [1, 1, 1]} : vector<6x10x256xf32> to vector<4x8x256xf32>
    %124 = vector.shape_cast %123 : vector<4x8x256xf32> to vector<32x256xf32>
    %125 = arith.truncf %124 : vector<32x256xf32> to vector<32x256xbf16>
    %c3_71 = arith.constant 3 : index
    %c0_72 = arith.constant 0 : index
    %c0_73 = arith.constant 0 : index
    %126 = vector.load %arg3[%c3_71, %c0_72, %c0_73] : memref<9x256x256xbf16, #tpu.memory_space<vmem>>, vector<1x256x256xbf16>
    %127 = vector.shape_cast %126 : vector<1x256x256xbf16> to vector<256x256xbf16>
    %cst_74 = arith.constant dense<0.000000e+00> : vector<32x256xf32>
    %128 = tpu.matmul %125, %127, %cst_74 {dimension_numbers = #tpu.dot_dimension_numbers<[1], [0], [0], [1], [0, 0, 1, 1], [], []>} : vector<32x256xbf16>, vector<256x256xbf16>, vector<32x256xf32> -> vector<32x256xf32>
    %129 = arith.addf %122, %128 : vector<32x256xf32>
    %130 = vector.extract_strided_slice %100 {offsets = [1, 1, 0], sizes = [4, 8, 256], strides = [1, 1, 1]} : vector<6x10x256xf32> to vector<4x8x256xf32>
    %131 = vector.shape_cast %130 : vector<4x8x256xf32> to vector<32x256xf32>
    %132 = arith.truncf %131 : vector<32x256xf32> to vector<32x256xbf16>
    %c4_75 = arith.constant 4 : index
    %c0_76 = arith.constant 0 : index
    %c0_77 = arith.constant 0 : index
    %133 = vector.load %arg3[%c4_75, %c0_76, %c0_77] : memref<9x256x256xbf16, #tpu.memory_space<vmem>>, vector<1x256x256xbf16>
    %134 = vector.shape_cast %133 : vector<1x256x256xbf16> to vector<256x256xbf16>
    %cst_78 = arith.constant dense<0.000000e+00> : vector<32x256xf32>
    %135 = tpu.matmul %132, %134, %cst_78 {dimension_numbers = #tpu.dot_dimension_numbers<[1], [0], [0], [1], [0, 0, 1, 1], [], []>} : vector<32x256xbf16>, vector<256x256xbf16>, vector<32x256xf32> -> vector<32x256xf32>
    %136 = arith.addf %129, %135 : vector<32x256xf32>
    %137 = vector.extract_strided_slice %100 {offsets = [1, 2, 0], sizes = [4, 8, 256], strides = [1, 1, 1]} : vector<6x10x256xf32> to vector<4x8x256xf32>
    %138 = vector.shape_cast %137 : vector<4x8x256xf32> to vector<32x256xf32>
    %139 = arith.truncf %138 : vector<32x256xf32> to vector<32x256xbf16>
    %c5_79 = arith.constant 5 : index
    %c0_80 = arith.constant 0 : index
    %c0_81 = arith.constant 0 : index
    %140 = vector.load %arg3[%c5_79, %c0_80, %c0_81] : memref<9x256x256xbf16, #tpu.memory_space<vmem>>, vector<1x256x256xbf16>
    %141 = vector.shape_cast %140 : vector<1x256x256xbf16> to vector<256x256xbf16>
    %cst_82 = arith.constant dense<0.000000e+00> : vector<32x256xf32>
    %142 = tpu.matmul %139, %141, %cst_82 {dimension_numbers = #tpu.dot_dimension_numbers<[1], [0], [0], [1], [0, 0, 1, 1], [], []>} : vector<32x256xbf16>, vector<256x256xbf16>, vector<32x256xf32> -> vector<32x256xf32>
    %143 = arith.addf %136, %142 : vector<32x256xf32>
    %144 = vector.extract_strided_slice %100 {offsets = [2, 0, 0], sizes = [4, 8, 256], strides = [1, 1, 1]} : vector<6x10x256xf32> to vector<4x8x256xf32>
    %145 = vector.shape_cast %144 : vector<4x8x256xf32> to vector<32x256xf32>
    %146 = arith.truncf %145 : vector<32x256xf32> to vector<32x256xbf16>
    %c6_83 = arith.constant 6 : index
    %c0_84 = arith.constant 0 : index
    %c0_85 = arith.constant 0 : index
    %147 = vector.load %arg3[%c6_83, %c0_84, %c0_85] : memref<9x256x256xbf16, #tpu.memory_space<vmem>>, vector<1x256x256xbf16>
    %148 = vector.shape_cast %147 : vector<1x256x256xbf16> to vector<256x256xbf16>
    %cst_86 = arith.constant dense<0.000000e+00> : vector<32x256xf32>
    %149 = tpu.matmul %146, %148, %cst_86 {dimension_numbers = #tpu.dot_dimension_numbers<[1], [0], [0], [1], [0, 0, 1, 1], [], []>} : vector<32x256xbf16>, vector<256x256xbf16>, vector<32x256xf32> -> vector<32x256xf32>
    %150 = arith.addf %143, %149 : vector<32x256xf32>
    %151 = vector.extract_strided_slice %100 {offsets = [2, 1, 0], sizes = [4, 8, 256], strides = [1, 1, 1]} : vector<6x10x256xf32> to vector<4x8x256xf32>
    %152 = vector.shape_cast %151 : vector<4x8x256xf32> to vector<32x256xf32>
    %153 = arith.truncf %152 : vector<32x256xf32> to vector<32x256xbf16>
    %c7_87 = arith.constant 7 : index
    %c0_88 = arith.constant 0 : index
    %c0_89 = arith.constant 0 : index
    %154 = vector.load %arg3[%c7_87, %c0_88, %c0_89] : memref<9x256x256xbf16, #tpu.memory_space<vmem>>, vector<1x256x256xbf16>
    %155 = vector.shape_cast %154 : vector<1x256x256xbf16> to vector<256x256xbf16>
    %cst_90 = arith.constant dense<0.000000e+00> : vector<32x256xf32>
    %156 = tpu.matmul %153, %155, %cst_90 {dimension_numbers = #tpu.dot_dimension_numbers<[1], [0], [0], [1], [0, 0, 1, 1], [], []>} : vector<32x256xbf16>, vector<256x256xbf16>, vector<32x256xf32> -> vector<32x256xf32>
    %157 = arith.addf %150, %156 : vector<32x256xf32>
    %158 = vector.extract_strided_slice %100 {offsets = [2, 2, 0], sizes = [4, 8, 256], strides = [1, 1, 1]} : vector<6x10x256xf32> to vector<4x8x256xf32>
    %159 = vector.shape_cast %158 : vector<4x8x256xf32> to vector<32x256xf32>
    %160 = arith.truncf %159 : vector<32x256xf32> to vector<32x256xbf16>
    %c8_91 = arith.constant 8 : index
    %c0_92 = arith.constant 0 : index
    %c0_93 = arith.constant 0 : index
    %161 = vector.load %arg3[%c8_91, %c0_92, %c0_93] : memref<9x256x256xbf16, #tpu.memory_space<vmem>>, vector<1x256x256xbf16>
    %162 = vector.shape_cast %161 : vector<1x256x256xbf16> to vector<256x256xbf16>
    %cst_94 = arith.constant dense<0.000000e+00> : vector<32x256xf32>
    %163 = tpu.matmul %160, %162, %cst_94 {dimension_numbers = #tpu.dot_dimension_numbers<[1], [0], [0], [1], [0, 0, 1, 1], [], []>} : vector<32x256xbf16>, vector<256x256xbf16>, vector<32x256xf32> -> vector<32x256xf32>
    %164 = arith.addf %157, %163 : vector<32x256xf32>
    %c0_95 = arith.constant 0 : index
    %c0_96 = arith.constant 0 : index
    %165 = vector.load %arg7[%c0_95, %c0_96] : memref<1x256xf32, #tpu.memory_space<vmem>>, vector<1x256xf32>
    %c0_97 = arith.constant 0 : index
    %c0_98 = arith.constant 0 : index
    %166 = vector.load %arg8[%c0_97, %c0_98] : memref<1x256xf32, #tpu.memory_space<vmem>>, vector<1x256xf32>
    %cst_99 = arith.constant dense<0.000000e+00> : vector<256xf32>
    %167 = vector.multi_reduction <add>, %164, %cst_99 [0] : vector<32x256xf32> to vector<256xf32>
    %168 = vector.shape_cast %167 : vector<256xf32> to vector<1x256xf32>
    %cst_100 = arith.constant dense<0.000000e+00> : vector<1x256xf32>
    %169 = tpu.matmul %168, %5, %cst_100 {dimension_numbers = #tpu.dot_dimension_numbers<[1], [0], [0], [1], [0, 0, 1, 1], [], []>} : vector<1x256xf32>, vector<256x256xf32>, vector<1x256xf32> -> vector<1x256xf32>
    %cst_101 = arith.constant 5.120000e+02 : f32
    %170 = vector.broadcast %cst_101 : f32 to vector<1x256xf32>
    %171 = arith.divf %169, %170 : vector<1x256xf32>
    %172 = vector.broadcast %171 : vector<1x256xf32> to vector<32x256xf32>
    %173 = arith.subf %164, %172 : vector<32x256xf32>
    %174 = arith.mulf %173, %173 : vector<32x256xf32>
    %cst_102 = arith.constant dense<0.000000e+00> : vector<256xf32>
    %175 = vector.multi_reduction <add>, %174, %cst_102 [0] : vector<32x256xf32> to vector<256xf32>
    %176 = vector.shape_cast %175 : vector<256xf32> to vector<1x256xf32>
    %cst_103 = arith.constant dense<0.000000e+00> : vector<1x256xf32>
    %177 = tpu.matmul %176, %5, %cst_103 {dimension_numbers = #tpu.dot_dimension_numbers<[1], [0], [0], [1], [0, 0, 1, 1], [], []>} : vector<1x256xf32>, vector<256x256xf32>, vector<1x256xf32> -> vector<1x256xf32>
    %cst_104 = arith.constant 5.120000e+02 : f32
    %178 = vector.broadcast %cst_104 : f32 to vector<1x256xf32>
    %179 = arith.divf %177, %178 : vector<1x256xf32>
    %cst_105 = arith.constant 9.99999974E-6 : f32
    %180 = vector.broadcast %cst_105 : f32 to vector<1x256xf32>
    %181 = arith.addf %179, %180 : vector<1x256xf32>
    %182 = math.rsqrt %181 : vector<1x256xf32>
    %183 = vector.broadcast %182 : vector<1x256xf32> to vector<32x256xf32>
    %184 = arith.mulf %173, %183 : vector<32x256xf32>
    %185 = vector.broadcast %165 : vector<1x256xf32> to vector<32x256xf32>
    %186 = arith.mulf %184, %185 : vector<32x256xf32>
    %187 = vector.broadcast %166 : vector<1x256xf32> to vector<32x256xf32>
    %188 = arith.addf %186, %187 : vector<32x256xf32>
    %189 = vector.shape_cast %4 : vector<4x8x256xf32> to vector<32x256xf32>
    %190 = arith.addf %188, %189 : vector<32x256xf32>
    %cst_106 = arith.constant 0.000000e+00 : f32
    %191 = vector.broadcast %cst_106 : f32 to vector<32x256xf32>
    %192 = arith.maximumf %190, %191 : vector<32x256xf32>
    %193 = vector.shape_cast %192 : vector<32x256xf32> to vector<1x4x8x256xf32>
    %c0_107 = arith.constant 0 : index
    %c0_108 = arith.constant 0 : index
    %c0_109 = arith.constant 0 : index
    %c0_110 = arith.constant 0 : index
    %194 = vector.load %arg9[%c0_107, %c0_108, %c0_109, %c0_110] : memref<1x4x8x256xf32, #tpu.memory_space<vmem>>, vector<1x4x8x256xf32>
    tpu.vector_store %arg9[%c0_107, %c0_108, %c0_109, %c0_110], %193 {strides = array<i32>} : memref<1x4x8x256xf32, #tpu.memory_space<vmem>>, vector<1x4x8x256xf32>,
    return
  }
  func.func @transform_0(%arg0: i32) -> (i32, i32, i32, i32) {
    %c0_i32 = arith.constant 0 : i32
    %c0_i32_0 = arith.constant 0 : i32
    %c0_i32_1 = arith.constant 0 : i32
    %c0_i32_2 = arith.constant 0 : i32
    return %arg0, %c0_i32, %c0_i32_0, %c0_i32_1 : i32, i32, i32, i32
  }
  func.func @transform_1(%arg0: i32) -> (i32, i32, i32) {
    %c0_i32 = arith.constant 0 : i32
    %c0_i32_0 = arith.constant 0 : i32
    %c0_i32_1 = arith.constant 0 : i32
    %c0_i32_2 = arith.constant 0 : i32
    return %c0_i32, %c0_i32_0, %c0_i32_1 : i32, i32, i32
  }
  func.func @transform_2(%arg0: i32) -> (i32, i32, i32) {
    %c0_i32 = arith.constant 0 : i32
    %c0_i32_0 = arith.constant 0 : i32
    %c0_i32_1 = arith.constant 0 : i32
    %c0_i32_2 = arith.constant 0 : i32
    return %c0_i32, %c0_i32_0, %c0_i32_1 : i32, i32, i32
  }
  func.func @transform_3(%arg0: i32) -> (i32, i32) {
    %c0_i32 = arith.constant 0 : i32
    %c0_i32_0 = arith.constant 0 : i32
    %c0_i32_1 = arith.constant 0 : i32
    return %c0_i32, %c0_i32_0 : i32, i32
  }
  func.func @transform_4(%arg0: i32) -> (i32, i32) {
    %c0_i32 = arith.constant 0 : i32
    %c0_i32_0 = arith.constant 0 : i32
    %c0_i32_1 = arith.constant 0 : i32
    return %c0_i32, %c0_i32_0 : i32, i32
  }
  func.func @transform_5(%arg0: i32) -> (i32, i32) {
    %c0_i32 = arith.constant 0 : i32
    %c0_i32_0 = arith.constant 0 : i32
    %c0_i32_1 = arith.constant 0 : i32
    return %c0_i32, %c0_i32_0 : i32, i32
  }
  func.func @transform_6(%arg0: i32) -> (i32, i32) {
    %c0_i32 = arith.constant 0 : i32
    %c0_i32_0 = arith.constant 0 : i32
    %c0_i32_1 = arith.constant 0 : i32
    return %c0_i32, %c0_i32_0 : i32, i32
  }
  func.func @transform_7(%arg0: i32) -> (i32, i32) {
    %c0_i32 = arith.constant 0 : i32
    %c0_i32_0 = arith.constant 0 : i32
    %c0_i32_1 = arith.constant 0 : i32
    return %c0_i32, %c0_i32_0 : i32, i32
  }
  func.func @transform_8(%arg0: i32) -> (i32, i32, i32, i32) {
    %c0_i32 = arith.constant 0 : i32
    %c0_i32_0 = arith.constant 0 : i32
    %c0_i32_1 = arith.constant 0 : i32
    %c0_i32_2 = arith.constant 0 : i32
    return %arg0, %c0_i32, %c0_i32_0, %c0_i32_1 : i32, i32, i32, i32
  }
}

</mosaic_0001>

<bundles_post_ra>
// kernel: tpu_custom_call.1
= control target key start
LH: loop header
LB: loop body
LE: loop exit
PB: predicated region body
PF: predicated region fallthrough
CT: control target
= control target key end

     0   :  { %s9351_s0 = inlined_call_operand.hbm [shape: f32[2,4,8,256], index: 0, kind: input, shape index: {}]   ;;  %s9352_s1 = inlined_call_operand.hbm [shape: bf16[9,256,256], index: 1, kind: input, shape index: {}]   ;;  %s9353_s2 = inlined_call_operand.hbm [shape: bf16[9,256,256], index: 2, kind: input, shape index: {}]   ;;  %s9354_s3 = inlined_call_operand.hbm [shape: f32[256,256], index: 3, kind: input, shape index: {}]   ;;  %s9355_s4 = inlined_call_operand.hbm [shape: f32[1,256], index: 4, kind: input, shape index: {}]   ;;  %s9356_s5 = inlined_call_operand.hbm [shape: f32[1,256], index: 5, kind: input, shape index: {}]   ;;  %s9357_s6 = inlined_call_operand.hbm [shape: f32[1,256], index: 6, kind: input, shape index: {}]   ;;  %s9358_s7 = inlined_call_operand.hbm [shape: f32[1,256], index: 7, kind: input, shape index: {}]   ;;  %s9359_s8 = inlined_call_operand.hbm [shape: f32[2,4,8,256], index: 8, kind: output, shape index: {}]  }
   0x1   :  { %9376 = sst [smem:[#allocation32_spill]] %s9352_s1 }
   0x2   :  { %9377 = sst [smem:[#allocation33_spill]] %s9353_s2 }
   0x3   :  { %13 = vsyncpa [#allocation4], 0 }
   0x4   :  { %15 = vsyncpa [#allocation4 + $0x1], 0 }
   0x5   :  { %16 = vsyncpa [#allocation7], 0 }
   0x6   :  { %17 = vsyncpa [#allocation10], 0 }
   0x7   :  { %18 = vsyncpa [#allocation13], 0 }
   0x8   :  { %19 = vsyncpa [#allocation16], 0 }
   0x9   :  { %20 = vsyncpa [#allocation5], 0 }
   0xa   :  { %22 = vsyncpa [#allocation5 + $0x1], 0  ;;  %s8239_s27 = smov 0   ;;  %s8241_s28 = smov 0  }
   0xb   :  { %s8243_s29 = smov 0   ;;  %s8245_s30 = smov 0  }
   0xc LB: > { %s8178_s9 = smov [#allocation6]   ;;  %s8260_s11 = sadd.s32 4294967295, %s8176_s30   ;;  %s8176_s30 = sphi %s8245_s30, %s9429_s30   ;;  %s8172_s29 = sphi %s8243_s29, %s9428_s29   ;;  %s8168_s28 = sphi %s8241_s28, %s9427_s28   ;;  %s8164_s27 = sphi %s8239_s27, %s9426_s27  }
   0xd   : > { %s244_s10 = sshll.u32 %s8178_s9, 4  ;;  %p6207_p0 = scmp.ge.s32.totalorder %s8176_s30, 1  ;;  %s245_s10 = int_to_ptr.vmem [resolvable:$true] %s244_s10 }
   0xe   : > { %p9360_p1 = scmp.eq.s32.totalorder %s8260_s11, 0  ;;  %p232_p2 = scmp.lt.s32.totalorder %s8176_s30, 3 }
   0xf   : > { %s8179_s13 = smov [#allocation9]   ;;  %s8180_s16 = smov [#allocation12]  }
  0x10   : > { %p8266_p4 = pnand %p6207_p0, %p232_p2  ;;  %s270_s14 = sshll.u32 %s8179_s13, 4  ;;  %s8279_s14 = int_to_ptr.vmem [resolvable:$true] %s270_s14 }
  0x11   : > { %s8281_s17 = sshll.u32 %s8180_s16, 4  ;;  %s7897_s19 = scalar_lea.vmem %s245_s10, 36864  ;;  %s296_s17 = int_to_ptr.vmem [resolvable:$true] %s8281_s17 }
  0x12   : > { %s9378_s12 = scalar_select %p8266_p4, 1, 0 }
  0x13   : > { %p6845_p6 = pneg %p8266_p4  ;;  %p7898_p9 = scmp.ne.s32.totalorder %s245_s10, %s7897_s19 }
  0x14   : > { %p7905_p12 = scmp.lt.s32.totalorder %s245_s10, %s245_s10  ;;  %p7906_p13 = scmp.lt.s32.totalorder %s7897_s19, %s7897_s19 }
  0x15   : > { %p8275_p7 = pnand %p6845_p6, %p9360_p1 }
  0x16   : > { %p7907_p0 = por %p7906_p13, %p7905_p12 }
  0x17   : > { %p8285_p8 = pneg %p8275_p7 }
  0x19   : > { %p7900_p10 = pnand %p7898_p9, %p8285_p8 }
  0x1b   : > { %p7901_p11 = pneg %p7900_p10 }
  0x1d   : > { %p7908_p2 = pnand %p7907_p0, %p7901_p11 }
  0x1f   : > { %7911 = shalt.err (!%p7908_p2)
}
  0x20   : > { %s8181_s20 = smov 128   ;;  %s8182_s21 = smov 8  }
  0x21   : > { %s9381_s1 = sld [smem:[#allocation32_spill]]  ;;  %s7923_s24 = scalar_lea.vmem %s8279_s14, 8192 }
  0x22   : > { %p7924_p6 = scmp.ne.s32.totalorder %s8279_s14, %s7923_s24  ;;  %p7931_p11 = scmp.lt.s32.totalorder %s8279_s14, %s8279_s14 }
  0x23   : > { %p7932_p12 = scmp.lt.s32.totalorder %s7923_s24, %s7923_s24 }
  0x24   : > { %p7926_p9 = pnand %p7924_p6, %p8285_p8 }
  0x25   : > { %p7933_p13 = por %p7932_p12, %p7931_p11 }
  0x26   : > { %p7927_p10 = pneg %p7926_p9 }
  0x27   : > { %6848 = dma.hbm_to_vmem [thread:$0]  (!%p8275_p7), %s9381_s1, 36864, %s245_s10, [#allocation7], %s8181_s20, %s8181_s20, %s8182_s21  }
  0x28   : > { %p7934_p0 = pnand %p7933_p13, %p7927_p10 }
  0x2a   : > { %7937 = shalt.err (!%p7934_p0)
}
  0x2b   : > { %s9362_s25 = smov 256   ;;  %s9363_s26 = smov 16  }
  0x2c   : > { %6854 = dma.hbm_to_vmem [thread:$0]  (!%p8275_p7), %s9354_s3, 8192, %s8279_s14, [#allocation10], %s9362_s25, %s9362_s25, %s9363_s26  }
  0x2d   : > { %s7949_s13 = scalar_lea.vmem %s296_s17, 32  ;;  %p7957_p10 = scmp.lt.s32.totalorder %s296_s17, %s296_s17 }
  0x2e   : > { %p7950_p2 = scmp.ne.s32.totalorder %s296_s17, %s7949_s13  ;;  %p7958_p11 = scmp.lt.s32.totalorder %s7949_s13, %s7949_s13 }
  0x30   : > { %p7952_p6 = pnand %p7950_p2, %p8285_p8  ;;  %p7959_p12 = por %p7958_p11, %p7957_p10 }
  0x32   : > { %p7953_p9 = pneg %p7952_p6 }
  0x34   : > { %p7960_p13 = pnand %p7959_p12, %p7953_p9 }
  0x36   : > { %7963 = shalt.err (!%p7960_p13)
}
  0x37   : > { %6860 = dma.hbm_to_vmem [thread:$0]  (!%p8275_p7), %s9356_s5, 32, %s296_s17, [#allocation13]  }
  0x38   : > { %s8185_s22 = smov [#allocation8]   ;;  %s8186_s23 = smov [#allocation11]  }
  0x39   : > { %s257_s14 = sshll.u32 %s8185_s22, 4  ;;  %s284_s24 = sshll.u32 %s8186_s23, 4  ;;  %s258_s14 = int_to_ptr.vmem [resolvable:$true] %s257_s14  ;;  %s285_s24 = int_to_ptr.vmem [resolvable:$true] %s284_s24 }
  0x3a   : > { %s7975_s9 = scalar_lea.vmem %s258_s14, 36864  ;;  %p7983_p10 = scmp.lt.s32.totalorder %s258_s14, %s258_s14 }
  0x3b   : > { %p7976_p0 = scmp.ne.s32.totalorder %s258_s14, %s7975_s9  ;;  %p7984_p9 = scmp.lt.s32.totalorder %s7975_s9, %s7975_s9 }
  0x3d   : > { %p7978_p2 = pnand %p7976_p0, %p8285_p8  ;;  %p7985_p11 = por %p7984_p9, %p7983_p10 }
  0x3f   : > { %p7979_p6 = pneg %p7978_p2 }
  0x41   : > { %p7986_p12 = pnand %p7985_p11, %p7979_p6 }
  0x43   : > { %7989 = shalt.err (!%p7986_p12)
}
  0x44   : > { %s9382_s2 = sld [smem:[#allocation33_spill]]  ;;  %s8001_s13 = scalar_lea.vmem %s285_s24, 32 }
  0x45   : > { %p8002_p13 = scmp.ne.s32.totalorder %s285_s24, %s8001_s13  ;;  %p8009_p5 = scmp.lt.s32.totalorder %s285_s24, %s285_s24 }
  0x46   : > { %p8010_p10 = scmp.lt.s32.totalorder %s8001_s13, %s8001_s13 }
  0x47   : > { %p8004_p0 = pnand %p8002_p13, %p8285_p8 }
  0x48   : > { %p8011_p6 = por %p8010_p10, %p8009_p5 }
  0x49   : > { %p8005_p2 = pneg %p8004_p0 }
  0x4a   : > { %6851 = dma.hbm_to_vmem [thread:$0]  (!%p8275_p7), %s9382_s2, 36864, %s258_s14, [#allocation7], %s8181_s20, %s8181_s20, %s8182_s21  }
  0x4b   : > { %p8012_p9 = pnand %p8011_p6, %p8005_p2 }
  0x4d   : > { %8015 = shalt.err (!%p8012_p9)
}
  0x4e   : > { %6857 = dma.hbm_to_vmem [thread:$0]  (!%p8275_p7), %s9355_s4, 32, %s285_s24, [#allocation10]  }
  0x4f   : > { %s8187_s22 = smov [#allocation14]   ;;  %s8188_s21 = smov [#allocation15]  }
  0x50   : > { %s306_s20 = sshll.u32 %s8187_s22, 4  ;;  %s317_s14 = sshll.u32 %s8188_s21, 4  ;;  %s307_s20 = int_to_ptr.vmem [resolvable:$true] %s306_s20  ;;  %s318_s14 = int_to_ptr.vmem [resolvable:$true] %s317_s14 }
  0x51   : > { %s8027_s23 = scalar_lea.vmem %s307_s20, 32  ;;  %p8035_p5 = scmp.lt.s32.totalorder %s307_s20, %s307_s20 }
  0x52   : > { %p8028_p11 = scmp.ne.s32.totalorder %s307_s20, %s8027_s23  ;;  %p8036_p0 = scmp.lt.s32.totalorder %s8027_s23, %s8027_s23 }
  0x54   : > { %p8030_p12 = pnand %p8028_p11, %p8285_p8  ;;  %p8037_p2 = por %p8036_p0, %p8035_p5 }
  0x56   : > { %p8031_p13 = pneg %p8030_p12 }
  0x58   : > { %p8038_p10 = pnand %p8037_p2, %p8031_p13 }
  0x5a   : > { %8041 = shalt.err (!%p8038_p10)
}
  0x5b   : > { %6863 = dma.hbm_to_vmem [thread:$0]  (!%p8275_p7), %s9357_s6, 32, %s307_s20, [#allocation13]  }
  0x5c   : > { %s8053_s24 = scalar_lea.vmem %s318_s14, 32  ;;  %p8061_p11 = scmp.lt.s32.totalorder %s318_s14, %s318_s14 }
  0x5d   : > { %p8054_p6 = scmp.ne.s32.totalorder %s318_s14, %s8053_s24  ;;  %p8062_p12 = scmp.lt.s32.totalorder %s8053_s24, %s8053_s24 }
  0x5f   : > { %p8056_p9 = pnand %p8054_p6, %p8285_p8  ;;  %p8063_p1 = por %p8062_p12, %p8061_p11 }
  0x61   : > { %p8057_p3 = pneg %p8056_p9 }
  0x63   : > { %p8064_p4 = pnand %p8063_p1, %p8057_p3 }
  0x65   : > { %8067 = shalt.err (!%p8064_p4)
}
  0x66   : > { %6866 = dma.hbm_to_vmem [thread:$0]  (!%p8275_p7), %s9358_s7, 32, %s318_s14, [#allocation16]  }
  0x67   : > { %s6206_s18 = sadd.s32 4294967294, %s8176_s30   ;;  %s8355_s15 = sadd.s32 1, %s8176_s30  }
  0x68   : > { %s35_s16 = sadd.s32 1, %s8172_s29  ;;  %s32_s19 = ssub.s32 %s8176_s30, %s8355_s15 }
  0x69   : > { %p42_p1 = scmp.ne.s32.totalorder %s8172_s29, %s8168_s28  ;;  %p33_p3 = scmp.eq.s32.totalorder %s32_s19, 0 }
  0x6a   : > { %p43_p4 = scmp.eq.s32.totalorder %s8176_s30, 0  ;;  %p48_p8 = scmp.ne.s32.totalorder %s8168_s28, %s8164_s27 }
  0x6b   : > { %p219_p13 = scmp.eq.s32.totalorder %s8260_s11, 1  ;;  %p9383_p0 = scmp.eq.s32.totalorder %s8260_s11, 0 }
  0x6c   : > { %s8367_s22 = scalar_select %p33_p3, %s8172_s29, %s35_s16  }
  0x6d   : > { %p44_p5 = por %p43_p4, %p42_p1  ;;  %p8371_p2 = por %p9383_p0, %p48_p8 }
  0x6e   : > { %p8375_p7 = por %p219_p13, %p42_p1  ;;  %p225_p10 = scmp.eq.s32.totalorder %s6206_s18, 1 }
  0x6f   : > { %s9384_s20 = scalar_select %p8371_p2, 1, 0 }
  0x70   : > { %s9385_s21 = scalar_select %p8375_p7, 1, 0 }
  0x71   : > { %p6882_p6 = scmp.lt.s32.totalorder %s8176_s30, 2  ;;  %s328_s14 = sand.u32 1, %s8172_s29  }
  0x72   : > { %p8381_p9 = por %p225_p10, %p48_p8  ;;  %s6216_s9 = sshll.u32 %s328_s14, 6 }
  0x73   : > { %s6811_s17 = sshll.u32 %s8176_s30, 10  ;;  %s332_s16 = scalar_lea.vmem [#allocation3], %s6216_s9 }
  0x74   : > { %s9386_s23 = scalar_select %p8381_p9, 1, 0 }
  0x75   : > { %s8389_s13 = scalar_lea.hbm %s9351_s0, %s6811_s17  ;;  %s339_s19 = sshll.u32 %s332_s16, 4  ;;  %s8395_s19 = int_to_ptr.vmem [resolvable:$true] %s339_s19 }
  0x76   : > { %p8391_p11 = pnand %p6882_p6, %p44_p5  ;;  %s8397_s25 = scalar_lea.sflag [#allocation4], %s328_s14 }
  0x77   : > { %s8068_s26 = scalar_lea.hbm %s8389_s13, 1024  ;;  %s8073_s9 = scalar_lea.hbm %s9351_s0, 2048 }
  0x78   : > { %p8069_p12 = scmp.ne.s32.totalorder %s8389_s13, %s8068_s26  ;;  %p8070_p1 = pneg %p8391_p11 }
  0x79   : > { %p8074_p8 = scmp.lt.s32.totalorder %s8389_s13, %s9351_s0  ;;  %p8075_p13 = scmp.lt.s32.totalorder %s8073_s9, %s8068_s26 }
  0x7a   : > { %p8071_p3 = pnand %p8070_p1, %p8069_p12 }
  0x7b   : > { %p8076_p5 = por %p8075_p13, %p8074_p8 }
  0x7c   : > { %p8072_p4 = pneg %p8071_p3 }
  0x7e   : > { %p8077_p0 = pnand %p8076_p5, %p8072_p4 }
  0x80   : > { %8080 = shalt.err (!%p8077_p0)
}
  0x81   : > { %s8081_s14 = scalar_lea.vmem %s8395_s19, 1024  ;;  %s8189_s1 = smov [#allocation3]  }
  0x82   : > { %p8082_p10 = scmp.ne.s32.totalorder %s8395_s19, %s8081_s14  ;;  %s8086_s2 = sshll.u32 %s8189_s1, 4  ;;  %s8087_s2 = int_to_ptr.vmem [resolvable:$false] %s8086_s2 }
  0x83   : > { %s8088_s17 = scalar_lea.vmem %s8087_s2, 2048  ;;  %p8089_p3 = scmp.lt.s32.totalorder %s8395_s19, %s8087_s2 }
  0x84   : > { %p8084_p6 = pnand %p8082_p10, %p8070_p1  ;;  %p8090_p9 = scmp.lt.s32.totalorder %s8088_s17, %s8081_s14 }
  0x86   : > { %p8085_p12 = pneg %p8084_p6  ;;  %p8091_p7 = por %p8090_p9, %p8089_p3 }
  0x88   : > { %p8092_p2 = pnand %p8091_p7, %p8085_p12 }
  0x8a   : > { %8095 = shalt.err (!%p8092_p2)
}
  0x8b   : > { %s9388_s26 = smov 16   ;;  %s9389_s24 = smov 256  }
  0x8c   : > { %6870 = dma.hbm_to_vmem [thread:$0]  (!%p8391_p11), %s8389_s13, 1024, %s8395_s19, %s8397_s25, %s9389_s24, %s9389_s24, %s9388_s26  }
  0x8d   : > { %p9390_p1 = scmp.ne.s32.totalorder %s9378_s12, 0 }
  0x8f   : > { %351 = sbr.rel (%p9390_p1) target bundleno = 2136 (0x858), region = 52 }
  0x94   : > { %s8424_s1 = sand.u32 1, %s8168_s28   ;;  %p9391_p2 = scmp.ne.s32.totalorder %s9384_s20, 0 }
  0x95   : > { %s6220_s2 = sshll.u32 %s8424_s1, 6  ;;  %s354_s9 = scalar_lea.sflag [#allocation4], %s8424_s1 }
  0x96   : > { %s8428_s10 = scalar_lea.vmem [#allocation3], %s6220_s2 }
  0x97   : > { %8139 = dma.done.wait (%p9391_p2), %s354_s9, 1024  }
  0x98   : > { %8141 = vsyncadd (%p9391_p2), %s354_s9, 4294966272  ;;  %p9392_p7 = scmp.eq.s32.totalorder %s8260_s11, 0 }
  0x9a   : > { %8143 = dma.done.wait (%p9392_p7), [#allocation7], 73728   ;;  %p9393_p9 = pmov %p9392_p7 }
  0x9b   : > { %p9394_p11 = pmov %p9392_p7 }
  0x9c   : > { %8145 = vsyncadd (%p9393_p9), [#allocation7], 4294893568 }
  0x9d   : > { %8147 = dma.done.wait (%p9394_p11), [#allocation10], 8224   ;;  %p9395_p4 = pmov %p9392_p7 }
  0x9f   : > { %8149 = vsyncadd (%p9395_p4), [#allocation10], 4294959072  ;;  %p9396_p8 = pmov %p9395_p4 }
  0xa0   : > { %p9397_p13 = pmov %p9395_p4 }
  0xa1   : > { %8151 = dma.done.wait (%p9396_p8), [#allocation13], 64  }
  0xa2   : > { %8153 = vsyncadd (%p9397_p13), [#allocation13], 4294967232  ;;  %p9398_p5 = pmov %p9395_p4 }
  0xa3   : > { %p9399_p0 = pmov %p9395_p4 }
  0xa4   : > { %8155 = dma.done.wait (%p9398_p5), [#allocation16], 32  }
  0xa5   : > { %8157 = vsyncadd (%p9399_p0), [#allocation16], 4294967264  ;;  %s8450_s12 = scalar_lea.vmem [#allocation17], %s6220_s2  ;;  %p9400_p10 = scmp.ne.s32.totalorder %s8260_s11, 0 }
  0xa7   : > { %421 = sbr.rel (%p9400_p10) target bundleno = 185 (0xb9), region = 88 }
  0xac   : > { %v8190_v0 = vmov 0.0  }
  0xad   : > { %422 = vst [vmem:[#allocation2 + $0xb0] sm:$0xff] %v8190_v0  ;;  %423 = vst [vmem:[#allocation2] sm:$0xff] %v8190_v0 }
  0xae   : > { %424 = vst [vmem:[#allocation2 + $0x10] sm:$0x3] %v8190_v0  ;;  %425 = vst [vmem:[#allocation2 + $0x48] sm:$0x3] %v8190_v0 }
  0xaf   : > { %426 = vst [vmem:[#allocation2 + $0x60] sm:$0xff] %v8190_v0  ;;  %427 = vst [vmem:[#allocation2 + $0x28] sm:$0xff] %v8190_v0 }
  0xb0   : > { %428 = vst [vmem:[#allocation2 + $0x40] sm:$0x3] %v8190_v0  ;;  %429 = vst [vmem:[#allocation2 + $0x78] sm:$0x3] %v8190_v0 }
  0xb1   : > { %430 = vst [vmem:[#allocation2 + $0x88] sm:$0xff] %v8190_v0  ;;  %431 = vst [vmem:[#allocation2 + $0x90] sm:$0xff] %v8190_v0 }
  0xb2   : > { %432 = vst [vmem:[#allocation2 + $0x18] sm:$0x3] %v8190_v0  ;;  %433 = vst [vmem:[#allocation2 + $0x98] sm:$0x3] %v8190_v0 }
  0xb3   : > { %434 = vst [vmem:[#allocation2 + $0x38] sm:$0xff] %v8190_v0  ;;  %435 = vst [vmem:[#allocation2 + $0x50] sm:$0xff] %v8190_v0 }
  0xb4   : > { %436 = vst [vmem:[#allocation2 + $0x70] sm:$0x3] %v8190_v0  ;;  %437 = vst [vmem:[#allocation2 + $0xa0] sm:$0x3] %v8190_v0 }
  0xb5   : > { %438 = vst [vmem:[#allocation2 + $0xa8] sm:$0xff] %v8190_v0  ;;  %439 = vst [vmem:[#allocation2 + $0x68] sm:$0xff] %v8190_v0 }
  0xb6   : > { %440 = vst [vmem:[#allocation2 + $0x30] sm:$0x3] %v8190_v0  ;;  %441 = vst [vmem:[#allocation2 + $0x58] sm:$0x3] %v8190_v0 }
  0xb7   : > { %442 = vst [vmem:[#allocation2 + $0x80] sm:$0xff] %v8190_v0  ;;  %443 = vst [vmem:[#allocation2 + $0xb8] sm:$0xff] %v8190_v0 }
  0xb8   : > { %444 = vst [vmem:[#allocation2 + $0x20] sm:$0x3] %v8190_v0  ;;  %445 = vst [vmem:[#allocation2 + $0x8] sm:$0x3] %v8190_v0 }
  0xb9 PF: > { %v6937_v1 = vld [vmem:[#allocation6 + $0x174] ss:$8 sps:$4 sm:$0xff]   ;;  %v6941_v3 = vld [vmem:[#allocation6 + $0x170] ss:$8 sps:$4 sm:$0xff]   ;;  %v6943_v5 = vld [vmem:[#allocation6 + $0x164] ss:$8 sps:$4 sm:$0xff]  }
  0xba   : > { %v6939_v2 = vld [vmem:[#allocation6 + $0x74] ss:$8 sps:$4 sm:$0xff]   ;;  %865 = vmatprep.subr.bf16.mxu0 %v6937_v1  ;;  %v6942_v4 = vld [vmem:[#allocation6 + $0x70] ss:$8 sps:$4 sm:$0xff]   ;;  %v6945_v6 = vld [vmem:[#allocation6 + $0x64] ss:$8 sps:$4 sm:$0xff]  }
  0xbb   : > { %1078 = vmatprep.subr.bf16.mxu1 %v6939_v2  ;;  %866 = vmatpush1.bf16.msra.mxu0 %v6941_v3  ;;  %v6947_v7 = vld [vmem:[#allocation6 + $0x160] ss:$8 sps:$4 sm:$0xff]   ;;  %v6949_v9 = vld [vmem:[#allocation6 + $0x154] ss:$8 sps:$4 sm:$0xff]   ;;  %v6953_v11 = vld [vmem:[#allocation6 + $0x150] ss:$8 sps:$4 sm:$0xff]  }
  0xbc   : > { %1079 = vmatpush1.bf16.msra.mxu1 %v6942_v4  ;;  %867 = vmatprep.subr.bf16.mxu0 %v6943_v5  ;;  %v6948_v8 = vld [vmem:[#allocation6 + $0x60] ss:$8 sps:$4 sm:$0xff]   ;;  %v6951_v10 = vld [vmem:[#allocation6 + $0x54] ss:$8 sps:$4 sm:$0xff]   ;;  %v6954_v12 = vld [vmem:[#allocation6 + $0x50] ss:$8 sps:$4 sm:$0xff]  }
  0xbd   : > { %1080 = vmatprep.subr.bf16.mxu1 %v6945_v6  ;;  %v6955_v13 = vld [vmem:[#allocation6 + $0x144] ss:$8 sps:$4 sm:$0xff]   ;;  %v6959_v15 = vld [vmem:[#allocation6 + $0x140] ss:$8 sps:$4 sm:$0xff]   ;;  %v6961_v17 = vld [vmem:[#allocation6 + $0x134] ss:$8 sps:$4 sm:$0xff]  }
  0xbe   : > { %v6957_v14 = vld [vmem:[#allocation6 + $0x44] ss:$8 sps:$4 sm:$0xff]   ;;  %v6960_v16 = vld [vmem:[#allocation6 + $0x40] ss:$8 sps:$4 sm:$0xff]   ;;  %v6963_v18 = vld [vmem:[#allocation6 + $0x34] ss:$8 sps:$4 sm:$0xff]  }
  0xbf   : > { %868 = vmatpush1.bf16.msra.mxu0 %v6947_v7  ;;  %v6965_v19 = vld [vmem:[#allocation6 + $0x130] ss:$8 sps:$4 sm:$0xff]   ;;  %v6967_v21 = vld [vmem:[#allocation6 + $0x124] ss:$8 sps:$4 sm:$0xff]   ;;  %v6971_v23 = vld [vmem:[#allocation6 + $0x120] ss:$8 sps:$4 sm:$0xff]  }
  0xc0   : > { %1081 = vmatpush1.bf16.msra.mxu1 %v6948_v8  ;;  %869 = vmatprep.subr.bf16.mxu0 %v6949_v9  ;;  %v6966_v20 = vld [vmem:[#allocation6 + $0x30] ss:$8 sps:$4 sm:$0xff]   ;;  %v6969_v22 = vld [vmem:[#allocation6 + $0x24] ss:$8 sps:$4 sm:$0xff]   ;;  %v6972_v24 = vld [vmem:[#allocation6 + $0x20] ss:$8 sps:$4 sm:$0xff]  }
  0xc1   : > { %1082 = vmatprep.subr.bf16.mxu1 %v6951_v10  ;;  %v6973_v25 = vld [vmem:[#allocation6 + $0x114] ss:$8 sps:$4 sm:$0xff]   ;;  %v6977_v27 = vld [vmem:[#allocation6 + $0x110] ss:$8 sps:$4 sm:$0xff]   ;;  %v6979_v29 = vld [vmem:[#allocation6 + $0x104] ss:$8 sps:$4 sm:$0xff]  }
  0xc2   : > { %v6975_v26 = vld [vmem:[#allocation6 + $0x14] ss:$8 sps:$4 sm:$0xff]   ;;  %v6978_v28 = vld [vmem:[#allocation6 + $0x10] ss:$8 sps:$4 sm:$0xff]   ;;  %v6981_v30 = vld [vmem:[#allocation6 + $0x4] ss:$8 sps:$4 sm:$0xff]  }
  0xc3   : > { %870 = vmatpush1.bf16.msra.mxu0 %v6953_v11  ;;  %v6983_v31 = vld [vmem:[#allocation6 + $0x100] ss:$8 sps:$4 sm:$0xff]   ;;  %v6985_v33 = vld [vmem:[#allocation6 + $0x1f4] ss:$8 sps:$4 sm:$0xff]   ;;  %v6989_v35 = vld [vmem:[#allocation6 + $0x1f0] ss:$8 sps:$4 sm:$0xff]  }
  0xc4   : > { %1083 = vmatpush1.bf16.msra.mxu1 %v6954_v12  ;;  %871 = vmatprep.subr.bf16.mxu0 %v6955_v13  ;;  %v6984_v32 = vld [vmem:[#allocation6] ss:$8 sps:$4 sm:$0xff]   ;;  %v6987_v34 = vld [vmem:[#allocation6 + $0xf4] ss:$8 sps:$4 sm:$0xff]   ;;  %v6990_v36 = vld [vmem:[#allocation6 + $0xf0] ss:$8 sps:$4 sm:$0xff]  }
  0xc5   : > { %1084 = vmatprep.subr.bf16.mxu1 %v6957_v14  ;;  %v6991_v37 = vld [vmem:[#allocation6 + $0x1e4] ss:$8 sps:$4 sm:$0xff]   ;;  %v6995_v39 = vld [vmem:[#allocation6 + $0x1e0] ss:$8 sps:$4 sm:$0xff]   ;;  %v6997_v41 = vld [vmem:[#allocation6 + $0x1d4] ss:$8 sps:$4 sm:$0xff]  }
  0xc6   : > { %v6993_v38 = vld [vmem:[#allocation6 + $0xe4] ss:$8 sps:$4 sm:$0xff]   ;;  %v6996_v40 = vld [vmem:[#allocation6 + $0xe0] ss:$8 sps:$4 sm:$0xff]   ;;  %v6999_v42 = vld [vmem:[#allocation6 + $0xd4] ss:$8 sps:$4 sm:$0xff]  }
  0xc7   : > { %872 = vmatpush1.bf16.msra.mxu0 %v6959_v15  ;;  %v7001_v43 = vld [vmem:[#allocation6 + $0x1d0] ss:$8 sps:$4 sm:$0xff]   ;;  %v7003_v45 = vld [vmem:[#allocation6 + $0x1c4] ss:$8 sps:$4 sm:$0xff]   ;;  %v7007_v47 = vld [vmem:[#allocation6 + $0x1c0] ss:$8 sps:$4 sm:$0xff]  }
  0xc8   : > { %1085 = vmatpush1.bf16.msra.mxu1 %v6960_v16  ;;  %873 = vmatprep.subr.bf16.mxu0 %v6961_v17  ;;  %v7002_v44 = vld [vmem:[#allocation6 + $0xd0] ss:$8 sps:$4 sm:$0xff]   ;;  %v7005_v46 = vld [vmem:[#allocation6 + $0xc4] ss:$8 sps:$4 sm:$0xff]   ;;  %v7008_v49 = vld [vmem:[#allocation6 + $0xc0] ss:$8 sps:$4 sm:$0xff]  }
  0xc9   : > { %1086 = vmatprep.subr.bf16.mxu1 %v6963_v18  ;;  %v447_v48 = vld [vmem:[%s8428_s10 + $0x8] sm:$0xff]  ;;  %v7009_v50 = vld [vmem:[#allocation6 + $0x1b4] ss:$8 sps:$4 sm:$0xff]   ;;  %v446_v55 = vld [vmem:[%s8428_s10] sm:$0xff]  ;;  %vm1131_vm0 = vcmask 1045504   ;;  %vm635_vm1 = vcmask 1046528  }
  0xca   : > { %v449_v51 = vld [vmem:[%s8428_s10 + $0x18] sm:$0xff]  ;;  %v527_v52 = vrot.slane %v447_v48, 7  ;;  %v8457_v56 = vld [vmem:[#allocation2 + $0xb0] sm:$0xff]  ;;  %v8459_v57 = vld [vmem:[#allocation2] sm:$0xff]  ;;  %v526_v58 = vrot.slane %v446_v55, 7  ;;  %s6812_s25 = sshll.u32 %s8260_s11, 10 }
  0xcb   : > { %874 = vmatpush1.bf16.msra.mxu0 %v6965_v19  ;;  %v7011_v53 = vld [vmem:[#allocation6 + $0xb4] ss:$8 sps:$4 sm:$0xff]   ;;  %v529_v54 = vrot.slane %v449_v51, 7  ;;  %v561_v59 = vld [vmem:[#allocation2 + $0x10] sm:$0x3]  ;;  %v1132_v60 = vrot.slane %v8457_v56, 2  ;;  %s9302_s19 = scalar_lea.hbm %s9359_s8, %s6812_s25 }
  0xcc   : > { %1087 = vmatpush1.bf16.msra.mxu1 %v6966_v20  ;;  %875 = vmatprep.subr.bf16.mxu0 %v6967_v21  ;;  %544 = vst [vmem:[#allocation2 + $0x28] sm:$0xfe] %v527_v52  ;;  %546 = vst [vmem:[#allocation2 + $0x78] sm:$0x1] %v527_v52  ;;  %v8462_v61 = vld [vmem:[#allocation2 + $0x48] sm:$0x3] }
  0xcd   : > { %1088 = vmatprep.subr.bf16.mxu1 %v6969_v22  ;;  %548 = vst [vmem:[#allocation2 + $0x90] sm:$0xfe] %v529_v54  ;;  %550 = vst [vmem:[#allocation2 + $0x98] sm:$0x1] %v529_v54  ;;  %v1133_v62 = vrot.slane %v561_v59, 2  ;;  %v639_v4 = vrot.slane %v8459_v57, 1 }
  0xce   : > { %v7013_v63 = vld [vmem:[#allocation6 + $0x1b0] ss:$8 sps:$4 sm:$0xff]   ;;  %543 = vst [vmem:[#allocation2 + $0x60] sm:$0xfe] %v526_v58  ;;  %545 = vst [vmem:[#allocation2 + $0x40] sm:$0x1] %v526_v58 }
  0xcf   : > { %876 = vmatpush1.bf16.msra.mxu0 %v6971_v23  ;;  %v7014_v0 = vld [vmem:[#allocation6 + $0xb0] ss:$8 sps:$4 sm:$0xff]   ;;  %v7015_v1 = vld [vmem:[#allocation6 + $0x1a4] ss:$8 sps:$4 sm:$0xff]   ;;  %v8465_v2 = vsel %vm1131_vm0, %v1132_v60, %v1133_v62  ;;  %v640_v5 = vrot.slane %v8462_v61, 1  ;;  %v636_v21 = vrot.slane %v8457_v56, 1 }
  0xd0   : > { %1089 = vmatpush1.bf16.msra.mxu1 %v6972_v24  ;;  %877 = vmatprep.subr.bf16.mxu0 %v6973_v25  ;;  %v7017_v3 = vld [vmem:[#allocation6 + $0xa4] ss:$8 sps:$4 sm:$0xff]   ;;  %v7019_v6 = vld [vmem:[#allocation6 + $0x1a0] ss:$8 sps:$4 sm:$0xff]   ;;  %v7021_v8 = vld [vmem:[#allocation6 + $0x194] ss:$8 sps:$4 sm:$0xff]  }
  0xd1   : > { %1090 = vmatprep.subr.bf16.mxu1 %v6975_v26  ;;  %v7020_v7 = vld [vmem:[#allocation6 + $0xa0] ss:$8 sps:$4 sm:$0xff]   ;;  %v7023_v11 = vld [vmem:[#allocation6 + $0x94] ss:$8 sps:$4 sm:$0xff]   ;;  %v641_v12 = vsel %vm635_vm1, %v639_v4, %v640_v5  ;;  %v7025_v18 = vld [vmem:[#allocation6 + $0x190] ss:$8 sps:$4 sm:$0xff]  }
  0xd2   : > { %v7026_v19 = vld [vmem:[#allocation6 + $0x90] ss:$8 sps:$4 sm:$0xff]   ;;  %v7027_v22 = vld [vmem:[#allocation6 + $0x184] ss:$8 sps:$4 sm:$0xff]   ;;  %v637_v24 = vrot.slane %v561_v59, 1  ;;  %s6066_s20 = sshll.u32 %s8450_s12, 4  ;;  %s9304_s20 = int_to_ptr.vmem [resolvable:$true] %s6066_s20 }
  0xd3   : > { %878 = vmatpush1.bf16.msra.mxu0 %v6977_v27  ;;  %v8469_v9 = vld [vmem:[#allocation2 + $0x28] sm:$0xff]  ;;  %v8471_v10 = vld [vmem:[#allocation2 + $0x78] sm:$0x3]  ;;  %v7062_v51 = vld [vmem:[#allocation6 + $0x334] ss:$8 sps:$4 sm:$0xff]   ;;  %s6053_s18 = scalar_lea.sflag [#allocation5], %s8424_s1 }
  0xd4   : > { %1091 = vmatpush1.bf16.msra.mxu1 %v6978_v28  ;;  %879 = vmatprep.subr.bf16.mxu0 %v6979_v29  ;;  %v645_v13 = vrot.slane %v8469_v9, 1  ;;  %v646_v14 = vrot.slane %v8471_v10, 1  ;;  %v584_v15 = vpack.c.bf16 %v8469_v9, %v8459_v57  ;;  %v7029_v27 = vld [vmem:[#allocation6 + $0x84] ss:$8 sps:$4 sm:$0xff]   ;;  %v7031_v28 = vld [vmem:[#allocation6 + $0x180] ss:$8 sps:$4 sm:$0xff]  }
  0xd5   : > { %1092 = vmatprep.subr.bf16.mxu1 %v6981_v30  ;;  %v8478_v16 = vld [vmem:[#allocation2 + $0x60] sm:$0xff]  ;;  %v638_v30 = vsel %vm635_vm1, %v636_v21, %v637_v24  ;;  %v7057_v52 = vld [vmem:[#allocation6 + $0x230] ss:$8 sps:$4 sm:$0xff]   ;;  %v7071_v5 = vld [vmem:[#allocation6 + $0x214] ss:$8 sps:$4 sm:$0xff]   ;;  %v1135_v21 = vrot.slane %v8459_v57, 2 }
  0xd6   : > { %v8480_v17 = vld [vmem:[#allocation2 + $0x40] sm:$0x3]  ;;  %v8483_v20 = vsel %vm635_vm1, %v645_v13, %v646_v14  ;;  %1110 = vmatprep.mubr.bf16.mxu1 %v584_v15  ;;  %v642_v25 = vrot.slane %v8478_v16, 1  ;;  %v7065_v54 = vld [vmem:[#allocation6 + $0x224] ss:$8 sps:$4 sm:$0xff]   ;;  %v8497_v58 = vld [vmem:[#allocation2 + $0x90] sm:$0xff] }
  0xd7   : > { %880 = vmatpush1.bf16.msra.mxu0 %v6983_v31  ;;  %v669_v23 = vpack.c.bf16 %v8483_v20, %v641_v12  ;;  %v643_v26 = vrot.slane %v8480_v17, 1  ;;  %v7032_v29 = vld [vmem:[#allocation6 + $0x80] ss:$8 sps:$4 sm:$0xff]   ;;  %v7068_v55 = vld [vmem:[#allocation6 + $0x324] ss:$8 sps:$4 sm:$0xff]   ;;  %v1136_v14 = vrot.slane %v8462_v61, 2 }
  0xd8   : > { %1093 = vmatpush1.bf16.msra.mxu1 %v6984_v32  ;;  %881 = vmatprep.subr.bf16.mxu0 %v6985_v33  ;;  %v7035_v32 = vld [vmem:[#allocation6 + $0x274] ss:$8 sps:$4 sm:$0xff]   ;;  %v7051_v48 = vld [vmem:[#allocation6 + $0x240] ss:$8 sps:$4 sm:$0xff]   ;;  %v8499_v62 = vld [vmem:[#allocation2 + $0x98] sm:$0x3] }
  0xd9   : > { %1094 = vmatprep.subr.bf16.mxu1 %v6987_v34  ;;  %897 = vmatprep.mubr.bf16.mxu0 %v669_v23  ;;  %v8491_v31 = vsel %vm635_vm1, %v642_v25, %v643_v26  ;;  %v7038_v33 = vld [vmem:[#allocation6 + $0x374] ss:$8 sps:$4 sm:$0xff]   ;;  %v7063_v59 = vld [vmem:[#allocation6 + $0x220] ss:$8 sps:$4 sm:$0xff]   ;;  %v7072_v12 = vld [vmem:[#allocation6 + $0x310] ss:$8 sps:$4 sm:$0xff]  }
  0xda   : > { %v668_v34 = vpack.c.bf16 %v8491_v31, %v638_v30  ;;  %v7077_v13 = vld [vmem:[#allocation6 + $0x204] ss:$8 sps:$4 sm:$0xff]   ;;  %v7083_v23 = vld [vmem:[#allocation6 + $0x2f4] ss:$8 sps:$4 sm:$0xff]   ;;  %v1142_v26 = vrot.slane %v8471_v10, 2  ;;  %s8096_s16 = scalar_lea.vmem %s9304_s20, 1024 }
  0xdb   : > { %882 = vmatpush2.bf16.msra.mxu0 %v6989_v35  ;;  %v583_v35 = vpack.c.bf16 %v8478_v16, %v8457_v56  ;;  %v451_v56 = vld [vmem:[%s8428_s10 + $0x28] sm:$0xff]  ;;  %v7086_v61 = vld [vmem:[#allocation6 + $0x3f4] ss:$8 sps:$4 sm:$0xff]   ;;  %p8097_p6 = scmp.ne.s32.totalorder %s9304_s20, %s8096_s16  ;;  %p9423_p12 = scmp.ne.s32.totalorder %s9385_s21, 0 }
  0xdc   : > { %1095 = vmatpush2.bf16.msra.mxu1 %v6990_v36  ;;  %883 = vmatprep.subr.bf16.mxu0 %v6991_v37  ;;  %v7033_v36 = vld [vmem:[#allocation6 + $0x270] ss:$8 sps:$4 sm:$0xff]   ;;  %v531_v60 = vrot.slane %v451_v56, 7  ;;  %v7080_v15 = vld [vmem:[#allocation6 + $0x304] ss:$8 sps:$4 sm:$0xff]   ;;  %s8191_s14 = smov [#allocation17]  }
  0xdd   : > { %1096 = vmatprep.subr.bf16.mxu1 %v6993_v38  ;;  %v7036_v37 = vld [vmem:[#allocation6 + $0x370] ss:$8 sps:$4 sm:$0xff]   ;;  %v7041_v38 = vld [vmem:[#allocation6 + $0x264] ss:$8 sps:$4 sm:$0xff]   ;;  %p8098_p3 = pnand %p8097_p6, %p9423_p12  ;;  %s8100_s17 = sshll.u32 %s8191_s14, 4  ;;  %s8101_s17 = int_to_ptr.vmem [resolvable:$false] %s8100_s17 }
  0xde   : > { %552 = vst [vmem:[#allocation2 + $0x50] sm:$0xfe] %v531_v60  ;;  %554 = vst [vmem:[#allocation2 + $0xa0] sm:$0x1] %v531_v60  ;;  %v453_v56 = vld [vmem:[%s8428_s10 + $0x38] sm:$0xff]  ;;  %v452_v60 = vld [vmem:[%s8428_s10 + $0x30] sm:$0xff]  ;;  %p8103_p2 = scmp.lt.s32.totalorder %s9304_s20, %s8101_s17 }
  0xdf   : > { %884 = vmatpush2.bf16.msra.mxu0 %v6995_v39  ;;  %v7044_v39 = vld [vmem:[#allocation6 + $0x364] ss:$8 sps:$4 sm:$0xff]   ;;  %p8099_p1 = pneg %p8098_p3  ;;  %s8102_s26 = scalar_lea.vmem %s8101_s17, 2048 }
  0xe0   : > { %1097 = vmatpush2.bf16.msra.mxu1 %v6996_v40  ;;  %885 = vmatprep.subr.bf16.mxu0 %v6997_v41  ;;  %v7039_v40 = vld [vmem:[#allocation6 + $0x260] ss:$8 sps:$4 sm:$0xff]   ;;  %p8104_p7 = scmp.lt.s32.totalorder %s8102_s26, %s8096_s16 }
  0xe1   : > { %1098 = vmatprep.subr.bf16.mxu1 %v6999_v42  ;;  %v7042_v41 = vld [vmem:[#allocation6 + $0x360] ss:$8 sps:$4 sm:$0xff]   ;;  %v7047_v42 = vld [vmem:[#allocation6 + $0x254] ss:$8 sps:$4 sm:$0xff]  }
  0xe2   : > { %p8105_p9 = por %p8104_p7, %p8103_p2 }
  0xe3   : > { %886 = vmatpush2.bf16.msra.mxu0 %v7001_v43  ;;  %v7050_v43 = vld [vmem:[#allocation6 + $0x354] ss:$8 sps:$4 sm:$0xff]  }
  0xe4   : > { %1099 = vmatpush2.bf16.msra.mxu1 %v7002_v44  ;;  %887 = vmatprep.subr.bf16.mxu0 %v7003_v45  ;;  %v7045_v44 = vld [vmem:[#allocation6 + $0x250] ss:$8 sps:$4 sm:$0xff]   ;;  %p8106_p11 = pnand %p8105_p9, %p8099_p1 }
  0xe5   : > { %1100 = vmatprep.subr.bf16.mxu1 %v7005_v46  ;;  %v7048_v45 = vld [vmem:[#allocation6 + $0x350] ss:$8 sps:$4 sm:$0xff]   ;;  %v7053_v46 = vld [vmem:[#allocation6 + $0x244] ss:$8 sps:$4 sm:$0xff]   ;;  %v8510_v25 = vld [vmem:[#allocation2 + $0xa0] sm:$0x3] }
  0xe6   : > { %v8508_v24 = vld [vmem:[#allocation2 + $0x50] sm:$0xff] }
  0xe7   : > { %888 = vmatpush2.bf16.msra.mxu0 %v7007_v47  ;;  %v7056_v47 = vld [vmem:[#allocation6 + $0x344] ss:$8 sps:$4 sm:$0xff]   ;;  %v8520_v57 = vpack.c.bf16 %v8508_v24, %v8497_v58 }
  0xe8   : > { %1101 = vmatpush2.bf16.msra.mxu1 %v7008_v49  ;;  %889 = vmatprep.subr.bf16.mxu0 %v7009_v50  ;;  %v7054_v49 = vld [vmem:[#allocation6 + $0x340] ss:$8 sps:$4 sm:$0xff]   ;;  %v7059_v50 = vld [vmem:[#allocation6 + $0x234] ss:$8 sps:$4 sm:$0xff]  }
  0xe9   : > { %1102 = vmatprep.subr.bf16.mxu1 %v7011_v53  ;;  %v7060_v53 = vld [vmem:[#allocation6 + $0x330] ss:$8 sps:$4 sm:$0xff]  }
  0xeb   : > { %890 = vmatpush2.bf16.msra.mxu0 %v7013_v63  ;;  %v448_v63 = vld [vmem:[%s8428_s10 + $0x10] sm:$0xff] }
  0xec   : > { %1103 = vmatpush2.bf16.msra.mxu1 %v7014_v0  ;;  %891 = vmatprep.subr.bf16.mxu0 %v7015_v1  ;;  %v450_v0 = vld [vmem:[%s8428_s10 + $0x20] sm:$0xff] }
  0xed   : > { %1104 = vmatprep.subr.bf16.mxu1 %v7017_v3  ;;  %v7066_v1 = vld [vmem:[#allocation6 + $0x320] ss:$8 sps:$4 sm:$0xff]   ;;  %v528_v3 = vrot.slane %v448_v63, 7  ;;  %v530_v4 = vrot.slane %v450_v0, 7  ;;  %v532_v63 = vrot.slane %v452_v60, 7 }
  0xee   : > { %v7093_v0 = vld [vmem:[#allocation6 + $0x2d0] ss:$8 sps:$4 sm:$0xff]  }
  0xef   : > { %892 = vmatpush2.bf16.msra.mxu0 %v7019_v6  ;;  %v7074_v6 = vld [vmem:[#allocation6 + $0x314] ss:$8 sps:$4 sm:$0xff]   ;;  %547 = vst [vmem:[#allocation2 + $0x88] sm:$0xfe] %v528_v3  ;;  %549 = vst [vmem:[#allocation2 + $0x18] sm:$0x1] %v528_v3 }
  0xf0   : > { %1105 = vmatpush2.bf16.msra.mxu1 %v7020_v7  ;;  %893 = vmatprep.subr.bf16.mxu0 %v7021_v8  ;;  %551 = vst [vmem:[#allocation2 + $0x38] sm:$0xfe] %v530_v4  ;;  %553 = vst [vmem:[#allocation2 + $0x70] sm:$0x1] %v530_v4  ;;  %v651_v7 = vrot.slane %v8497_v58, 1 }
  0xf1   : > { %1106 = vmatprep.subr.bf16.mxu1 %v7023_v11  ;;  %v7069_v8 = vld [vmem:[#allocation6 + $0x210] ss:$8 sps:$4 sm:$0xff]   ;;  %v652_v11 = vrot.slane %v8499_v62, 1  ;;  %v7101_v3 = vld [vmem:[#allocation6 + $0x2c4] ss:$8 sps:$4 sm:$0xff]  }
  0xf2   : > { %555 = vst [vmem:[#allocation2 + $0xa8] sm:$0xfe] %v532_v63  ;;  %557 = vst [vmem:[#allocation2 + $0x30] sm:$0x1] %v532_v63  ;;  %v7104_v4 = vld [vmem:[#allocation6 + $0x3c4] ss:$8 sps:$4 sm:$0xff]  }
  0xf3   : > { %894 = vmatpush2.bf16.msra.mxu0 %v7025_v18  ;;  %v7075_v18 = vld [vmem:[#allocation6 + $0x200] ss:$8 sps:$4 sm:$0xff]  }
  0xf4   : > { %1107 = vmatpush2.bf16.msra.mxu1 %v7026_v19  ;;  %895 = vmatprep.subr.bf16.mxu0 %v7027_v22  ;;  %v7078_v19 = vld [vmem:[#allocation6 + $0x300] ss:$8 sps:$4 sm:$0xff]   ;;  %v1141_v22 = vrot.slane %v8469_v9, 2 }
  0xf5   : > { %1108 = vmatprep.subr.bf16.mxu1 %v7029_v27  ;;  %v8514_v27 = vsel %vm635_vm1, %v651_v7, %v652_v11  ;;  %v7107_v7 = vld [vmem:[#allocation6 + $0x2b4] ss:$8 sps:$4 sm:$0xff]   ;;  %v7105_v11 = vld [vmem:[#allocation6 + $0x2b0] ss:$8 sps:$4 sm:$0xff]   ;;  %v7135_v63 = vld [vmem:[#allocation6 + $0x460] ss:$8 sps:$4 sm:$0xff]  }
  0xf6   : > { %v8522_v30 = vld [vmem:[#allocation2 + $0x88] sm:$0xff] }
  0xf7   : > { %896 = vmatpush2.bf16.msra.mxu0 %v7031_v28  ;;  %v657_v28 = vrot.slane %v8508_v24, 1  ;;  %v8526_v10 = vld [vmem:[#allocation2 + $0x38] sm:$0xff] }
  0xf8   : > { %1109 = vmatpush2.bf16.msra.mxu1 %v7032_v29  ;;  %1361 = vmatprep.subr.bf16.mxu0 %v7035_v32  ;;  %v658_v29 = vrot.slane %v8510_v25, 1  ;;  %v8524_v32 = vld [vmem:[#allocation2 + $0x18] sm:$0x3] }
  0xf9   : > { %1619 = vmatprep.subr.bf16.mxu1 %v7038_v33 }
  0xfa   : > { %898 = vmatmul.mubr.bf16.vlgmr.msra.gmra.mxu0 %v668_v34  ;;  %v8529_v33 = vsel %vm635_vm1, %v657_v28, %v658_v29  ;;  %v8532_v34 = vld [vmem:[#allocation2 + $0x70] sm:$0x3]  ;;  %v7125_v28 = vld [vmem:[#allocation6 + $0x284] ss:$8 sps:$4 sm:$0xff]  }
  0xfb   : > { %1111 = vmatmul.mubr.bf16.vlgmr.msra.gmra.mxu1 %v583_v35  ;;  %1362 = vmatpush1.bf16.msra.mxu0 %v7033_v36  ;;  %v648_v35 = vrot.slane %v8522_v30, 1  ;;  %v649_v36 = vrot.slane %v8524_v32, 1  ;;  %v7128_v29 = vld [vmem:[#allocation6 + $0x384] ss:$8 sps:$4 sm:$0xff]  }
  0xfc   : > { %1620 = vmatpush1.bf16.msra.mxu1 %v7036_v37  ;;  %1363 = vmatprep.subr.bf16.mxu0 %v7041_v38  ;;  %v654_v37 = vrot.slane %v8526_v10, 1  ;;  %v8539_v38 = vpack.c.bf16 %v8529_v33, %v8514_v27 }
  0xfd   : > { %1621 = vmatprep.subr.bf16.mxu1 %v7044_v39  ;;  %1120 = vmatprep.mubr.bf16.mxu1 %v8520_v57  ;;  %v655_v39 = vrot.slane %v8532_v34, 1 }
  0xfe   : > { %907 = vmatprep.mubr.bf16.mxu0 %v8539_v38 }
  0xff   : > { %1364 = vmatpush1.bf16.msra.mxu0 %v7039_v40  ;;  %v8544_v40 = vpack.c.bf16 %v8526_v10, %v8522_v30 }
 0x100   : > { %1622 = vmatpush1.bf16.msra.mxu1 %v7042_v41  ;;  %1365 = vmatprep.subr.bf16.mxu0 %v7047_v42  ;;  %v1423_v41 = vpack.c.bf16 %v8497_v58, %v8469_v9  ;;  %v7081_v42 = vld [vmem:[#allocation6 + $0x2f0] ss:$8 sps:$4 sm:$0xff]  }
 0x101   : > { %1623 = vmatprep.subr.bf16.mxu1 %v7050_v43  ;;  %v7084_v43 = vld [vmem:[#allocation6 + $0x3f0] ss:$8 sps:$4 sm:$0xff]  }
 0x103   : > { %1366 = vmatpush1.bf16.msra.mxu0 %v7045_v44  ;;  %v8549_v44 = vsel %vm635_vm1, %v648_v35, %v649_v36  ;;  %1121 = vmatmul.mubr.bf16.gmra.mxu1 %v8544_v40  ;;  %v1147_v35 = vrot.slane %v8497_v58, 2  ;;  %v1148_v36 = vrot.slane %v8499_v62, 2  ;;  %v1422_v62 = vpack.c.bf16 %v8522_v30, %v8478_v16 }
 0x104   : > { %1624 = vmatpush1.bf16.msra.mxu1 %v7048_v45  ;;  %1367 = vmatprep.subr.bf16.mxu0 %v7053_v46  ;;  %v1137_v45 = vsel %vm1131_vm0, %v1135_v21, %v1136_v14  ;;  %v8553_v46 = vsel %vm1131_vm0, %v1141_v22, %v1142_v26  ;;  %v1692_v9 = vpack.c.bf16 %v8549_v44, %v8491_v31  ;;  %v7116_v14 = vld [vmem:[#allocation6 + $0x3a4] ss:$8 sps:$4 sm:$0xff]   ;;  %v7122_v21 = vld [vmem:[#allocation6 + $0x394] ss:$8 sps:$4 sm:$0xff]   ;;  %v1139_v22 = vrot.slane %v8480_v17, 2 }
 0x105   : > { %1625 = vmatprep.subr.bf16.mxu1 %v7056_v47  ;;  %v7089_v47 = vld [vmem:[#allocation6 + $0x2e4] ss:$8 sps:$4 sm:$0xff]   ;;  %1651 = vmatprep.mubr.bf16.mxu1 %v1423_v41  ;;  %v7120_v26 = vld [vmem:[#allocation6 + $0x390] ss:$8 sps:$4 sm:$0xff]   ;;  %v7123_v17 = vld [vmem:[#allocation6 + $0x280] ss:$8 sps:$4 sm:$0xff]  }
 0x106   : > { %v7126_v41 = vld [vmem:[#allocation6 + $0x380] ss:$8 sps:$4 sm:$0xff]  }
 0x107   : > { %1368 = vmatpush1.bf16.msra.mxu0 %v7051_v48  ;;  %v7092_v48 = vld [vmem:[#allocation6 + $0x3e4] ss:$8 sps:$4 sm:$0xff]  }
 0x108   : > { %1626 = vmatpush1.bf16.msra.mxu1 %v7054_v49  ;;  %1369 = vmatprep.subr.bf16.mxu0 %v7059_v50  ;;  %v8556_v49 = vsel %vm635_vm1, %v654_v37, %v655_v39  ;;  %v7087_v50 = vld [vmem:[#allocation6 + $0x2e0] ss:$8 sps:$4 sm:$0xff]   ;;  %v1153_v37 = vrot.slane %v8508_v24, 2  ;;  %v1154_v39 = vrot.slane %v8510_v25, 2  ;;  %v1149_v25 = vsel %vm1131_vm0, %v1147_v35, %v1148_v36 }
 0x109   : > { %1627 = vmatprep.subr.bf16.mxu1 %v7062_v51  ;;  %v8563_v51 = vpack.c.bf16 %v8556_v49, %v8549_v44  ;;  %v7171_v35 = vld [vmem:[#allocation6 + $0x400] ss:$8 sps:$4 sm:$0xff]  }
 0x10a   : > { %v7174_v36 = vld [vmem:[#allocation6 + $0x500] ss:$8 sps:$4 sm:$0xff]  }
 0x10b   : > { %1370 = vmatpush1.bf16.msra.mxu0 %v7057_v52  ;;  %v7090_v52 = vld [vmem:[#allocation6 + $0x3e0] ss:$8 sps:$4 sm:$0xff]  }
 0x10c   : > { %1628 = vmatpush1.bf16.msra.mxu1 %v7060_v53  ;;  %1371 = vmatprep.subr.bf16.mxu0 %v7065_v54  ;;  %v1165_v53 = vpack.c.bf16 %v8553_v46, %v1137_v45  ;;  %v7095_v54 = vld [vmem:[#allocation6 + $0x2d4] ss:$8 sps:$4 sm:$0xff]  }
 0x10d   : > { %1629 = vmatprep.subr.bf16.mxu1 %v7068_v55  ;;  %v7098_v55 = vld [vmem:[#allocation6 + $0x3d4] ss:$8 sps:$4 sm:$0xff]   ;;  %908 = vmatmul.mubr.bf16.gmra.mxu0 %v8563_v51 }
 0x10e   : > { %1393 = vmatprep.mubr.bf16.mxu0 %v1165_v53  ;;  %v7134_v45 = vld [vmem:[#allocation6 + $0x574] ss:$8 sps:$4 sm:$0xff]   ;;  %v1144_v53 = vrot.slane %v8522_v30, 2  ;;  %v7138_v30 = vld [vmem:[#allocation6 + $0x560] ss:$8 sps:$4 sm:$0xff]  }
 0x10f   : > { %1372 = vmatpush1.bf16.msra.mxu0 %v7063_v59  ;;  %v533_v59 = vrot.slane %v453_v56, 7  ;;  %v7140_v56 = vld [vmem:[#allocation6 + $0x564] ss:$8 sps:$4 sm:$0xff]  }
 0x110   : > { %1630 = vmatpush1.bf16.msra.mxu1 %v7066_v1  ;;  %1373 = vmatprep.subr.bf16.mxu0 %v7071_v5  ;;  %v7096_v1 = vld [vmem:[#allocation6 + $0x3d0] ss:$8 sps:$4 sm:$0xff]   ;;  %v7099_v5 = vld [vmem:[#allocation6 + $0x2c0] ss:$8 sps:$4 sm:$0xff]  }
 0x111   : > { %1631 = vmatprep.subr.bf16.mxu1 %v7074_v6  ;;  %556 = vst [vmem:[#allocation2 + $0x68] sm:$0xfe] %v533_v59  ;;  %558 = vst [vmem:[#allocation2 + $0x58] sm:$0x1] %v533_v59  ;;  %v7102_v6 = vld [vmem:[#allocation6 + $0x3c0] ss:$8 sps:$4 sm:$0xff]  }
 0x113   : > { %1374 = vmatpush1.bf16.msra.mxu0 %v7069_v8  ;;  %v7110_v8 = vld [vmem:[#allocation6 + $0x3b4] ss:$8 sps:$4 sm:$0xff]  }
 0x114   : > { %1632 = vmatpush1.bf16.msra.mxu1 %v7072_v12  ;;  %1375 = vmatprep.subr.bf16.mxu0 %v7077_v13  ;;  %v7108_v12 = vld [vmem:[#allocation6 + $0x3b0] ss:$8 sps:$4 sm:$0xff]   ;;  %v7113_v13 = vld [vmem:[#allocation6 + $0x2a4] ss:$8 sps:$4 sm:$0xff]  }
 0x115   : > { %1633 = vmatprep.subr.bf16.mxu1 %v7080_v15  ;;  %v7111_v15 = vld [vmem:[#allocation6 + $0x2a0] ss:$8 sps:$4 sm:$0xff]  }
 0x117   : > { %1376 = vmatpush1.bf16.msra.mxu0 %v7075_v18  ;;  %v7114_v18 = vld [vmem:[#allocation6 + $0x3a0] ss:$8 sps:$4 sm:$0xff]  }
 0x118   : > { %1634 = vmatpush1.bf16.msra.mxu1 %v7078_v19  ;;  %1377 = vmatprep.subr.bf16.mxu0 %v7083_v23  ;;  %v7119_v19 = vld [vmem:[#allocation6 + $0x294] ss:$8 sps:$4 sm:$0xff]   ;;  %v7117_v23 = vld [vmem:[#allocation6 + $0x290] ss:$8 sps:$4 sm:$0xff]  }
 0x119   : > { %1635 = vmatprep.subr.bf16.mxu1 %v7086_v61  ;;  %v1138_v61 = vrot.slane %v8478_v16, 2  ;;  %v7137_v16 = vld [vmem:[#allocation6 + $0x464] ss:$8 sps:$4 sm:$0xff]  }
 0x11b   : > { %1378 = vmatpush2.bf16.msra.mxu0 %v7081_v42  ;;  %v8577_v42 = vsel %vm1131_vm0, %v1138_v61, %v1139_v22  ;;  %v7167_v22 = vld [vmem:[#allocation6 + $0x414] ss:$8 sps:$4 sm:$0xff]   ;;  %v7168_v61 = vld [vmem:[#allocation6 + $0x510] ss:$8 sps:$4 sm:$0xff]  }
 0x11c   : > { %1636 = vmatpush2.bf16.msra.mxu1 %v7084_v43  ;;  %1379 = vmatprep.subr.bf16.mxu0 %v7089_v47  ;;  %v7131_v43 = vld [vmem:[#allocation6 + $0x474] ss:$8 sps:$4 sm:$0xff]   ;;  %v7129_v47 = vld [vmem:[#allocation6 + $0x470] ss:$8 sps:$4 sm:$0xff]   ;;  %v1164_v58 = vpack.c.bf16 %v8577_v42, %v8465_v2  ;;  %v1151_v2 = vrot.slane %v8532_v34, 2 }
 0x11d   : > { %1637 = vmatprep.subr.bf16.mxu1 %v7092_v48  ;;  %v7132_v48 = vld [vmem:[#allocation6 + $0x570] ss:$8 sps:$4 sm:$0xff]  }
 0x11f   : > { %1380 = vmatpush2.bf16.msra.mxu0 %v7087_v50  ;;  %v8585_v50 = vsel %vm1131_vm0, %v1153_v37, %v1154_v39  ;;  %v7179_v37 = vld [vmem:[#allocation6 + $0x4f4] ss:$8 sps:$4 sm:$0xff]  }
 0x120   : > { %1638 = vmatpush2.bf16.msra.mxu1 %v7090_v52  ;;  %1381 = vmatprep.subr.bf16.mxu0 %v7095_v54  ;;  %v8587_v52 = vld [vmem:[#allocation2 + $0x68] sm:$0xff]  ;;  %v1145_v54 = vrot.slane %v8524_v32, 2  ;;  %v8594_v59 = vpack.c.bf16 %v8585_v50, %v1149_v25  ;;  %v7182_v39 = vld [vmem:[#allocation6 + $0x5f4] ss:$8 sps:$4 sm:$0xff]  }
 0x121   : > { %1639 = vmatprep.subr.bf16.mxu1 %v7098_v55  ;;  %v1150_v55 = vrot.slane %v8526_v10, 2  ;;  %v1425_v60 = vpack.c.bf16 %v8587_v52, %v8508_v24 }
 0x122   : > { %v8599_v32 = vsel %vm1131_vm0, %v1144_v53, %v1145_v54  ;;  %v7192_v53 = vld [vmem:[#allocation6 + $0x5d0] ss:$8 sps:$4 sm:$0xff]   ;;  %v7197_v54 = vld [vmem:[#allocation6 + $0x4c4] ss:$8 sps:$4 sm:$0xff]  }
 0x123   : > { %1382 = vmatpush2.bf16.msra.mxu0 %v7093_v0  ;;  %v8602_v34 = vsel %vm1131_vm0, %v1150_v55, %v1151_v2  ;;  %v8604_v0 = vld [vmem:[#allocation2 + $0xa8] sm:$0xff] }
 0x124   : > { %1640 = vmatpush2.bf16.msra.mxu1 %v7096_v1  ;;  %1383 = vmatprep.subr.bf16.mxu0 %v7101_v3  ;;  %v7143_v1 = vld [vmem:[#allocation6 + $0x454] ss:$8 sps:$4 sm:$0xff]   ;;  %v8609_v24 = vpack.c.bf16 %v8602_v34, %v8599_v32  ;;  %v7200_v55 = vld [vmem:[#allocation6 + $0x5c4] ss:$8 sps:$4 sm:$0xff]   ;;  %v7195_v2 = vld [vmem:[#allocation6 + $0x4c0] ss:$8 sps:$4 sm:$0xff]  }
 0x125   : > { %1641 = vmatprep.subr.bf16.mxu1 %v7104_v4  ;;  %v7146_v3 = vld [vmem:[#allocation6 + $0x554] ss:$8 sps:$4 sm:$0xff]   ;;  %v1424_v4 = vpack.c.bf16 %v8604_v0, %v8526_v10  ;;  %v7150_v10 = vld [vmem:[#allocation6 + $0x540] ss:$8 sps:$4 sm:$0xff]  }
 0x127   : > { %1384 = vmatpush2.bf16.msra.mxu0 %v7099_v5  ;;  %v7141_v5 = vld [vmem:[#allocation6 + $0x450] ss:$8 sps:$4 sm:$0xff]  }
 0x128   : > { %1642 = vmatpush2.bf16.msra.mxu1 %v7102_v6  ;;  %1385 = vmatprep.subr.bf16.mxu0 %v7107_v7  ;;  %v7144_v6 = vld [vmem:[#allocation6 + $0x550] ss:$8 sps:$4 sm:$0xff]   ;;  %v7149_v7 = vld [vmem:[#allocation6 + $0x444] ss:$8 sps:$4 sm:$0xff]  }
 0x129   : > { %1643 = vmatprep.subr.bf16.mxu1 %v7110_v8  ;;  %v7152_v8 = vld [vmem:[#allocation6 + $0x544] ss:$8 sps:$4 sm:$0xff]  }
 0x12b   : > { %1386 = vmatpush2.bf16.msra.mxu0 %v7105_v11  ;;  %v1693_v11 = vpack.c.bf16 %v8514_v27, %v8483_v20  ;;  %v7161_v20 = vld [vmem:[#allocation6 + $0x424] ss:$8 sps:$4 sm:$0xff]  }
 0x12c   : > { %1644 = vmatpush2.bf16.msra.mxu1 %v7108_v12  ;;  %1387 = vmatprep.subr.bf16.mxu0 %v7113_v13  ;;  %v1959_v12 = vpack.c.bf16 %v1149_v25, %v8553_v46  ;;  %v7147_v13 = vld [vmem:[#allocation6 + $0x440] ss:$8 sps:$4 sm:$0xff]   ;;  %v7164_v27 = vld [vmem:[#allocation6 + $0x524] ss:$8 sps:$4 sm:$0xff]   ;;  %v7189_v25 = vld [vmem:[#allocation6 + $0x4d0] ss:$8 sps:$4 sm:$0xff]  }
 0x12d   : > { %1645 = vmatprep.subr.bf16.mxu1 %v7116_v14  ;;  %v7155_v14 = vld [vmem:[#allocation6 + $0x434] ss:$8 sps:$4 sm:$0xff]   ;;  %v7159_v46 = vld [vmem:[#allocation6 + $0x420] ss:$8 sps:$4 sm:$0xff]  }
 0x12f   : > { %1388 = vmatpush2.bf16.msra.mxu0 %v7111_v15  ;;  %v7158_v15 = vld [vmem:[#allocation6 + $0x534] ss:$8 sps:$4 sm:$0xff]  }
 0x130   : > { %1646 = vmatpush2.bf16.msra.mxu1 %v7114_v18  ;;  %1389 = vmatprep.subr.bf16.mxu0 %v7119_v19  ;;  %v7153_v18 = vld [vmem:[#allocation6 + $0x430] ss:$8 sps:$4 sm:$0xff]  }
 0x131   : > { %1647 = vmatprep.subr.bf16.mxu1 %v7122_v21  ;;  %v7156_v19 = vld [vmem:[#allocation6 + $0x530] ss:$8 sps:$4 sm:$0xff]   ;;  %v7162_v21 = vld [vmem:[#allocation6 + $0x520] ss:$8 sps:$4 sm:$0xff]  }
 0x133   : > { %1390 = vmatpush2.bf16.msra.mxu0 %v7117_v23  ;;  %v7170_v23 = vld [vmem:[#allocation6 + $0x514] ss:$8 sps:$4 sm:$0xff]  }
 0x134   : > { %1648 = vmatpush2.bf16.msra.mxu1 %v7120_v26  ;;  %1391 = vmatprep.subr.bf16.mxu0 %v7125_v28  ;;  %v7165_v26 = vld [vmem:[#allocation6 + $0x410] ss:$8 sps:$4 sm:$0xff]   ;;  %v7173_v28 = vld [vmem:[#allocation6 + $0x404] ss:$8 sps:$4 sm:$0xff]  }
 0x135   : > { %1649 = vmatprep.subr.bf16.mxu1 %v7128_v29  ;;  %v7176_v29 = vld [vmem:[#allocation6 + $0x504] ss:$8 sps:$4 sm:$0xff]  }
 0x137   : > { %1392 = vmatpush2.bf16.msra.mxu0 %v7123_v17  ;;  %v7177_v17 = vld [vmem:[#allocation6 + $0x4f0] ss:$8 sps:$4 sm:$0xff]  }
 0x138   : > { %1650 = vmatpush2.bf16.msra.mxu1 %v7126_v41  ;;  %1889 = vmatprep.subr.bf16.mxu0 %v7131_v43  ;;  %v7180_v41 = vld [vmem:[#allocation6 + $0x5f0] ss:$8 sps:$4 sm:$0xff]   ;;  %v7185_v43 = vld [vmem:[#allocation6 + $0x4e4] ss:$8 sps:$4 sm:$0xff]  }
 0x139   : > { %2155 = vmatprep.subr.bf16.mxu1 %v7134_v45  ;;  %v7188_v45 = vld [vmem:[#allocation6 + $0x5e4] ss:$8 sps:$4 sm:$0xff]  }
 0x13a   : > { %1394 = vmatmul.mubr.bf16.vlgmr.msra.gmra.mxu0 %v1164_v58  ;;  %v7191_v58 = vld [vmem:[#allocation6 + $0x4d4] ss:$8 sps:$4 sm:$0xff]  }
 0x13b   : > { %1652 = vmatmul.mubr.bf16.vlgmr.msra.gmra.mxu1 %v1422_v62  ;;  %1890 = vmatpush1.bf16.msra.mxu0 %v7129_v47  ;;  %v7183_v47 = vld [vmem:[#allocation6 + $0x4e0] ss:$8 sps:$4 sm:$0xff]   ;;  %v7194_v62 = vld [vmem:[#allocation6 + $0x5d4] ss:$8 sps:$4 sm:$0xff]  }
 0x13c   : > { %2156 = vmatpush1.bf16.msra.mxu1 %v7132_v48  ;;  %1891 = vmatprep.subr.bf16.mxu0 %v7137_v16  ;;  %v7186_v48 = vld [vmem:[#allocation6 + $0x5e0] ss:$8 sps:$4 sm:$0xff]  }
 0x13d   : > { %2157 = vmatprep.subr.bf16.mxu1 %v7140_v56  ;;  %1403 = vmatprep.mubr.bf16.mxu0 %v8594_v59  ;;  %v7198_v16 = vld [vmem:[#allocation6 + $0x5c0] ss:$8 sps:$4 sm:$0xff]   ;;  %v7203_v56 = vld [vmem:[#allocation6 + $0x4b4] ss:$8 sps:$4 sm:$0xff]  }
 0x13e   : > { %1661 = vmatprep.mubr.bf16.mxu1 %v1425_v60  ;;  %v7206_v60 = vld [vmem:[#allocation6 + $0x5b4] ss:$8 sps:$4 sm:$0xff]  }
 0x13f   : > { %1892 = vmatpush1.bf16.msra.mxu0 %v7135_v63  ;;  %v7201_v63 = vld [vmem:[#allocation6 + $0x4b0] ss:$8 sps:$4 sm:$0xff]  }
 0x140   : > { %2158 = vmatpush1.bf16.msra.mxu1 %v7138_v30  ;;  %1893 = vmatprep.subr.bf16.mxu0 %v7143_v1  ;;  %v7204_v30 = vld [vmem:[#allocation6 + $0x5b0] ss:$8 sps:$4 sm:$0xff]   ;;  %v7209_v1 = vld [vmem:[#allocation6 + $0x4a4] ss:$8 sps:$4 sm:$0xff]  }
 0x141   : > { %2159 = vmatprep.subr.bf16.mxu1 %v7146_v3  ;;  %v7212_v3 = vld [vmem:[#allocation6 + $0x5a4] ss:$8 sps:$4 sm:$0xff]  }
 0x142   : > { %1404 = vmatmul.mubr.bf16.gmra.mxu0 %v8609_v24 }
 0x143   : > { %1662 = vmatmul.mubr.bf16.gmra.mxu1 %v1424_v4  ;;  %1894 = vmatpush1.bf16.msra.mxu0 %v7141_v5  ;;  %v7207_v4 = vld [vmem:[#allocation6 + $0x4a0] ss:$8 sps:$4 sm:$0xff]  }
 0x144   : > { %2160 = vmatpush1.bf16.msra.mxu1 %v7144_v6  ;;  %1895 = vmatprep.subr.bf16.mxu0 %v7149_v7  ;;  %v7210_v5 = vld [vmem:[#allocation6 + $0x5a0] ss:$8 sps:$4 sm:$0xff]   ;;  %v7215_v6 = vld [vmem:[#allocation6 + $0x494] ss:$8 sps:$4 sm:$0xff]  }
 0x145   : > { %2161 = vmatprep.subr.bf16.mxu1 %v7152_v8  ;;  %1921 = vmatprep.mubr.bf16.mxu0 %v1693_v11  ;;  %v7218_v7 = vld [vmem:[#allocation6 + $0x594] ss:$8 sps:$4 sm:$0xff]   ;;  %v7213_v8 = vld [vmem:[#allocation6 + $0x490] ss:$8 sps:$4 sm:$0xff]  }
 0x146   : > { %2187 = vmatprep.mubr.bf16.mxu1 %v1959_v12  ;;  %v7216_v11 = vld [vmem:[#allocation6 + $0x590] ss:$8 sps:$4 sm:$0xff]   ;;  %v7221_v12 = vld [vmem:[#allocation6 + $0x484] ss:$8 sps:$4 sm:$0xff]  }
 0x147   : > { %1896 = vmatpush1.bf16.msra.mxu0 %v7147_v13  ;;  %v578_v13 = vld [vmem:[#allocation2 + $0x58] sm:$0x3] }
 0x148   : > { %2162 = vmatpush1.bf16.msra.mxu1 %v7150_v10  ;;  %1897 = vmatprep.subr.bf16.mxu0 %v7155_v14  ;;  %v7224_v10 = vld [vmem:[#allocation6 + $0x584] ss:$8 sps:$4 sm:$0xff]   ;;  %v7219_v14 = vld [vmem:[#allocation6 + $0x480] ss:$8 sps:$4 sm:$0xff]  }
 0x149   : > { %2163 = vmatprep.subr.bf16.mxu1 %v7158_v15  ;;  %v1687_v15 = vrot.slane %v8587_v52, 1 }
 0x14b   : > { %1898 = vmatpush1.bf16.msra.mxu0 %v7153_v18  ;;  %v7222_v18 = vld [vmem:[#allocation6 + $0x580] ss:$8 sps:$4 sm:$0xff]  }
 0x14c   : > { %2164 = vmatpush1.bf16.msra.mxu1 %v7156_v19  ;;  %1899 = vmatprep.subr.bf16.mxu0 %v7161_v20  ;;  %v1688_v19 = vrot.slane %v578_v13, 1  ;;  %v1953_v20 = vrot.slane %v8587_v52, 2  ;;  %v1950_v52 = vrot.slane %v8604_v0, 2 }
 0x14d   : > { %2165 = vmatprep.subr.bf16.mxu1 %v7164_v27  ;;  %v1954_v27 = vrot.slane %v578_v13, 2  ;;  %v7275_v13 = vld [vmem:[#allocation6 + $0x6f4] ss:$8 sps:$4 sm:$0xff]  }
 0x14f   : > { %1900 = vmatpush1.bf16.msra.mxu0 %v7159_v46  ;;  %v7227_v46 = vld [vmem:[#allocation6 + $0x674] ss:$8 sps:$4 sm:$0xff]  }
 0x150   : > { %2166 = vmatpush1.bf16.msra.mxu1 %v7162_v21  ;;  %1901 = vmatprep.subr.bf16.mxu0 %v7167_v22  ;;  %v7230_v21 = vld [vmem:[#allocation6 + $0x774] ss:$8 sps:$4 sm:$0xff]   ;;  %v577_v22 = vld [vmem:[#allocation2 + $0x30] sm:$0x3] }
 0x151   : > { %2167 = vmatprep.subr.bf16.mxu1 %v7170_v23  ;;  %v1958_v23 = vpack.c.bf16 %v8599_v32, %v8577_v42  ;;  %v7236_v42 = vld [vmem:[#allocation6 + $0x764] ss:$8 sps:$4 sm:$0xff]   ;;  %v7231_v32 = vld [vmem:[#allocation6 + $0x660] ss:$8 sps:$4 sm:$0xff]  }
 0x153   : > { %1902 = vmatpush1.bf16.msra.mxu0 %v7165_v26  ;;  %v7225_v26 = vld [vmem:[#allocation6 + $0x670] ss:$8 sps:$4 sm:$0xff]  }
 0x154   : > { %2168 = vmatpush1.bf16.msra.mxu1 %v7168_v61  ;;  %1903 = vmatprep.subr.bf16.mxu0 %v7173_v28  ;;  %v8622_v61 = vsel %vm635_vm1, %v1687_v15, %v1688_v19  ;;  %v1684_v28 = vrot.slane %v8604_v0, 1  ;;  %v8636_v0 = vld [vmem:[#allocation2 + $0x80] sm:$0xff]  ;;  %v7276_v15 = vld [vmem:[#allocation6 + $0x7f0] ss:$8 sps:$4 sm:$0xff]  }
 0x155   : > { %2169 = vmatprep.subr.bf16.mxu1 %v7176_v29  ;;  %v8626_v29 = vsel %vm1131_vm0, %v1953_v20, %v1954_v27  ;;  %v7284_v19 = vld [vmem:[#allocation6 + $0x7e4] ss:$8 sps:$4 sm:$0xff]   ;;  %v7279_v20 = vld [vmem:[#allocation6 + $0x6e0] ss:$8 sps:$4 sm:$0xff]  }
 0x156   : > { %v7282_v27 = vld [vmem:[#allocation6 + $0x7e0] ss:$8 sps:$4 sm:$0xff]  }
 0x157   : > { %1904 = vmatpush1.bf16.msra.mxu0 %v7171_v35  ;;  %v7228_v35 = vld [vmem:[#allocation6 + $0x770] ss:$8 sps:$4 sm:$0xff]  }
 0x158   : > { %2170 = vmatpush1.bf16.msra.mxu1 %v7174_v36  ;;  %1905 = vmatprep.subr.bf16.mxu0 %v7179_v37  ;;  %v1685_v36 = vrot.slane %v577_v22, 1  ;;  %v1951_v37 = vrot.slane %v577_v22, 2  ;;  %v7285_v22 = vld [vmem:[#allocation6 + $0x6d0] ss:$8 sps:$4 sm:$0xff]  }
 0x159   : > { %2171 = vmatprep.subr.bf16.mxu1 %v7182_v39  ;;  %v7233_v39 = vld [vmem:[#allocation6 + $0x664] ss:$8 sps:$4 sm:$0xff]  }
 0x15b   : > { %1906 = vmatpush2.bf16.msra.mxu0 %v7177_v17  ;;  %v7234_v17 = vld [vmem:[#allocation6 + $0x760] ss:$8 sps:$4 sm:$0xff]  }
 0x15c   : > { %2172 = vmatpush2.bf16.msra.mxu1 %v7180_v41  ;;  %1907 = vmatprep.subr.bf16.mxu0 %v7185_v43  ;;  %v1695_v41 = vpack.c.bf16 %v8622_v61, %v8529_v33  ;;  %v1961_v43 = vpack.c.bf16 %v8626_v29, %v8585_v50  ;;  %v2740_v33 = vrot.slane %v8636_v0, 2  ;;  %v7242_v50 = vld [vmem:[#allocation6 + $0x754] ss:$8 sps:$4 sm:$0xff]  }
 0x15d   : > { %2173 = vmatprep.subr.bf16.mxu1 %v7188_v45  ;;  %v8639_v45 = vsel %vm635_vm1, %v1684_v28, %v1685_v36  ;;  %v7296_v28 = vld [vmem:[#allocation6 + $0x7c4] ss:$8 sps:$4 sm:$0xff]   ;;  %v7299_v36 = vld [vmem:[#allocation6 + $0x6b4] ss:$8 sps:$4 sm:$0xff]  }
 0x15e   : > { %v1694_v44 = vpack.c.bf16 %v8639_v45, %v8556_v49  ;;  %v7251_v49 = vld [vmem:[#allocation6 + $0x634] ss:$8 sps:$4 sm:$0xff]  }
 0x15f   : > { %1908 = vmatpush2.bf16.msra.mxu0 %v7183_v47  ;;  %v7239_v47 = vld [vmem:[#allocation6 + $0x654] ss:$8 sps:$4 sm:$0xff]  }
 0x160   : > { %2174 = vmatpush2.bf16.msra.mxu1 %v7186_v48  ;;  %1909 = vmatprep.subr.bf16.mxu0 %v7191_v58  ;;  %v8642_v48 = vsel %vm1131_vm0, %v1950_v52, %v1951_v37  ;;  %v8645_v58 = vld [vmem:[#allocation2 + $0x20] sm:$0x3]  ;;  %v7302_v37 = vld [vmem:[#allocation6 + $0x7b4] ss:$8 sps:$4 sm:$0xff]  }
 0x161   : > { %2175 = vmatprep.subr.bf16.mxu1 %v7194_v62  ;;  %v2741_v31 = vrot.slane %v8645_v58, 2  ;;  %v1960_v62 = vpack.c.bf16 %v8642_v48, %v8602_v34  ;;  %v7254_v34 = vld [vmem:[#allocation6 + $0x734] ss:$8 sps:$4 sm:$0xff]   ;;  %v7291_v52 = vld [vmem:[#allocation6 + $0x6c0] ss:$8 sps:$4 sm:$0xff]  }
 0x163   : > { %1910 = vmatpush2.bf16.msra.mxu0 %v7189_v25  ;;  %v7240_v25 = vld [vmem:[#allocation6 + $0x750] ss:$8 sps:$4 sm:$0xff]  }
 0x164   : > { %2176 = vmatpush2.bf16.msra.mxu1 %v7192_v53  ;;  %1911 = vmatprep.subr.bf16.mxu0 %v7197_v54  ;;  %v8653_v53 = vsel %vm1131_vm0, %v2740_v33, %v2741_v31  ;;  %v7245_v54 = vld [vmem:[#allocation6 + $0x644] ss:$8 sps:$4 sm:$0xff]   ;;  %v7314_v33 = vld [vmem:[#allocation6 + $0x794] ss:$8 sps:$4 sm:$0xff]   ;;  %v8661_v31 = vld [vmem:[#allocation2 + $0x8] sm:$0x3] }
 0x165   : > { %2177 = vmatprep.subr.bf16.mxu1 %v7200_v55  ;;  %v7248_v55 = vld [vmem:[#allocation6 + $0x744] ss:$8 sps:$4 sm:$0xff]  }
 0x167   : > { %1912 = vmatpush2.bf16.msra.mxu0 %v7195_v2  ;;  %v2748_v2 = vpack.c.bf16 %v8653_v53, %v8642_v48  ;;  %v477_v48 = vld [vmem:[#allocation9 + $0xb8] sm:$0xff]  ;;  %v476_v53 = vld [vmem:[#allocation9 + $0xb0] sm:$0xff] }
 0x168   : > { %2178 = vmatpush2.bf16.msra.mxu1 %v7198_v16  ;;  %1913 = vmatprep.subr.bf16.mxu0 %v7203_v56  ;;  %v7243_v16 = vld [vmem:[#allocation6 + $0x640] ss:$8 sps:$4 sm:$0xff]  }
 0x169   : > { %2179 = vmatprep.subr.bf16.mxu1 %v7206_v60  ;;  %v7246_v56 = vld [vmem:[#allocation6 + $0x740] ss:$8 sps:$4 sm:$0xff]   ;;  %v7249_v60 = vld [vmem:[#allocation6 + $0x630] ss:$8 sps:$4 sm:$0xff]  }
 0x16b   : > { %1914 = vmatpush2.bf16.msra.mxu0 %v7201_v63  ;;  %v7252_v63 = vld [vmem:[#allocation6 + $0x730] ss:$8 sps:$4 sm:$0xff]  }
 0x16c   : > { %2180 = vmatpush2.bf16.msra.mxu1 %v7204_v30  ;;  %1915 = vmatprep.subr.bf16.mxu0 %v7209_v1  ;;  %v7257_v30 = vld [vmem:[#allocation6 + $0x624] ss:$8 sps:$4 sm:$0xff]  }
 0x16d   : > { %2181 = vmatprep.subr.bf16.mxu1 %v7212_v3  ;;  %v7260_v1 = vld [vmem:[#allocation6 + $0x724] ss:$8 sps:$4 sm:$0xff]   ;;  %v7255_v3 = vld [vmem:[#allocation6 + $0x620] ss:$8 sps:$4 sm:$0xff]  }
 0x16f   : > { %1916 = vmatpush2.bf16.msra.mxu0 %v7207_v4  ;;  %v7258_v4 = vld [vmem:[#allocation6 + $0x720] ss:$8 sps:$4 sm:$0xff]  }
 0x170   : > { %2182 = vmatpush2.bf16.msra.mxu1 %v7210_v5  ;;  %1917 = vmatprep.subr.bf16.mxu0 %v7215_v6  ;;  %v7263_v5 = vld [vmem:[#allocation6 + $0x614] ss:$8 sps:$4 sm:$0xff]  }
 0x171   : > { %2183 = vmatprep.subr.bf16.mxu1 %v7218_v7  ;;  %v7266_v6 = vld [vmem:[#allocation6 + $0x714] ss:$8 sps:$4 sm:$0xff]   ;;  %v7261_v7 = vld [vmem:[#allocation6 + $0x610] ss:$8 sps:$4 sm:$0xff]  }
 0x173   : > { %1918 = vmatpush2.bf16.msra.mxu0 %v7213_v8  ;;  %v7264_v8 = vld [vmem:[#allocation6 + $0x710] ss:$8 sps:$4 sm:$0xff]  }
 0x174   : > { %2184 = vmatpush2.bf16.msra.mxu1 %v7216_v11  ;;  %1919 = vmatprep.subr.bf16.mxu0 %v7221_v12  ;;  %v7269_v11 = vld [vmem:[#allocation6 + $0x604] ss:$8 sps:$4 sm:$0xff]   ;;  %v7270_v12 = vld [vmem:[#allocation6 + $0x700] ss:$8 sps:$4 sm:$0xff]  }
 0x175   : > { %2185 = vmatprep.subr.bf16.mxu1 %v7224_v10  ;;  %v7278_v10 = vld [vmem:[#allocation6 + $0x7f4] ss:$8 sps:$4 sm:$0xff]  }
 0x177   : > { %1920 = vmatpush2.bf16.msra.mxu0 %v7219_v14  ;;  %v7273_v14 = vld [vmem:[#allocation6 + $0x6f0] ss:$8 sps:$4 sm:$0xff]  }
 0x178   : > { %2186 = vmatpush2.bf16.msra.mxu1 %v7222_v18  ;;  %2411 = vmatprep.subr.bf16.mxu0 %v7227_v46  ;;  %v7281_v18 = vld [vmem:[#allocation6 + $0x6e4] ss:$8 sps:$4 sm:$0xff]   ;;  %v7287_v46 = vld [vmem:[#allocation6 + $0x6d4] ss:$8 sps:$4 sm:$0xff]  }
 0x179   : > { %2679 = vmatprep.subr.bf16.mxu1 %v7230_v21  ;;  %v7290_v21 = vld [vmem:[#allocation6 + $0x7d4] ss:$8 sps:$4 sm:$0xff]  }
 0x17a   : > { %1922 = vmatmul.mubr.bf16.vlgmr.msra.gmra.mxu0 %v1692_v9  ;;  %v7237_v9 = vld [vmem:[#allocation6 + $0x650] ss:$8 sps:$4 sm:$0xff]  }
 0x17b   : > { %2188 = vmatmul.mubr.bf16.vlgmr.msra.gmra.mxu1 %v1958_v23  ;;  %2412 = vmatpush1.bf16.msra.mxu0 %v7225_v26  ;;  %v7288_v23 = vld [vmem:[#allocation6 + $0x7d0] ss:$8 sps:$4 sm:$0xff]   ;;  %v7293_v26 = vld [vmem:[#allocation6 + $0x6c4] ss:$8 sps:$4 sm:$0xff]  }
 0x17c   : > { %2680 = vmatpush1.bf16.msra.mxu1 %v7228_v35  ;;  %2413 = vmatprep.subr.bf16.mxu0 %v7233_v39  ;;  %v7294_v35 = vld [vmem:[#allocation6 + $0x7c0] ss:$8 sps:$4 sm:$0xff]   ;;  %v7297_v39 = vld [vmem:[#allocation6 + $0x6b0] ss:$8 sps:$4 sm:$0xff]  }
 0x17d   : > { %2681 = vmatprep.subr.bf16.mxu1 %v7236_v42  ;;  %1931 = vmatprep.mubr.bf16.mxu0 %v1695_v41  ;;  %v7300_v42 = vld [vmem:[#allocation6 + $0x7b0] ss:$8 sps:$4 sm:$0xff]   ;;  %v7303_v41 = vld [vmem:[#allocation6 + $0x6a0] ss:$8 sps:$4 sm:$0xff]  }
 0x17e   : > { %2197 = vmatprep.mubr.bf16.mxu1 %v1961_v43  ;;  %v7306_v43 = vld [vmem:[#allocation6 + $0x7a0] ss:$8 sps:$4 sm:$0xff]  }
 0x17f   : > { %2414 = vmatpush1.bf16.msra.mxu0 %v7231_v32  ;;  %v7305_v32 = vld [vmem:[#allocation6 + $0x6a4] ss:$8 sps:$4 sm:$0xff]  }
 0x180   : > { %2682 = vmatpush1.bf16.msra.mxu1 %v7234_v17  ;;  %2415 = vmatprep.subr.bf16.mxu0 %v7239_v47  ;;  %v7308_v17 = vld [vmem:[#allocation6 + $0x7a4] ss:$8 sps:$4 sm:$0xff]   ;;  %v7311_v47 = vld [vmem:[#allocation6 + $0x694] ss:$8 sps:$4 sm:$0xff]  }
 0x181   : > { %2683 = vmatprep.subr.bf16.mxu1 %v7242_v50  ;;  %v8659_v50 = vld [vmem:[#allocation2 + $0xb8] sm:$0xff] }
 0x182   : > { %1932 = vmatmul.mubr.bf16.gmra.mxu0 %v1694_v44  ;;  %v7309_v44 = vld [vmem:[#allocation6 + $0x690] ss:$8 sps:$4 sm:$0xff]  }
 0x183   : > { %2198 = vmatmul.mubr.bf16.gmra.mxu1 %v1960_v62  ;;  %2416 = vmatpush1.bf16.msra.mxu0 %v7237_v9  ;;  %v7312_v9 = vld [vmem:[#allocation6 + $0x790] ss:$8 sps:$4 sm:$0xff]   ;;  %v7317_v62 = vld [vmem:[#allocation6 + $0x684] ss:$8 sps:$4 sm:$0xff]  }
 0x184   : > { %2684 = vmatpush1.bf16.msra.mxu1 %v7240_v25  ;;  %2417 = vmatprep.subr.bf16.mxu0 %v7245_v54  ;;  %v7320_v25 = vld [vmem:[#allocation6 + $0x784] ss:$8 sps:$4 sm:$0xff]   ;;  %v7315_v54 = vld [vmem:[#allocation6 + $0x680] ss:$8 sps:$4 sm:$0xff]  }
 0x185   : > { %2685 = vmatprep.subr.bf16.mxu1 %v7248_v55  ;;  %2443 = vmatprep.mubr.bf16.mxu0 %v8520_v57  ;;  %v7272_v57 = vld [vmem:[#allocation6 + $0x704] ss:$8 sps:$4 sm:$0xff]   ;;  %v7318_v55 = vld [vmem:[#allocation6 + $0x780] ss:$8 sps:$4 sm:$0xff]  }
 0x186   : > { %2711 = vmatprep.mubr.bf16.mxu1 %v8539_v38  ;;  %v7267_v38 = vld [vmem:[#allocation6 + $0x600] ss:$8 sps:$4 sm:$0xff]  }
 0x187   : > { %2418 = vmatpush1.bf16.msra.mxu0 %v7243_v16  ;;  %v2479_v16 = vrot.slane %v8659_v50, 1 }
 0x188   : > { %2686 = vmatpush1.bf16.msra.mxu1 %v7246_v56  ;;  %2419 = vmatprep.subr.bf16.mxu0 %v7251_v49  ;;  %v2480_v56 = vrot.slane %v8661_v31, 1  ;;  %v7323_v49 = vld [vmem:[#allocation6 + $0x874] ss:$8 sps:$4 sm:$0xff]  }
 0x189   : > { %2687 = vmatprep.subr.bf16.mxu1 %v7254_v34  ;;  %v7321_v34 = vld [vmem:[#allocation6 + $0x870] ss:$8 sps:$4 sm:$0xff]  }
 0x18b   : > { %2420 = vmatpush1.bf16.msra.mxu0 %v7249_v60  ;;  %v2481_v60 = vsel %vm635_vm1, %v2479_v16, %v2480_v56  ;;  %v469_v16 = vld [vmem:[#allocation9 + $0x78] sm:$0xff]  ;;  %v468_v56 = vld [vmem:[#allocation9 + $0x70] sm:$0xff] }
 0x18c   : > { %2688 = vmatpush1.bf16.msra.mxu1 %v7252_v63  ;;  %2421 = vmatprep.subr.bf16.mxu0 %v7257_v30  ;;  %v7326_v63 = vld [vmem:[#allocation6 + $0x864] ss:$8 sps:$4 sm:$0xff]  }
 0x18d   : > { %2689 = vmatprep.subr.bf16.mxu1 %v7260_v1  ;;  %v7809_v30 = vld [vmem:[#allocation2 + $0x68] sm:$0xff] }
 0x18e   : > { %v2217_v1 = vpack.c.bf16 %v8659_v50, %v7809_v30  ;;  %v463_v30 = vld [vmem:[#allocation9 + $0x48] sm:$0xff] }
 0x18f   : > { %2422 = vmatpush1.bf16.msra.mxu0 %v7255_v3  ;;  %v2476_v3 = vrot.slane %v8636_v0, 1 }
 0x190   : > { %2690 = vmatpush1.bf16.msra.mxu1 %v7258_v4  ;;  %2423 = vmatprep.subr.bf16.mxu0 %v7263_v5  ;;  %v2477_v4 = vrot.slane %v8645_v58, 1  ;;  %v2485_v5 = vpack.c.bf16 %v2481_v60, %v8622_v61  ;;  %v7330_v61 = vld [vmem:[#allocation6 + $0x840] ss:$8 sps:$4 sm:$0xff]   ;;  %v465_v60 = vld [vmem:[#allocation9 + $0x58] sm:$0xff] }
 0x191   : > { %2691 = vmatprep.subr.bf16.mxu1 %v7266_v6  ;;  %v7324_v6 = vld [vmem:[#allocation6 + $0x860] ss:$8 sps:$4 sm:$0xff]  }
 0x193   : > { %2424 = vmatpush1.bf16.msra.mxu0 %v7261_v7  ;;  %v7329_v7 = vld [vmem:[#allocation6 + $0x854] ss:$8 sps:$4 sm:$0xff]  }
 0x194   : > { %2692 = vmatpush1.bf16.msra.mxu1 %v7264_v8  ;;  %2425 = vmatprep.subr.bf16.mxu0 %v7269_v11  ;;  %v2478_v8 = vsel %vm635_vm1, %v2476_v3, %v2477_v4  ;;  %v7327_v11 = vld [vmem:[#allocation6 + $0x850] ss:$8 sps:$4 sm:$0xff]  }
 0x195   : > { %2693 = vmatprep.subr.bf16.mxu1 %v7272_v57  ;;  %v7810_v57 = vld [vmem:[#allocation2 + $0xa8] sm:$0xff]  ;;  %v2484_v58 = vpack.c.bf16 %v2478_v8, %v8639_v45  ;;  %v461_v3 = vld [vmem:[#allocation9 + $0x38] sm:$0xff]  ;;  %v460_v4 = vld [vmem:[#allocation9 + $0x30] sm:$0xff] }
 0x196   : > { %v7344_v45 = vld [vmem:[#allocation6 + $0x804] ss:$8 sps:$4 sm:$0xff]   ;;  %v456_v8 = vld [vmem:[#allocation9 + $0x10] sm:$0xff] }
 0x197   : > { %2426 = vmatpush1.bf16.msra.mxu0 %v7267_v38  ;;  %v2216_v38 = vpack.c.bf16 %v8636_v0, %v7810_v57  ;;  %v7339_v0 = vld [vmem:[#allocation6 + $0x810] ss:$8 sps:$4 sm:$0xff]   ;;  %v454_v57 = vld [vmem:[#allocation9] sm:$0xff] }
 0x198   : > { %2694 = vmatpush1.bf16.msra.mxu1 %v7270_v12  ;;  %2427 = vmatprep.subr.bf16.mxu0 %v7275_v13  ;;  %v7332_v12 = vld [vmem:[#allocation6 + $0x844] ss:$8 sps:$4 sm:$0xff]  }
 0x199   : > { %2695 = vmatprep.subr.bf16.mxu1 %v7278_v10  ;;  %v7338_v13 = vld [vmem:[#allocation6 + $0x824] ss:$8 sps:$4 sm:$0xff]   ;;  %v7336_v10 = vld [vmem:[#allocation6 + $0x820] ss:$8 sps:$4 sm:$0xff]  }
 0x19b   : > { %2428 = vmatpush2.bf16.msra.mxu0 %v7273_v14  ;;  %v7341_v14 = vld [vmem:[#allocation6 + $0x814] ss:$8 sps:$4 sm:$0xff]  }
 0x19c   : > { %2696 = vmatpush2.bf16.msra.mxu1 %v7276_v15  ;;  %2429 = vmatprep.subr.bf16.mxu0 %v7281_v18  ;;  %v7342_v15 = vld [vmem:[#allocation6 + $0x800] ss:$8 sps:$4 sm:$0xff]   ;;  %v7347_v18 = vld [vmem:[#allocation6 + $0x8f4] ss:$8 sps:$4 sm:$0xff]  }
 0x19d   : > { %2697 = vmatprep.subr.bf16.mxu1 %v7284_v19  ;;  %v7345_v19 = vld [vmem:[#allocation6 + $0x8f0] ss:$8 sps:$4 sm:$0xff]  }
 0x19f   : > { %2430 = vmatpush2.bf16.msra.mxu0 %v7279_v20  ;;  %v7350_v20 = vld [vmem:[#allocation6 + $0x8e4] ss:$8 sps:$4 sm:$0xff]  }
 0x1a0   : > { %2698 = vmatpush2.bf16.msra.mxu1 %v7282_v27  ;;  %2431 = vmatprep.subr.bf16.mxu0 %v7287_v46  ;;  %v7353_v27 = vld [vmem:[#allocation6 + $0x8d4] ss:$8 sps:$4 sm:$0xff]   ;;  %v7351_v46 = vld [vmem:[#allocation6 + $0x8d0] ss:$8 sps:$4 sm:$0xff]  }
 0x1a1   : > { %2699 = vmatprep.subr.bf16.mxu1 %v7290_v21  ;;  %v7356_v21 = vld [vmem:[#allocation6 + $0x8c4] ss:$8 sps:$4 sm:$0xff]  }
 0x1a3   : > { %2432 = vmatpush2.bf16.msra.mxu0 %v7285_v22  ;;  %v7354_v22 = vld [vmem:[#allocation6 + $0x8c0] ss:$8 sps:$4 sm:$0xff]  }
 0x1a4   : > { %2700 = vmatpush2.bf16.msra.mxu1 %v7288_v23  ;;  %2433 = vmatprep.subr.bf16.mxu0 %v7293_v26  ;;  %v7359_v23 = vld [vmem:[#allocation6 + $0x8b4] ss:$8 sps:$4 sm:$0xff]   ;;  %v7357_v26 = vld [vmem:[#allocation6 + $0x8b0] ss:$8 sps:$4 sm:$0xff]  }
 0x1a5   : > { %2701 = vmatprep.subr.bf16.mxu1 %v7296_v28  ;;  %v7362_v28 = vld [vmem:[#allocation6 + $0x8a4] ss:$8 sps:$4 sm:$0xff]  }
 0x1a7   : > { %2434 = vmatpush2.bf16.msra.mxu0 %v7291_v52  ;;  %v7360_v52 = vld [vmem:[#allocation6 + $0x8a0] ss:$8 sps:$4 sm:$0xff]  }
 0x1a8   : > { %2702 = vmatpush2.bf16.msra.mxu1 %v7294_v35  ;;  %2435 = vmatprep.subr.bf16.mxu0 %v7299_v36  ;;  %v7365_v35 = vld [vmem:[#allocation6 + $0x894] ss:$8 sps:$4 sm:$0xff]   ;;  %v7363_v36 = vld [vmem:[#allocation6 + $0x890] ss:$8 sps:$4 sm:$0xff]  }
 0x1a9   : > { %2703 = vmatprep.subr.bf16.mxu1 %v7302_v37  ;;  %v2743_v37 = vrot.slane %v8659_v50, 2  ;;  %v482_v50 = vld [vmem:[#allocation9 + $0xe0] sm:$0xff] }
 0x1ab   : > { %2436 = vmatpush2.bf16.msra.mxu0 %v7297_v39  ;;  %v7368_v39 = vld [vmem:[#allocation6 + $0x884] ss:$8 sps:$4 sm:$0xff]  }
 0x1ac   : > { %2704 = vmatpush2.bf16.msra.mxu1 %v7300_v42  ;;  %2437 = vmatprep.subr.bf16.mxu0 %v7305_v32  ;;  %v2744_v42 = vrot.slane %v8661_v31, 2  ;;  %v7366_v32 = vld [vmem:[#allocation6 + $0x880] ss:$8 sps:$4 sm:$0xff]   ;;  %v481_v31 = vld [vmem:[#allocation9 + $0xd8] sm:$0xff] }
 0x1ad   : > { %2705 = vmatprep.subr.bf16.mxu1 %v7308_v17 }
 0x1ae   : > { %v2745_v17 = vsel %vm1131_vm0, %v2743_v37, %v2744_v42  ;;  %v494_v42 = vld [vmem:[#allocation9 + $0x140] sm:$0xff] }
 0x1af   : > { %2438 = vmatpush2.bf16.msra.mxu0 %v7303_v41  ;;  %v2749_v41 = vpack.c.bf16 %v2745_v17, %v8626_v29  ;;  %v479_v29 = vld [vmem:[#allocation9 + $0xc8] sm:$0xff] }
 0x1b0   : > { %2706 = vmatpush2.bf16.msra.mxu1 %v7306_v43  ;;  %2439 = vmatprep.subr.bf16.mxu0 %v7311_v47  ;;  %v485_v43 = vld [vmem:[#allocation9 + $0xf8] sm:$0xff]  ;;  %v484_v47 = vld [vmem:[#allocation9 + $0xf0] sm:$0xff] }
 0x1b1   : > { %2707 = vmatprep.subr.bf16.mxu1 %v7314_v33  ;;  %v483_v33 = vld [vmem:[#allocation9 + $0xe8] sm:$0xff] }
 0x1b3   : > { %2440 = vmatpush2.bf16.msra.mxu0 %v7309_v44  ;;  %v480_v44 = vld [vmem:[#allocation9 + $0xd0] sm:$0xff] }
 0x1b4   : > { %2708 = vmatpush2.bf16.msra.mxu1 %v7312_v9  ;;  %2441 = vmatprep.subr.bf16.mxu0 %v7317_v62  ;;  %v474_v9 = vld [vmem:[#allocation9 + $0xa0] sm:$0xff]  ;;  %v473_v62 = vld [vmem:[#allocation9 + $0x98] sm:$0xff] }
 0x1b5   : > { %2709 = vmatprep.subr.bf16.mxu1 %v7320_v25  ;;  %v472_v25 = vld [vmem:[#allocation9 + $0x90] sm:$0xff] }
 0x1b7   : > { %2442 = vmatpush2.bf16.msra.mxu0 %v7315_v54  ;;  %v471_v54 = vld [vmem:[#allocation9 + $0x88] sm:$0xff] }
 0x1b8   : > { %2710 = vmatpush2.bf16.msra.mxu1 %v7318_v55  ;;  %2943 = vmatprep.subr.bf16.mxu0 %v7323_v49  ;;  %v470_v55 = vld [vmem:[#allocation9 + $0x80] sm:$0xff]  ;;  %v467_v49 = vld [vmem:[#allocation9 + $0x68] sm:$0xff] }
 0x1b9   : > { %3024 = vmatprep.subr.mxu1 %v485_v43 }
 0x1ba   : > { %2444 = vmatmul.mubr.bf16.vlgmr.msra.gmra.mxu0 %v8544_v40  ;;  %v7335_v40 = vld [vmem:[#allocation6 + $0x834] ss:$8 sps:$4 sm:$0xff]  }
 0x1bb   : > { %2712 = vmatmul.mubr.bf16.vlgmr.msra.gmra.mxu1 %v8563_v51  ;;  %2944 = vmatpush1.bf16.msra.mxu0 %v7321_v34  ;;  %v7333_v51 = vld [vmem:[#allocation6 + $0x830] ss:$8 sps:$4 sm:$0xff]   ;;  %v466_v34 = vld [vmem:[#allocation9 + $0x60] sm:$0xff]  ;;  %v8690_v37 = vpop.f32.mrf.mxu1 }
 0x1bc   : > { %2453 = vmatprep.mubr.bf16.mxu0 %v2217_v1  ;;  %2945 = vmatprep.subr.bf16.mxu0 %v7326_v63  ;;  %v464_v63 = vld [vmem:[#allocation9 + $0x50] sm:$0xff]  ;;  %v462_v1 = vld [vmem:[#allocation9 + $0x40] sm:$0xff] }
 0x1bd   : > { %2721 = vmatprep.mubr.bf16.mxu1 %v2485_v5  ;;  %3025 = vmatpush1.msra.mxu1 %v484_v47  ;;  %v459_v5 = vld [vmem:[#allocation9 + $0x28] sm:$0xff] }
 0x1be   : > { %3026 = vmatprep.subr.mxu1 %v483_v33 }
 0x1bf   : > { %2946 = vmatpush1.bf16.msra.mxu0 %v7324_v6  ;;  %3027 = vmatpush1.msra.mxu1 %v482_v50  ;;  %v458_v6 = vld [vmem:[#allocation9 + $0x20] sm:$0xff] }
 0x1c0   : > { %2947 = vmatprep.subr.bf16.mxu0 %v7329_v7  ;;  %3028 = vmatprep.subr.mxu1 %v481_v31  ;;  %v457_v7 = vld [vmem:[#allocation9 + $0x18] sm:$0xff] }
 0x1c1   : > { %3029 = vmatpush1.msra.mxu1 %v480_v44 }
 0x1c2   : > { %2454 = vmatmul.mubr.bf16.gmra.mxu0 %v2216_v38  ;;  %3030 = vmatprep.subr.mxu1 %v479_v29  ;;  %v517_v38 = vld [vmem:[#allocation9 + $0x1f8] sm:$0xff] }
 0x1c3   : > { %2722 = vmatmul.mubr.bf16.gmra.mxu1 %v2484_v58  ;;  %2948 = vmatpush1.bf16.msra.mxu0 %v7327_v11  ;;  %v455_v11 = vld [vmem:[#allocation9 + $0x8] sm:$0xff]  ;;  %v516_v58 = vld [vmem:[#allocation9 + $0x1f0] sm:$0xff] }
 0x1c4   : > { %2975 = vmatprep.mubr.bf16.mxu0 %v8594_v59  ;;  %2949 = vmatprep.subr.bf16.mxu0 %v7332_v12  ;;  %v7348_v59 = vld [vmem:[#allocation6 + $0x8e0] ss:$8 sps:$4 sm:$0xff]  }
 0x1c5   : > { %v515_v12 = vld [vmem:[#allocation9 + $0x1e8] sm:$0xff] }
 0x1c7   : > { %2950 = vmatpush1.bf16.msra.mxu0 %v7330_v61  ;;  %v514_v61 = vld [vmem:[#allocation9 + $0x1e0] sm:$0xff] }
 0x1c8   : > { %2951 = vmatprep.subr.bf16.mxu0 %v7335_v40  ;;  %v513_v40 = vld [vmem:[#allocation9 + $0x1d8] sm:$0xff] }
 0x1cb   : > { %2952 = vmatpush1.bf16.msra.mxu0 %v7333_v51  ;;  %v512_v51 = vld [vmem:[#allocation9 + $0x1d0] sm:$0xff] }
 0x1cc   : > { %2953 = vmatprep.subr.bf16.mxu0 %v7338_v13  ;;  %v511_v13 = vld [vmem:[#allocation9 + $0x1c8] sm:$0xff] }
 0x1cf   : > { %2954 = vmatpush1.bf16.msra.mxu0 %v7336_v10  ;;  %v510_v10 = vld [vmem:[#allocation9 + $0x1c0] sm:$0xff] }
 0x1d0   : > { %2955 = vmatprep.subr.bf16.mxu0 %v7341_v14  ;;  %v509_v14 = vld [vmem:[#allocation9 + $0x1b8] sm:$0xff] }
 0x1d3   : > { %2956 = vmatpush1.bf16.msra.mxu0 %v7339_v0  ;;  %v508_v0 = vld [vmem:[#allocation9 + $0x1b0] sm:$0xff] }
 0x1d4   : > { %2957 = vmatprep.subr.bf16.mxu0 %v7344_v45  ;;  %v507_v45 = vld [vmem:[#allocation9 + $0x1a8] sm:$0xff] }
 0x1d7   : > { %2958 = vmatpush1.bf16.msra.mxu0 %v7342_v15  ;;  %v8684_v15 = vpop.f32.mrf.mxu0 }
 0x1d8   : > { %2959 = vmatprep.subr.bf16.mxu0 %v7347_v18  ;;  %v506_v18 = vld [vmem:[#allocation9 + $0x1a0] sm:$0xff] }
 0x1db   : > { %2960 = vmatpush2.bf16.msra.mxu0 %v7345_v19  ;;  %v505_v19 = vld [vmem:[#allocation9 + $0x198] sm:$0xff] }
 0x1dc   : > { %2961 = vmatprep.subr.bf16.mxu0 %v7350_v20  ;;  %v504_v20 = vld [vmem:[#allocation9 + $0x190] sm:$0xff] }
 0x1df   : > { %2962 = vmatpush2.bf16.msra.mxu0 %v7348_v59  ;;  %v503_v59 = vld [vmem:[#allocation9 + $0x188] sm:$0xff] }
 0x1e0   : > { %2963 = vmatprep.subr.bf16.mxu0 %v7353_v27  ;;  %v8686_v27 = vpop.f32.mrf.mxu0 }
 0x1e3   : > { %2964 = vmatpush2.bf16.msra.mxu0 %v7351_v46  ;;  %v502_v46 = vld [vmem:[#allocation9 + $0x180] sm:$0xff] }
 0x1e4   : > { %2965 = vmatprep.subr.bf16.mxu0 %v7356_v21  ;;  %v501_v21 = vld [vmem:[#allocation9 + $0x178] sm:$0xff] }
 0x1e7   : > { %2966 = vmatpush2.bf16.msra.mxu0 %v7354_v22  ;;  %v500_v22 = vld [vmem:[#allocation9 + $0x170] sm:$0xff] }
 0x1e8   : > { %2967 = vmatprep.subr.bf16.mxu0 %v7359_v23  ;;  %v499_v23 = vld [vmem:[#allocation9 + $0x168] sm:$0xff] }
 0x1eb   : > { %2968 = vmatpush2.bf16.msra.mxu0 %v7357_v26  ;;  %v8688_v26 = vpop.f32.mrf.mxu0 }
 0x1ec   : > { %2969 = vmatprep.subr.bf16.mxu0 %v7362_v28  ;;  %v498_v28 = vld [vmem:[#allocation9 + $0x160] sm:$0xff] }
 0x1ef   : > { %2970 = vmatpush2.bf16.msra.mxu0 %v7360_v52  ;;  %v497_v52 = vld [vmem:[#allocation9 + $0x158] sm:$0xff] }
 0x1f0   : > { %2971 = vmatprep.subr.bf16.mxu0 %v7365_v35  ;;  %v496_v35 = vld [vmem:[#allocation9 + $0x150] sm:$0xff] }
 0x1f3   : > { %2972 = vmatpush2.bf16.msra.mxu0 %v7363_v36  ;;  %v495_v36 = vld [vmem:[#allocation9 + $0x148] sm:$0xff] }
 0x1f4   : > { %2973 = vmatprep.subr.bf16.mxu0 %v7368_v39  ;;  %v8692_v39 = vpop.f32.mrf.mxu0 }
 0x1f6   : > { %v8694_v17 = vpop.f32.mrf.mxu0 }
 0x1f7   : > { %2974 = vmatpush2.bf16.msra.mxu0 %v7366_v32  ;;  %v493_v32 = vld [vmem:[#allocation9 + $0x138] sm:$0xff] }
 0x1f8   : > { %3140 = vmatprep.subr.mxu0 %v485_v43  ;;  %v491_v43 = vld [vmem:[#allocation9 + $0x128] sm:$0xff] }
 0x1fa   : > { %2976 = vmatmul.mubr.bf16.vlgmr.msra.gmra.mxu0 %v8609_v24  ;;  %v478_v24 = vld [vmem:[#allocation9 + $0xc0] sm:$0xff] }
 0x1fb   : > { %2985 = vmatprep.mubr.bf16.mxu0 %v2749_v41  ;;  %3141 = vmatpush1.msra.mxu0 %v484_v47  ;;  %v492_v41 = vld [vmem:[#allocation9 + $0x130] sm:$0xff]  ;;  %v8696_v47 = vpop.f32.mrf.mxu1 }
 0x1fc   : > { %3142 = vmatprep.subr.mxu0 %v483_v33  ;;  %3031 = vmatpush1.msra.mxu1 %v478_v24  ;;  %v490_v33 = vld [vmem:[#allocation9 + $0x120] sm:$0xff] }
 0x1fd   : > { %3143 = vmatpush1.msra.mxu0 %v482_v50  ;;  %3032 = vmatprep.subr.mxu1 %v477_v48  ;;  %v489_v50 = vld [vmem:[#allocation9 + $0x118] sm:$0xff] }
 0x1fe   : > { %3144 = vmatprep.subr.mxu0 %v481_v31  ;;  %3033 = vmatpush1.msra.mxu1 %v476_v53  ;;  %v488_v31 = vld [vmem:[#allocation9 + $0x110] sm:$0xff] }
 0x1ff   : > { %3145 = vmatpush1.msra.mxu0 %v480_v44  ;;  %v487_v44 = vld [vmem:[#allocation9 + $0x108] sm:$0xff] }
 0x200   : > { %3146 = vmatprep.subr.mxu0 %v479_v29  ;;  %v8698_v29 = vpop.f32.mrf.mxu0 }
 0x201   : > { %3147 = vmatpush1.msra.mxu0 %v478_v24  ;;  %v486_v24 = vld [vmem:[#allocation9 + $0x100] sm:$0xff] }
 0x202   : > { %2986 = vmatmul.mubr.bf16.gmra.mxu0 %v2748_v2  ;;  %v475_v2 = vld [vmem:[#allocation9 + $0xa8] sm:$0xff]  ;;  %3148 = vmatprep.subr.mxu0 %v477_v48  ;;  %v1116_v48 = vpop.f32.mrf.mxu1 }
 0x203   : > { %3149 = vmatpush1.msra.mxu0 %v476_v53  ;;  %3034 = vmatprep.subr.mxu1 %v475_v2  ;;  %v913_v53 = vpop.f32.mrf.mxu0 }
 0x204   : > { %3150 = vmatprep.subr.mxu0 %v475_v2  ;;  %3035 = vmatpush1.msra.mxu1 %v474_v9  ;;  %v1118_v2 = vpop.f32.mrf.mxu1 }
 0x205   : > { %3151 = vmatpush1.msra.mxu0 %v474_v9  ;;  %3036 = vmatprep.subr.mxu1 %v473_v62 }
 0x206   : > { %3152 = vmatprep.subr.mxu0 %v473_v62  ;;  %3037 = vmatpush1.msra.mxu1 %v472_v25  ;;  %v1122_v9 = vpop.f32.mrf.mxu1  ;;  %v915_v62 = vpop.f32.mrf.mxu0 }
 0x207   : > { %3153 = vmatpush1.msra.mxu0 %v472_v25  ;;  %3038 = vmatprep.subr.mxu1 %v471_v54 }
 0x208   : > { %3154 = vmatprep.subr.mxu0 %v471_v54  ;;  %3039 = vmatpush1.msra.mxu1 %v470_v55  ;;  %v1395_v25 = vpop.f32.mrf.mxu0  ;;  %v1124_v54 = vpop.f32.mrf.mxu1 }
 0x209   : > { %3155 = vmatpush1.msra.mxu0 %v470_v55  ;;  %3040 = vmatprep.subr.mxu1 %v469_v16 }
 0x20a   : > { %3156 = vmatprep.subr.mxu0 %v469_v16  ;;  %3041 = vmatpush1.msra.mxu1 %v468_v56  ;;  %v1397_v55 = vpop.f32.mrf.mxu0  ;;  %v1126_v16 = vpop.f32.mrf.mxu1 }
 0x20b   : > { %3157 = vmatpush1.msra.mxu0 %v468_v56  ;;  %3042 = vmatprep.subr.mxu1 %v467_v49 }
 0x20c   : > { %3158 = vmatprep.subr.mxu0 %v467_v49  ;;  %3043 = vmatpush1.msra.mxu1 %v466_v34  ;;  %v1399_v56 = vpop.f32.mrf.mxu0  ;;  %v1128_v49 = vpop.f32.mrf.mxu1 }
 0x20d   : > { %3159 = vmatpush1.msra.mxu0 %v466_v34  ;;  %3044 = vmatprep.subr.mxu1 %v465_v60 }
 0x20e   : > { %3160 = vmatprep.subr.mxu0 %v465_v60  ;;  %3045 = vmatpush1.msra.mxu1 %v464_v63  ;;  %v1653_v34 = vpop.f32.mrf.mxu1  ;;  %v1401_v60 = vpop.f32.mrf.mxu0 }
 0x20f   : > { %3161 = vmatpush1.msra.mxu0 %v464_v63  ;;  %3046 = vmatprep.subr.mxu1 %v463_v30 }
 0x210   : > { %3162 = vmatprep.subr.mxu0 %v463_v30  ;;  %3047 = vmatpush1.msra.mxu1 %v462_v1  ;;  %v1655_v63 = vpop.f32.mrf.mxu1  ;;  %v1405_v30 = vpop.f32.mrf.mxu0 }
 0x211   : > { %3163 = vmatpush1.msra.mxu0 %v462_v1  ;;  %3048 = vmatprep.subr.mxu1 %v461_v3 }
 0x212   : > { %3164 = vmatprep.subr.mxu0 %v461_v3  ;;  %3049 = vmatpush1.msra.mxu1 %v460_v4  ;;  %v1657_v1 = vpop.f32.mrf.mxu1  ;;  %v1407_v3 = vpop.f32.mrf.mxu0 }
 0x213   : > { %3165 = vmatpush1.msra.mxu0 %v460_v4  ;;  %3050 = vmatprep.subr.mxu1 %v459_v5 }
 0x214   : > { %3166 = vmatprep.subr.mxu0 %v459_v5  ;;  %3051 = vmatpush1.msra.mxu1 %v458_v6  ;;  %v1659_v4 = vpop.f32.mrf.mxu1  ;;  %v1409_v5 = vpop.f32.mrf.mxu0 }
 0x215   : > { %3167 = vmatpush1.msra.mxu0 %v458_v6  ;;  %3052 = vmatprep.subr.mxu1 %v457_v7 }
 0x216   : > { %3168 = vmatprep.subr.mxu0 %v457_v7  ;;  %3053 = vmatpush1.msra.mxu1 %v456_v8  ;;  %v1663_v6 = vpop.f32.mrf.mxu1  ;;  %v1411_v7 = vpop.f32.mrf.mxu0 }
 0x217   : > { %3169 = vmatpush1.msra.mxu0 %v456_v8  ;;  %3054 = vmatprep.subr.mxu1 %v455_v11 }
 0x218   : > { %3170 = vmatprep.subr.mxu0 %v455_v11  ;;  %3055 = vmatpush1.msra.mxu1 %v454_v57  ;;  %v1665_v11 = vpop.f32.mrf.mxu1 }
 0x219   : > { %3171 = vmatpush1.msra.mxu0 %v454_v57  ;;  %3056 = vmatprep.subr.mxu1 %v517_v38 }
 0x21a   : > { %3172 = vmatprep.subr.mxu0 %v517_v38  ;;  %3057 = vmatpush2.msra.mxu1 %v516_v58  ;;  %v1667_v38 = vpop.f32.mrf.mxu1 }
 0x21b   : > { %3173 = vmatpush2.msra.mxu0 %v516_v58  ;;  %3058 = vmatprep.subr.mxu1 %v515_v12 }
 0x21c   : > { %3174 = vmatprep.subr.mxu0 %v515_v12  ;;  %3059 = vmatpush2.msra.mxu1 %v514_v61  ;;  %v1669_v12 = vpop.f32.mrf.mxu1 }
 0x21d   : > { %3175 = vmatpush2.msra.mxu0 %v514_v61  ;;  %3060 = vmatprep.subr.mxu1 %v513_v40 }
 0x21e   : > { %3176 = vmatprep.subr.mxu0 %v513_v40  ;;  %3061 = vmatpush2.msra.mxu1 %v512_v51 }
 0x21f   : > { %3177 = vmatpush2.msra.mxu0 %v512_v51  ;;  %3062 = vmatprep.subr.mxu1 %v511_v13 }
 0x220   : > { %3178 = vmatprep.subr.mxu0 %v511_v13  ;;  %3063 = vmatpush2.msra.mxu1 %v510_v10 }
 0x221   : > { %3179 = vmatpush2.msra.mxu0 %v510_v10  ;;  %3064 = vmatprep.subr.mxu1 %v509_v14 }
 0x222   : > { %3180 = vmatprep.subr.mxu0 %v509_v14  ;;  %3065 = vmatpush2.msra.mxu1 %v508_v0 }
 0x223   : > { %3181 = vmatpush2.msra.mxu0 %v508_v0  ;;  %3066 = vmatprep.subr.mxu1 %v507_v45 }
 0x224   : > { %3182 = vmatprep.subr.mxu0 %v507_v45  ;;  %3067 = vmatpush2.msra.mxu1 %v506_v18 }
 0x225   : > { %3183 = vmatpush2.msra.mxu0 %v506_v18  ;;  %3068 = vmatprep.subr.mxu1 %v505_v19 }
 0x226   : > { %3184 = vmatprep.subr.mxu0 %v505_v19  ;;  %3069 = vmatpush2.msra.mxu1 %v504_v20 }
 0x227   : > { %3185 = vmatpush2.msra.mxu0 %v504_v20  ;;  %3070 = vmatprep.subr.mxu1 %v503_v59 }
 0x228   : > { %3186 = vmatprep.subr.mxu0 %v503_v59  ;;  %3071 = vmatpush2.msra.mxu1 %v502_v46 }
 0x229   : > { %3187 = vmatpush2.msra.mxu0 %v502_v46  ;;  %3072 = vmatprep.subr.mxu1 %v501_v21 }
 0x22a   : > { %3188 = vmatprep.subr.mxu0 %v501_v21  ;;  %3073 = vmatpush2.msra.mxu1 %v500_v22 }
 0x22b   : > { %3189 = vmatpush2.msra.mxu0 %v500_v22  ;;  %3074 = vmatprep.subr.mxu1 %v499_v23 }
 0x22c   : > { %3190 = vmatprep.subr.mxu0 %v499_v23  ;;  %3075 = vmatpush2.msra.mxu1 %v498_v28 }
 0x22d   : > { %3191 = vmatpush2.msra.mxu0 %v498_v28  ;;  %3076 = vmatprep.subr.mxu1 %v497_v52 }
 0x22e   : > { %3192 = vmatprep.subr.mxu0 %v497_v52  ;;  %3077 = vmatpush2.msra.mxu1 %v496_v35 }
 0x22f   : > { %3193 = vmatpush2.msra.mxu0 %v496_v35  ;;  %3078 = vmatprep.subr.mxu1 %v495_v36 }
 0x230   : > { %3194 = vmatprep.subr.mxu0 %v495_v36  ;;  %3079 = vmatpush2.msra.mxu1 %v494_v42 }
 0x231   : > { %3195 = vmatpush2.msra.mxu0 %v494_v42  ;;  %3080 = vmatprep.subr.mxu1 %v493_v32  ;;  %v1117_v42 = vadd.f32 %v1116_v48, %v8688_v26 }
 0x232   : > { %3196 = vmatprep.subr.mxu0 %v493_v32  ;;  %3081 = vmatpush2.msra.mxu1 %v492_v41  ;;  %v1113_v32 = vadd.f32 %v8690_v37, %v8684_v15 }
 0x233   : > { %3197 = vmatpush2.msra.mxu0 %v492_v41  ;;  %3082 = vmatprep.subr.mxu1 %v491_v43  ;;  %v1119_v41 = vadd.f32 %v1118_v2, %v8692_v39  ;;  %v1127_v2 = vadd.f32 %v1126_v16, %v913_v53 }
 0x234   : > { %3198 = vmatprep.subr.mxu0 %v491_v43  ;;  %3083 = vmatpush2.msra.mxu1 %v490_v33  ;;  %v1123_v43 = vadd.f32 %v1122_v9, %v8694_v17  ;;  %v1129_v9 = vadd.f32 %v1128_v49, %v915_v62 }
 0x235   : > { %3199 = vmatpush2.msra.mxu0 %v490_v33  ;;  %3084 = vmatprep.subr.mxu1 %v489_v50  ;;  %v1416_v33 = vadd.f32 %v1399_v56, %v1117_v42  ;;  %v1417_v26 = vadd.f32 %v1401_v60, %v1119_v41 }
 0x236   : > { %3200 = vmatprep.subr.mxu0 %v489_v50  ;;  %3085 = vmatpush2.msra.mxu1 %v488_v31  ;;  %v1115_v50 = vadd.f32 %v8696_v47, %v8686_v27  ;;  %v1418_v48 = vadd.f32 %v1405_v30, %v1123_v43  ;;  %v1421_v41 = vadd.f32 %v1411_v7, %v1129_v9 }
 0x237   : > { %3201 = vmatpush2.msra.mxu0 %v488_v31  ;;  %3086 = vmatprep.subr.mxu1 %v487_v44  ;;  %v1125_v31 = vadd.f32 %v1124_v54, %v8698_v29  ;;  %v1674_v39 = vadd.f32 %v1657_v1, %v1416_v33  ;;  %v1675_v27 = vadd.f32 %v1659_v4, %v1417_v26 }
 0x238   : > { %3202 = vmatprep.subr.mxu0 %v487_v44  ;;  %3087 = vmatpush2.msra.mxu1 %v486_v24  ;;  %v1414_v44 = vadd.f32 %v1395_v25, %v1113_v32  ;;  %v1415_v15 = vadd.f32 %v1397_v55, %v1115_v50  ;;  %v1676_v47 = vadd.f32 %v1663_v6, %v1418_v48 }
 0x239   : > { %3203 = vmatpush2.msra.mxu0 %v486_v24  ;;  %v1419_v37 = vadd.f32 %v1407_v3, %v1125_v31  ;;  %v1420_v29 = vadd.f32 %v1409_v5, %v1127_v2  ;;  %v1679_v62 = vadd.f32 %v1669_v12, %v1421_v41 }
 0x23a   : > { %v1923_v8 = vpop.f32.mrf.mxu0  ;;  %v1672_v17 = vadd.f32 %v1653_v34, %v1414_v44  ;;  %v1673_v25 = vadd.f32 %v1655_v63, %v1415_v15 }
 0x23b   : > { %v2189_v61 = vpop.f32.mrf.mxu1  ;;  %v1677_v32 = vadd.f32 %v1665_v11, %v1419_v37  ;;  %v1678_v53 = vadd.f32 %v1667_v38, %v1420_v29 }
 0x23c   : > { %v1925_v57 = vpop.f32.mrf.mxu0  ;;  %v1942_v60 = vadd.f32 %v1923_v8, %v1672_v17 }
 0x23d   : > { %v2191_v51 = vpop.f32.mrf.mxu1  ;;  %v1943_v50 = vadd.f32 %v1925_v57, %v1673_v25 }
 0x23e   : > { %v1927_v58 = vpop.f32.mrf.mxu0  ;;  %v2208_v49 = vadd.f32 %v2189_v61, %v1942_v60 }
 0x23f   : > { %v2193_v10 = vpop.f32.mrf.mxu1  ;;  %v1944_v54 = vadd.f32 %v1927_v58, %v1674_v39  ;;  %v2209_v58 = vadd.f32 %v2191_v51, %v1943_v50 }
 0x240   : > { %v1929_v40 = vpop.f32.mrf.mxu0 }
 0x241   : > { %v2195_v0 = vpop.f32.mrf.mxu1  ;;  %v1945_v30 = vadd.f32 %v1929_v40, %v1675_v27  ;;  %v2210_v16 = vadd.f32 %v2193_v10, %v1944_v54 }
 0x242   : > { %v1933_v13 = vpop.f32.mrf.mxu0 }
 0x243   : > { %v2199_v18 = vpop.f32.mrf.mxu1  ;;  %v1946_v43 = vadd.f32 %v1933_v13, %v1676_v47  ;;  %v2211_v1 = vadd.f32 %v2195_v0, %v1945_v30 }
 0x244   : > { %v1935_v14 = vpop.f32.mrf.mxu0 }
 0x245   : > { %v2201_v59 = vpop.f32.mrf.mxu1  ;;  %v1947_v55 = vadd.f32 %v1935_v14, %v1677_v32  ;;  %v2212_v4 = vadd.f32 %v2199_v18, %v1946_v43 }
 0x246   : > { %v1937_v45 = vpop.f32.mrf.mxu0 }
 0x247   : > { %v2203_v21 = vpop.f32.mrf.mxu1  ;;  %v1948_v6 = vadd.f32 %v1937_v45, %v1678_v53  ;;  %v2213_v63 = vadd.f32 %v2201_v59, %v1947_v55 }
 0x248   : > { %v1939_v19 = vpop.f32.mrf.mxu0 }
 0x249   : > { %v2205_v23 = vpop.f32.mrf.mxu1  ;;  %v1949_v11 = vadd.f32 %v1939_v19, %v1679_v62  ;;  %v2214_v38 = vadd.f32 %v2203_v21, %v1948_v6  ;;  %v7371_v62 = vld [vmem:[#allocation8 + $0x74] ss:$8 sps:$4 sm:$0xff]   ;;  %v7384_v6 = vld [vmem:[#allocation8 + $0x150] ss:$8 sps:$4 sm:$0xff]  }
 0x24a   : > { %3837 = vmatprep.subr.bf16.mxu0 %v7371_v62  ;;  %v7399_v62 = vld [vmem:[#allocation8 + $0x20] ss:$8 sps:$4 sm:$0xff]  }
 0x24b   : > { %v2215_v12 = vadd.f32 %v2205_v23, %v1949_v11  ;;  %v7396_v11 = vld [vmem:[#allocation8 + $0x130] ss:$8 sps:$4 sm:$0xff]  }
 0x27a   : > { %v2445_v20 = vpop.f32.mrf.mxu0 }
 0x27b   : > { %v2713_v28 = vpop.f32.mrf.mxu1  ;;  %v2464_v7 = vadd.f32 %v2445_v20, %v2208_v49  ;;  %v7372_v49 = vld [vmem:[#allocation8 + $0x170] ss:$8 sps:$4 sm:$0xff]  }
 0x27c   : > { %v2447_v46 = vpop.f32.mrf.mxu0 }
 0x27d   : > { %v8700_v35 = vpop.f32.mrf.mxu1  ;;  %v2465_v14 = vadd.f32 %v2447_v46, %v2209_v58  ;;  %v2732_v61 = vadd.f32 %v2713_v28, %v2464_v7  ;;  %v7390_v58 = vld [vmem:[#allocation8 + $0x140] ss:$8 sps:$4 sm:$0xff]   ;;  %v7398_v7 = vld [vmem:[#allocation8 + $0x134] ss:$8 sps:$4 sm:$0xff]  }
 0x27e   : > { %v2449_v22 = vpop.f32.mrf.mxu0  ;;  %9401 = vst [vmem:[#allocation24_spill] sm:$0xff] %v8700_v35 }
 0x27f   : > { %v2717_v24 = vpop.f32.mrf.mxu1  ;;  %v2466_v5 = vadd.f32 %v2449_v22, %v2210_v16 }
 0x280   : > { %v2451_v52 = vpop.f32.mrf.mxu0 }
 0x281   : > { %v2719_v42 = vpop.f32.mrf.mxu1  ;;  %v2467_v13 = vadd.f32 %v2451_v52, %v2211_v1  ;;  %v2734_v10 = vadd.f32 %v2717_v24, %v2466_v5  ;;  %v7378_v1 = vld [vmem:[#allocation8 + $0x160] ss:$8 sps:$4 sm:$0xff]   ;;  %v7386_v5 = vld [vmem:[#allocation8 + $0x154] ss:$8 sps:$4 sm:$0xff]  }
 0x282   : > { %v2455_v36 = vpop.f32.mrf.mxu0 }
 0x283   : > { %v2723_v3 = vpop.f32.mrf.mxu1  ;;  %v2468_v57 = vadd.f32 %v2455_v36, %v2212_v4  ;;  %v2735_v18 = vadd.f32 %v2719_v42, %v2467_v13  ;;  %v7380_v4 = vld [vmem:[#allocation8 + $0x164] ss:$8 sps:$4 sm:$0xff]  }
 0x284   : > { %v2457_v35 = vpop.f32.mrf.mxu0 }
 0x285   : > { %v2725_v8 = vpop.f32.mrf.mxu1  ;;  %v2469_v33 = vadd.f32 %v2457_v35, %v2213_v63  ;;  %v2736_v45 = vadd.f32 %v2723_v3, %v2468_v57  ;;  %v9402_v19 = vld [vmem:[#allocation24_spill] sm:$0xff] }
 0x286   : > { %v2459_v56 = vpop.f32.mrf.mxu0  ;;  %v2733_v20 = vadd.f32 %v9402_v19, %v2465_v14  ;;  %v7392_v63 = vld [vmem:[#allocation8 + $0x144] ss:$8 sps:$4 sm:$0xff]  }
 0x287   : > { %v2727_v26 = vpop.f32.mrf.mxu1  ;;  %v2470_v22 = vadd.f32 %v2459_v56, %v2214_v38  ;;  %v2737_v59 = vadd.f32 %v2725_v8, %v2469_v33  ;;  %v3098_v8 = vlaneseq }
 0x288   : > { %v2461_v31 = vpop.f32.mrf.mxu0 }
 0x289   : > { %v2471_v52 = vadd.f32 %v2461_v31, %v2215_v12  ;;  %v2729_v23 = vpop.f32.mrf.mxu1  ;;  %v2738_v35 = vadd.f32 %v2727_v26, %v2470_v22 }
 0x28b   : > { %v2739_v39 = vadd.f32 %v2729_v23, %v2471_v52 }
 0x2ba   : > { %v2977_v34 = vpop.f32.mrf.mxu0 }
 0x2bb   : > { %v8713_v36 = vadd.f32 %v2977_v34, %v2732_v61  ;;  %v7374_v34 = vld [vmem:[#allocation8 + $0x174] ss:$8 sps:$4 sm:$0xff]  }
 0x2bc   : > { %v2979_v40 = vpop.f32.mrf.mxu0  ;;  %3624 = vmatprep.subr.bf16.mxu1 %v7374_v34  ;;  %v7402_v34 = vld [vmem:[#allocation8 + $0x120] ss:$8 sps:$4 sm:$0xff]  }
 0x2bd   : > { %v8719_v24 = vadd.f32 %v2979_v40, %v2733_v20  ;;  %v8729_v40 = vshrl.u32 %v3098_v8, 7  ;;  %v7419_v8 = vld [vmem:[#allocation8 + $0xf4] ss:$8 sps:$4 sm:$0xff]  }
 0x2be   : > { %v2981_v44 = vpop.f32.mrf.mxu0 }
 0x2bf   : > { %v8710_v51 = vadd.f32 %v2981_v44, %v2734_v10  ;;  %v8732_v13 = vsub.s32 0, %v8729_v40 }
 0x2c0   : > { %v2983_v0 = vpop.f32.mrf.mxu0 }
 0x2c1   : > { %v8715_v46 = vadd.f32 %v2983_v0, %v2735_v18  ;;  %v3006_v15 = vadd.f32 %v8710_v51, %v8713_v36  ;;  %9403 = vst [vmem:[#allocation24_spill] sm:$0xff] %v8732_v13 }
 0x2c2   : > { %v2987_v48 = vpop.f32.mrf.mxu0 }
 0x2c3   : > { %v8717_v21 = vadd.f32 %v2987_v48, %v2736_v45  ;;  %v3015_v9 = vadd.f32 %v8715_v46, %v8719_v24 }
 0x2c4   : > { %v2989_v28 = vpop.f32.mrf.mxu0 }
 0x2c5   : > { %v8723_v37 = vadd.f32 %v2989_v28, %v2737_v59  ;;  %v3007_v17 = vadd.f32 %v3006_v15, %v8717_v21 }
 0x2c6   : > { %v2991_v2 = vpop.f32.mrf.mxu0 }
 0x2c7   : > { %v3002_v42 = vadd.f32 %v2991_v2, %v2738_v35  ;;  %v3016_v27 = vadd.f32 %v3015_v9, %v8723_v37 }
 0x2c8   : > { %v2993_v56 = vpop.f32.mrf.mxu0 }
 0x2c9   : > { %v3008_v47 = vadd.f32 %v3007_v17, %v3002_v42  ;;  %v3003_v29 = vadd.f32 %v2993_v56, %v2739_v39 }
 0x2cb   : > { %v3009_v54 = vrot.slane %v3008_v47, 4  ;;  %v3017_v25 = vadd.f32 %v3016_v27, %v3003_v29 }
 0x2cd   : > { %v3010_v32 = vadd.f32 %v3009_v54, %v3008_v47  ;;  %v3018_v41 = vrot.slane %v3017_v25, 4 }
 0x2cf   : > { %v3011_v60 = vrot.slane %v3010_v32, 2  ;;  %v3019_v30 = vadd.f32 %v3018_v41, %v3017_v25 }
 0x2d1   : > { %v3012_v43 = vadd.f32 %v3011_v60, %v3010_v32  ;;  %v3020_v50 = vrot.slane %v3019_v30, 2  ;;  %v7369_v32 = vld [vmem:[#allocation8 + $0x70] ss:$8 sps:$4 sm:$0xff]   ;;  %v7377_v60 = vld [vmem:[#allocation8 + $0x64] ss:$8 sps:$4 sm:$0xff]  }
 0x2d3   : > { %v3021_v55 = vadd.f32 %v3020_v50, %v3019_v30  ;;  %v3013_v3 = vrot.slane %v3012_v43, 1  ;;  %v7375_v30 = vld [vmem:[#allocation8 + $0x60] ss:$8 sps:$4 sm:$0xff]   ;;  %v7381_v50 = vld [vmem:[#allocation8 + $0x50] ss:$8 sps:$4 sm:$0xff]  }
 0x2d5   : > { %v3022_v31 = vrot.slane %v3021_v55, 1  ;;  %v3014_v16 = vadd.f32 %v3013_v3, %v3012_v43  ;;  %v7383_v43 = vld [vmem:[#allocation8 + $0x54] ss:$8 sps:$4 sm:$0xff]   ;;  %v7387_v3 = vld [vmem:[#allocation8 + $0x40] ss:$8 sps:$4 sm:$0xff]  }
 0x2d7   : > { %v3023_v53 = vadd.f32 %v3022_v31, %v3021_v55  ;;  %v7389_v55 = vld [vmem:[#allocation8 + $0x44] ss:$8 sps:$4 sm:$0xff]   ;;  %v7395_v31 = vld [vmem:[#allocation8 + $0x34] ss:$8 sps:$4 sm:$0xff]  }
 0x2d9   : > { %3088 = vmatprep.mubr.f32.mxu1 %v3023_v53  ;;  %v7393_v53 = vld [vmem:[#allocation8 + $0x30] ss:$8 sps:$4 sm:$0xff]  }
 0x2da   : > { %3089 = vmatmul.mubr.f32.vlgmr.msra.gmra.mxu1 %v3014_v16  ;;  %v7401_v16 = vld [vmem:[#allocation8 + $0x24] ss:$8 sps:$4 sm:$0xff]  }
 0x2db   : > { %3625 = vmatpush1.bf16.msra.mxu1 %v7372_v49  ;;  %v7404_v49 = vld [vmem:[#allocation8 + $0x124] ss:$8 sps:$4 sm:$0xff]  }
 0x2dc   : > { %3626 = vmatprep.subr.bf16.mxu1 %v7380_v4  ;;  %v7405_v4 = vld [vmem:[#allocation8 + $0x10] ss:$8 sps:$4 sm:$0xff]  }
 0x2df   : > { %3627 = vmatpush1.bf16.msra.mxu1 %v7378_v1  ;;  %v7407_v1 = vld [vmem:[#allocation8 + $0x14] ss:$8 sps:$4 sm:$0xff]  }
 0x2e0   : > { %3628 = vmatprep.subr.bf16.mxu1 %v7386_v5  ;;  %v7408_v5 = vld [vmem:[#allocation8 + $0x110] ss:$8 sps:$4 sm:$0xff]  }
 0x2e3   : > { %3629 = vmatpush1.bf16.msra.mxu1 %v7384_v6  ;;  %v7410_v6 = vld [vmem:[#allocation8 + $0x114] ss:$8 sps:$4 sm:$0xff]  }
 0x2e4   : > { %3630 = vmatprep.subr.bf16.mxu1 %v7392_v63  ;;  %v7411_v63 = vld [vmem:[#allocation8] ss:$8 sps:$4 sm:$0xff]  }
 0x2e7   : > { %3631 = vmatpush1.bf16.msra.mxu1 %v7390_v58  ;;  %v7413_v58 = vld [vmem:[#allocation8 + $0x4] ss:$8 sps:$4 sm:$0xff]  }
 0x2e8   : > { %3632 = vmatprep.subr.bf16.mxu1 %v7398_v7  ;;  %v7414_v7 = vld [vmem:[#allocation8 + $0x100] ss:$8 sps:$4 sm:$0xff]  }
 0x2eb   : > { %3633 = vmatpush1.bf16.msra.mxu1 %v7396_v11  ;;  %v7416_v11 = vld [vmem:[#allocation8 + $0x104] ss:$8 sps:$4 sm:$0xff]  }
 0x2ec   : > { %3634 = vmatprep.subr.bf16.mxu1 %v7404_v49 }
 0x2ef   : > { %3635 = vmatpush1.bf16.msra.mxu1 %v7402_v34 }
 0x2f0   : > { %3636 = vmatprep.subr.bf16.mxu1 %v7410_v6 }
 0x2f3   : > { %3637 = vmatpush1.bf16.msra.mxu1 %v7408_v5 }
 0x2f4   : > { %3638 = vmatprep.subr.bf16.mxu1 %v7416_v11 }
 0x2f7   : > { %3639 = vmatpush1.bf16.msra.mxu1 %v7414_v7 }
 0x39a   : > { %v3090_v57 = vpop.f32.mrf.mxu1 }
 0x39b   : > { %v3096_v14 = vmul.f32 0.001953125, %v3090_v57  ;;  %v7417_v57 = vld [vmem:[#allocation8 + $0xf0] ss:$8 sps:$4 sm:$0xff]  }
 0x39c   : > { %v3092_v33 = vpop.f32.mrf.mxu1 }
 0x39d   : > { %v3101_v44 = vrot.slane %v3096_v14, %v8732_v13  ;;  %v3097_v38 = vmul.f32 0.001953125, %v3092_v33  ;;  %v7422_v14 = vld [vmem:[#allocation8 + $0x1f4] ss:$8 sps:$4 sm:$0xff]   ;;  %v7420_v33 = vld [vmem:[#allocation8 + $0x1f0] ss:$8 sps:$4 sm:$0xff]  }
 0x39e   : > { %3640 = vmatprep.subr.bf16.mxu1 %v7422_v14 }
 0x39f   : > { %v8736_v10 = vsub.f32 %v8713_v36, %v3101_v44  ;;  %v8739_v12 = vsub.f32 %v8710_v51, %v3101_v44  ;;  %v8742_v61 = vsub.f32 %v8717_v21, %v3101_v44  ;;  %v3105_v26 = vrot.slane %v3097_v38, %v8732_v13  ;;  %v7423_v38 = vld [vmem:[#allocation8 + $0xe0] ss:$8 sps:$4 sm:$0xff]   ;;  %3641 = vmatpush2.bf16.msra.mxu1 %v7420_v33 }
 0x3a0   : > { %v8745_v0 = vsub.f32 %v3002_v42, %v3101_v44  ;;  %v7425_v44 = vld [vmem:[#allocation8 + $0xe4] ss:$8 sps:$4 sm:$0xff]  }
 0x3a1   : > { %v3114_v18 = vmul.f32 %v8736_v10, %v8736_v10  ;;  %v3116_v45 = vmul.f32 %v8739_v12, %v8739_v12  ;;  %v8752_v22 = vsub.f32 %v8719_v24, %v3105_v26  ;;  %v8755_v19 = vsub.f32 %v8715_v46, %v3105_v26 }
 0x3a2   : > { %v8758_v51 = vsub.f32 %v8723_v37, %v3105_v26  ;;  %v3118_v20 = vmul.f32 %v8742_v61, %v8742_v61  ;;  %v8762_v48 = vsub.f32 %v3003_v29, %v3105_v26  ;;  %v3120_v21 = vmul.f32 %v8745_v0, %v8745_v0  ;;  %v7428_v26 = vld [vmem:[#allocation8 + $0x1e4] ss:$8 sps:$4 sm:$0xff]  }
 0x3a3   : > { %v3122_v59 = vadd.f32 %v3116_v45, %v3114_v18  ;;  %v3115_v52 = vmul.f32 %v8752_v22, %v8752_v22  ;;  %v3117_v36 = vmul.f32 %v8755_v19, %v8755_v19  ;;  %v7426_v18 = vld [vmem:[#allocation8 + $0x1e0] ss:$8 sps:$4 sm:$0xff]   ;;  %v7431_v45 = vld [vmem:[#allocation8 + $0xd4] ss:$8 sps:$4 sm:$0xff]   ;;  %3642 = vmatprep.subr.bf16.mxu1 %v7428_v26 }
 0x3a4   : > { %v3119_v23 = vmul.f32 %v8758_v51, %v8758_v51  ;;  %v3121_v24 = vmul.f32 %v8762_v48, %v8762_v48  ;;  %3643 = vmatpush2.bf16.msra.mxu1 %v7426_v18 }
 0x3a5   : > { %v3123_v46 = vadd.f32 %v3122_v59, %v3118_v20  ;;  %v3131_v28 = vadd.f32 %v3117_v36, %v3115_v52  ;;  %v7429_v20 = vld [vmem:[#allocation8 + $0xd0] ss:$8 sps:$4 sm:$0xff]   ;;  %v7434_v59 = vld [vmem:[#allocation8 + $0x1d4] ss:$8 sps:$4 sm:$0xff]   ;;  %v7437_v36 = vld [vmem:[#allocation8 + $0xc4] ss:$8 sps:$4 sm:$0xff]  }
 0x3a6   : > { %v7432_v52 = vld [vmem:[#allocation8 + $0x1d0] ss:$8 sps:$4 sm:$0xff]   ;;  %3644 = vmatprep.subr.bf16.mxu1 %v7434_v59 }
 0x3a7   : > { %v3124_v35 = vadd.f32 %v3123_v46, %v3120_v21  ;;  %v3132_v15 = vadd.f32 %v3131_v28, %v3119_v23  ;;  %v7435_v21 = vld [vmem:[#allocation8 + $0xc0] ss:$8 sps:$4 sm:$0xff]   ;;  %v7440_v46 = vld [vmem:[#allocation8 + $0x1c4] ss:$8 sps:$4 sm:$0xff]   ;;  %v7443_v28 = vld [vmem:[#allocation8 + $0xb4] ss:$8 sps:$4 sm:$0xff]  }
 0x3a8   : > { %3645 = vmatpush2.bf16.msra.mxu1 %v7432_v52  ;;  %v7438_v23 = vld [vmem:[#allocation8 + $0x1c0] ss:$8 sps:$4 sm:$0xff]  }
 0x3a9   : > { %v3125_v37 = vrot.slane %v3124_v35, 4  ;;  %v3133_v2 = vadd.f32 %v3132_v15, %v3121_v24  ;;  %3646 = vmatprep.subr.bf16.mxu1 %v7440_v46  ;;  %v7446_v24 = vld [vmem:[#allocation8 + $0x1b4] ss:$8 sps:$4 sm:$0xff]   ;;  %v7444_v15 = vld [vmem:[#allocation8 + $0x1b0] ss:$8 sps:$4 sm:$0xff]  }
 0x3ab   : > { %v3126_v39 = vadd.f32 %v3125_v37, %v3124_v35  ;;  %v3134_v9 = vrot.slane %v3133_v2, 4  ;;  %v7441_v35 = vld [vmem:[#allocation8 + $0xb0] ss:$8 sps:$4 sm:$0xff]   ;;  %v7449_v37 = vld [vmem:[#allocation8 + $0xa4] ss:$8 sps:$4 sm:$0xff]  }
 0x3ac   : > { %3647 = vmatpush2.bf16.msra.mxu1 %v7438_v23 }
 0x3ad   : > { %v3127_v17 = vrot.slane %v3126_v39, 2  ;;  %v3135_v42 = vadd.f32 %v3134_v9, %v3133_v2  ;;  %3648 = vmatprep.subr.bf16.mxu1 %v7446_v24  ;;  %v7447_v2 = vld [vmem:[#allocation8 + $0xa0] ss:$8 sps:$4 sm:$0xff]  }
 0x3ae   : > { %v7450_v9 = vld [vmem:[#allocation8 + $0x1a0] ss:$8 sps:$4 sm:$0xff]  }
 0x3af   : > { %v3128_v56 = vadd.f32 %v3127_v17, %v3126_v39  ;;  %v3136_v27 = vrot.slane %v3135_v42, 2  ;;  %v7452_v39 = vld [vmem:[#allocation8 + $0x1a4] ss:$8 sps:$4 sm:$0xff]   ;;  %v7453_v17 = vld [vmem:[#allocation8 + $0x90] ss:$8 sps:$4 sm:$0xff]  }
 0x3b0   : > { %3649 = vmatpush2.bf16.msra.mxu1 %v7444_v15 }
 0x3b1   : > { %v3137_v47 = vadd.f32 %v3136_v27, %v3135_v42  ;;  %v3129_v29 = vrot.slane %v3128_v56, 1  ;;  %v7455_v42 = vld [vmem:[#allocation8 + $0x94] ss:$8 sps:$4 sm:$0xff]   ;;  %3650 = vmatprep.subr.bf16.mxu1 %v7452_v39  ;;  %v7456_v27 = vld [vmem:[#allocation8 + $0x190] ss:$8 sps:$4 sm:$0xff]  }
 0x3b3   : > { %v3138_v54 = vrot.slane %v3137_v47, 1  ;;  %v3130_v41 = vadd.f32 %v3129_v29, %v3128_v56  ;;  %v7458_v56 = vld [vmem:[#allocation8 + $0x194] ss:$8 sps:$4 sm:$0xff]   ;;  %v7459_v29 = vld [vmem:[#allocation8 + $0x80] ss:$8 sps:$4 sm:$0xff]  }
 0x3b4   : > { %3651 = vmatpush2.bf16.msra.mxu1 %v7450_v9 }
 0x3b5   : > { %v3139_v25 = vadd.f32 %v3138_v54, %v3137_v47  ;;  %v7461_v47 = vld [vmem:[#allocation8 + $0x84] ss:$8 sps:$4 sm:$0xff]   ;;  %3652 = vmatprep.subr.bf16.mxu1 %v7458_v56  ;;  %v3321_v56 = vld [vmem:[#allocation2 + $0x10] sm:$0x3] }
 0x3b6   : > { %v7464_v54 = vld [vmem:[#allocation8 + $0x184] ss:$8 sps:$4 sm:$0xff]  }
 0x3b7   : > { %3204 = vmatprep.mubr.f32.mxu0 %v3139_v25  ;;  %v7462_v25 = vld [vmem:[#allocation8 + $0x180] ss:$8 sps:$4 sm:$0xff]  }
 0x3b8   : > { %3205 = vmatmul.mubr.f32.vlgmr.msra.gmra.mxu0 %v3130_v41  ;;  %3653 = vmatpush2.bf16.msra.mxu1 %v7456_v27  ;;  %v7470_v41 = vld [vmem:[#allocation8 + $0x274] ss:$8 sps:$4 sm:$0xff]  }
 0x3b9   : > { %3838 = vmatpush1.bf16.msra.mxu0 %v7369_v32  ;;  %3654 = vmatprep.subr.bf16.mxu1 %v7464_v54  ;;  %v7467_v32 = vld [vmem:[#allocation8 + $0x374] ss:$8 sps:$4 sm:$0xff]  }
 0x3ba   : > { %3839 = vmatprep.subr.bf16.mxu0 %v7377_v60 }
 0x3bc   : > { %3655 = vmatpush2.bf16.msra.mxu1 %v7462_v25  ;;  %v3322_v25 = vld [vmem:[#allocation2 + $0x48] sm:$0x3] }
 0x3bd   : > { %3840 = vmatpush1.bf16.msra.mxu0 %v7375_v30  ;;  %4119 = vmatprep.subr.bf16.mxu1 %v7470_v41  ;;  %v3396_v41 = vrot.slane %v3321_v56, 1 }
 0x3be   : > { %3841 = vmatprep.subr.bf16.mxu0 %v7383_v43 }
 0x3c1   : > { %3842 = vmatpush1.bf16.msra.mxu0 %v7381_v50 }
 0x3c2   : > { %3843 = vmatprep.subr.bf16.mxu0 %v7389_v55 }
 0x3c5   : > { %3844 = vmatpush1.bf16.msra.mxu0 %v7387_v3 }
 0x3c6   : > { %3845 = vmatprep.subr.bf16.mxu0 %v7395_v31  ;;  %v3004_v31 = vld [vmem:[#allocation11] sm:$0x3] }
 0x3c7   : > { %v3237_v34 = vrot.slane %v3004_v31, %v8732_v13 }
 0x3c9   : > { %3846 = vmatpush1.bf16.msra.mxu0 %v7393_v53  ;;  %v3005_v53 = vld [vmem:[#allocation12] sm:$0x3] }
 0x3ca   : > { %3847 = vmatprep.subr.bf16.mxu0 %v7401_v16 }
 0x3cd   : > { %3848 = vmatpush1.bf16.msra.mxu0 %v7399_v62  ;;  %v8775_v62 = vsub.s32 1, %v8729_v40 }
 0x3ce   : > { %3849 = vmatprep.subr.bf16.mxu0 %v7407_v1 }
 0x3cf   : > { %9404 = vst [vmem:[#allocation25_spill] sm:$0xff] %v8775_v62  ;;  %v3241_v40 = vrot.slane %v3004_v31, %v8775_v62  ;;  %v3260_v7 = vrot.slane %v3005_v53, %v8775_v62  ;;  %v9170_v62 = vld [vmem:[#allocation9 + $0x150] sm:$0xff] }
 0x3d0   : > { %9407 = vst [vmem:[#allocation28_spill] sm:$0xff] %v9170_v62 }
 0x3d1   : > { %3850 = vmatpush1.bf16.msra.mxu0 %v7405_v4  ;;  %v3256_v4 = vrot.slane %v3005_v53, %v8732_v13  ;;  %v3891_v53 = vrot.slane %v3321_v56, 2 }
 0x3d2   : > { %3851 = vmatprep.subr.bf16.mxu0 %v7413_v58 }
 0x3d5   : > { %3852 = vmatpush1.bf16.msra.mxu0 %v7411_v63 }
 0x3d6   : > { %3853 = vmatprep.subr.bf16.mxu0 %v7419_v8 }
 0x3d9   : > { %3854 = vmatpush2.bf16.msra.mxu0 %v7417_v57 }
 0x3da   : > { %3855 = vmatprep.subr.bf16.mxu0 %v7425_v44 }
 0x3dd   : > { %3856 = vmatpush2.bf16.msra.mxu0 %v7423_v38 }
 0x3de   : > { %3857 = vmatprep.subr.bf16.mxu0 %v7431_v45 }
 0x3e1   : > { %3858 = vmatpush2.bf16.msra.mxu0 %v7429_v20 }
 0x3e2   : > { %3859 = vmatprep.subr.bf16.mxu0 %v7437_v36 }
 0x3e5   : > { %3860 = vmatpush2.bf16.msra.mxu0 %v7435_v21 }
 0x3e6   : > { %3861 = vmatprep.subr.bf16.mxu0 %v7443_v28 }
 0x3e9   : > { %3862 = vmatpush2.bf16.msra.mxu0 %v7441_v35 }
 0x3ea   : > { %3863 = vmatprep.subr.bf16.mxu0 %v7449_v37 }
 0x3ed   : > { %3864 = vmatpush2.bf16.msra.mxu0 %v7447_v2 }
 0x3ee   : > { %3865 = vmatprep.subr.bf16.mxu0 %v7455_v42  ;;  %v8793_v42 = vld [vmem:[#allocation2 + $0xb0] sm:$0xff] }
 0x3ef   : > { %v3890_v31 = vrot.slane %v8793_v42, 2 }
 0x3f1   : > { %3866 = vmatpush2.bf16.msra.mxu0 %v7453_v17  ;;  %v8791_v17 = vld [vmem:[#allocation2] sm:$0xff] }
 0x3f2   : > { %3867 = vmatprep.subr.bf16.mxu0 %v7461_v47 }
 0x3f5   : > { %3868 = vmatpush2.bf16.msra.mxu0 %v7459_v29 }
 0x3f6   : > { %4377 = vmatprep.subr.bf16.mxu0 %v7467_v32  ;;  %v3395_v32 = vrot.slane %v8793_v42, 1 }
 0x478   : > { %v3206_v60 = vpop.f32.mrf.mxu0 }
 0x479   : > { %v3211_v30 = vmul.f32 0.001953125, %v3206_v60  ;;  %v3339_v60 = vld [vmem:[#allocation2 + $0x80] sm:$0xff] }
 0x47a   : > { %v3208_v43 = vpop.f32.mrf.mxu0 }
 0x47b   : > { %v3213_v50 = vadd.f32 1e-05, %v3211_v30  ;;  %v3212_v55 = vmul.f32 0.001953125, %v3208_v43  ;;  %v3341_v30 = vld [vmem:[#allocation2 + $0x20] sm:$0x3]  ;;  %v3398_v43 = vrot.slane %v8791_v17, 1 }
 0x47d   : > { %7801 = vrsqrt.f32 %v3213_v50  ;;  %v3214_v3 = vadd.f32 1e-05, %v3212_v55  ;;  %v3893_v50 = vrot.slane %v8791_v17, 2  ;;  %v3399_v55 = vrot.slane %v3322_v25, 1 }
 0x47f   : > { %7803 = vrsqrt.f32 %v3214_v3  ;;  %v3894_v3 = vrot.slane %v3322_v25, 2 }
 0x48a   : > { %v7802_v16 = vpop.eup %7801 }
 0x48b   : > { %v3220_v49 = vrot.slane %v7802_v16, %v8732_v13  ;;  %v8799_v16 = vld [vmem:[#allocation2 + $0xb8] sm:$0xff] }
 0x48c   : > { %v7804_v1 = vpop.eup %7803 }
 0x48d   : > { %v3225_v6 = vmul.f32 %v3220_v49, %v8736_v10  ;;  %v3227_v5 = vmul.f32 %v3220_v49, %v8739_v12  ;;  %v3229_v58 = vmul.f32 %v3220_v49, %v8742_v61  ;;  %v3231_v63 = vmul.f32 %v3220_v49, %v8745_v0 }
 0x48e   : > { %v3224_v11 = vrot.slane %v7804_v1, %v8732_v13  ;;  %v5498_v49 = vrot.slane %v3339_v60, 2  ;;  %v9173_v13 = vld [vmem:[#allocation9 + $0x148] sm:$0xff] }
 0x48f   : > { %v3244_v8 = vmul.f32 %v3237_v34, %v3225_v6  ;;  %v3246_v57 = vmul.f32 %v3237_v34, %v3227_v5  ;;  %v3248_v14 = vmul.f32 %v3237_v34, %v3229_v58  ;;  %v3250_v33 = vmul.f32 %v3237_v34, %v3231_v63  ;;  %9408 = vst [vmem:[#allocation29_spill] sm:$0xff] %v9173_v13 }
 0x490   : > { %v3226_v44 = vmul.f32 %v3224_v11, %v8752_v22  ;;  %v3228_v10 = vmul.f32 %v3224_v11, %v8755_v19  ;;  %v3230_v12 = vmul.f32 %v3224_v11, %v8758_v51  ;;  %v3232_v61 = vmul.f32 %v3224_v11, %v8762_v48 }
 0x491   : > { %v3263_v38 = vadd.f32 %v3256_v4, %v3244_v8  ;;  %v3265_v0 = vadd.f32 %v3256_v4, %v3246_v57  ;;  %v3267_v26 = vadd.f32 %v3256_v4, %v3248_v14  ;;  %v3269_v18 = vadd.f32 %v3256_v4, %v3250_v33  ;;  %v7465_v57 = vld [vmem:[#allocation8 + $0x370] ss:$8 sps:$4 sm:$0xff]  }
 0x492   : > { %v3245_v45 = vmul.f32 %v3241_v40, %v3226_v44  ;;  %v3247_v20 = vmul.f32 %v3241_v40, %v3228_v10  ;;  %v3249_v59 = vmul.f32 %v3241_v40, %v3230_v12  ;;  %v3251_v52 = vmul.f32 %v3241_v40, %v3232_v61 }
 0x493   : > { %v3271_v36 = vmax.f32 %v3263_v38, 0.0  ;;  %v3273_v21 = vmax.f32 %v3265_v0, 0.0  ;;  %v3275_v46 = vmax.f32 %v3267_v26, 0.0  ;;  %v3277_v23 = vmax.f32 %v3269_v18, 0.0 }
 0x494   : > { %v3264_v28 = vadd.f32 %v3260_v7, %v3245_v45  ;;  %v3266_v22 = vadd.f32 %v3260_v7, %v3247_v20  ;;  %v3268_v35 = vadd.f32 %v3260_v7, %v3249_v59  ;;  %v3270_v19 = vadd.f32 %v3260_v7, %v3251_v52  ;;  %v7473_v20 = vld [vmem:[#allocation8 + $0x364] ss:$8 sps:$4 sm:$0xff]   ;;  %v8834_v59 = vld [vmem:[#allocation2 + $0x8] sm:$0x3] }
 0x495   : > { %v3287_v24 = vrot.slane %v3271_v36, 7  ;;  %v3289_v51 = vrot.slane %v3273_v21, 7  ;;  %v3291_v15 = vrot.slane %v3275_v46, 7  ;;  %v3293_v48 = vrot.slane %v3277_v23, 7 }
 0x496   : > { %v3272_v37 = vmax.f32 %v3264_v28, 0.0  ;;  %v3274_v2 = vmax.f32 %v3266_v22, 0.0  ;;  %v3276_v39 = vmax.f32 %v3268_v35, 0.0  ;;  %v3278_v9 = vmax.f32 %v3270_v19, 0.0 }
 0x497   : > { %3303 = vst [vmem:[#allocation2 + $0x60] sm:$0xfe] %v3287_v24  ;;  %3305 = vst [vmem:[#allocation2 + $0x40] sm:$0x1] %v3287_v24  ;;  %v5499_v34 = vrot.slane %v3341_v30, 2  ;;  %v8804_v6 = vsel %vm635_vm1, %v3395_v32, %v3396_v41  ;;  %v3400_v58 = vsel %vm635_vm1, %v3398_v43, %v3399_v55  ;;  %v8815_v8 = vsel %vm1131_vm0, %v3893_v50, %v3894_v3 }
 0x498   : > { %3307 = vst [vmem:[#allocation2 + $0x88] sm:$0xfe] %v3289_v51  ;;  %3309 = vst [vmem:[#allocation2 + $0x18] sm:$0x1] %v3289_v51  ;;  %v3288_v27 = vrot.slane %v3272_v37, 7  ;;  %v3290_v47 = vrot.slane %v3274_v2, 7  ;;  %v8822_v10 = vsel %vm1131_vm0, %v3890_v31, %v3891_v53 }
 0x499   : > { %3311 = vst [vmem:[#allocation2 + $0x38] sm:$0xfe] %v3291_v15  ;;  %3313 = vst [vmem:[#allocation2 + $0x70] sm:$0x1] %v3291_v15  ;;  %v3292_v29 = vrot.slane %v3276_v39, 7  ;;  %v3294_v54 = vrot.slane %v3278_v9, 7  ;;  %v8837_v52 = vsel %vm1131_vm0, %v5498_v49, %v5499_v34 }
 0x49a   : > { %3315 = vst [vmem:[#allocation2 + $0xa8] sm:$0xfe] %v3293_v48  ;;  %3317 = vst [vmem:[#allocation2 + $0x30] sm:$0x1] %v3293_v48  ;;  %v5501_v12 = vrot.slane %v8799_v16, 2  ;;  %v5502_v32 = vrot.slane %v8834_v59, 2 }
 0x49b   : > { %3304 = vst [vmem:[#allocation2 + $0x28] sm:$0xfe] %v3288_v27  ;;  %3306 = vst [vmem:[#allocation2 + $0x78] sm:$0x1] %v3288_v27  ;;  %v7476_v41 = vld [vmem:[#allocation8 + $0x264] ss:$8 sps:$4 sm:$0xff]  }
 0x49c   : > { %3308 = vst [vmem:[#allocation2 + $0x90] sm:$0xfe] %v3290_v47  ;;  %3310 = vst [vmem:[#allocation2 + $0x98] sm:$0x1] %v3290_v47  ;;  %v7468_v47 = vld [vmem:[#allocation8 + $0x270] ss:$8 sps:$4 sm:$0xff]  }
 0x49d   : > { %3312 = vst [vmem:[#allocation2 + $0x50] sm:$0xfe] %v3292_v29  ;;  %3314 = vst [vmem:[#allocation2 + $0xa0] sm:$0x1] %v3292_v29  ;;  %v7479_v3 = vld [vmem:[#allocation8 + $0x354] ss:$8 sps:$4 sm:$0xff]  }
 0x49e   : > { %3316 = vst [vmem:[#allocation2 + $0x68] sm:$0xfe] %v3294_v54  ;;  %3318 = vst [vmem:[#allocation2 + $0x58] sm:$0x1] %v3294_v54  ;;  %v8801_v1 = vld [vmem:[#allocation2 + $0x60] sm:$0xff] }
 0x49f   : > { %v3325_v4 = vld [vmem:[#allocation2 + $0x40] sm:$0x3]  ;;  %v8806_v5 = vld [vmem:[#allocation2 + $0x88] sm:$0xff]  ;;  %v3401_v63 = vrot.slane %v8801_v1, 1  ;;  %v8812_v7 = vld [vmem:[#allocation2 + $0x18] sm:$0x3]  ;;  %v3343_v38 = vpack.c.bf16 %v8801_v1, %v8793_v42 }
 0x4a0   : > { %v3402_v11 = vrot.slane %v3325_v4, 1  ;;  %v8810_v40 = vld [vmem:[#allocation2 + $0x38] sm:$0xff]  ;;  %v8817_v14 = vld [vmem:[#allocation2 + $0x70] sm:$0x3]  ;;  %v3407_v33 = vrot.slane %v8806_v5, 1  ;;  %v3408_v44 = vrot.slane %v8812_v7, 1 }
 0x4a1   : > { %v3896_v0 = vrot.slane %v8801_v1, 2  ;;  %v3897_v45 = vrot.slane %v3325_v4, 2  ;;  %v8847_v22 = vpack.c.bf16 %v8810_v40, %v8806_v5  ;;  %v3413_v39 = vrot.slane %v8810_v40, 1  ;;  %v7471_v54 = vld [vmem:[#allocation8 + $0x360] ss:$8 sps:$4 sm:$0xff]  }
 0x4a2   : > { %v8825_v61 = vld [vmem:[#allocation2 + $0x28] sm:$0xff]  ;;  %v3326_v21 = vld [vmem:[#allocation2 + $0x78] sm:$0x3]  ;;  %v8843_v23 = vsel %vm635_vm1, %v3401_v63, %v3402_v11  ;;  %v8856_v2 = vsel %vm635_vm1, %v3407_v33, %v3408_v44  ;;  %v3414_v42 = vrot.slane %v8817_v14, 1  ;;  %v3902_v63 = vrot.slane %v8806_v5, 2 }
 0x4a3   : > { %v8830_v26 = vld [vmem:[#allocation2 + $0x90] sm:$0xff]  ;;  %v3344_v36 = vpack.c.bf16 %v8825_v61, %v8791_v17  ;;  %v3404_v46 = vrot.slane %v8825_v61, 1  ;;  %v3330_v28 = vld [vmem:[#allocation2 + $0x98] sm:$0x3]  ;;  %v3405_v35 = vrot.slane %v3326_v21, 1  ;;  %v4450_v56 = vpack.c.bf16 %v8856_v2, %v8843_v23 }
 0x4a4   : > { %v8832_v18 = vld [vmem:[#allocation2 + $0x50] sm:$0xff]  ;;  %v3334_v19 = vld [vmem:[#allocation2 + $0xa0] sm:$0x3]  ;;  %v3410_v24 = vrot.slane %v8830_v26, 1  ;;  %v3411_v51 = vrot.slane %v3330_v28, 1  ;;  %v3427_v29 = vpack.c.bf16 %v8843_v23, %v8804_v6  ;;  %v3899_v60 = vrot.slane %v8825_v61, 2 }
 0x4a5   : > { %v3416_v15 = vrot.slane %v8832_v18, 1  ;;  %3869 = vmatprep.mubr.bf16.mxu0 %v3344_v36  ;;  %v8853_v48 = vpack.c.bf16 %v8832_v18, %v8830_v26  ;;  %v3417_v37 = vrot.slane %v3334_v19, 1  ;;  %v8860_v9 = vsel %vm635_vm1, %v3404_v46, %v3405_v35  ;;  %v8885_v31 = vld [vmem:[#allocation2 + $0x68] sm:$0xff]  ;;  %v3338_v11 = vld [vmem:[#allocation2 + $0x58] sm:$0x3] }
 0x4a6   : > { %3870 = vmatmul.mubr.bf16.vlgmr.msra.gmra.mxu0 %v3343_v38  ;;  %v8863_v17 = vsel %vm635_vm1, %v3410_v24, %v3411_v51  ;;  %v3428_v27 = vpack.c.bf16 %v8860_v9, %v3400_v58  ;;  %v3900_v30 = vrot.slane %v3326_v21, 2  ;;  %v8878_v43 = vsel %vm1131_vm0, %v3896_v0, %v3897_v45  ;;  %v7477_v0 = vld [vmem:[#allocation8 + $0x350] ss:$8 sps:$4 sm:$0xff]   ;;  %v8909_v36 = vld [vmem:[#allocation2 + $0xa8] sm:$0xff] }
 0x4a7   : > { %4378 = vmatpush1.bf16.msra.mxu0 %v7465_v57  ;;  %3879 = vmatprep.mubr.bf16.mxu0 %v8853_v48  ;;  %v8873_v25 = vsel %vm635_vm1, %v3416_v15, %v3417_v37  ;;  %v3905_v50 = vrot.slane %v8830_v26, 2  ;;  %v3922_v53 = vpack.c.bf16 %v8878_v43, %v8822_v10  ;;  %v3906_v49 = vrot.slane %v3330_v28, 2  ;;  %v7474_v57 = vld [vmem:[#allocation8 + $0x260] ss:$8 sps:$4 sm:$0xff]   ;;  %v7485_v46 = vld [vmem:[#allocation8 + $0x344] ss:$8 sps:$4 sm:$0xff]  }
 0x4a8   : > { %4379 = vmatprep.subr.bf16.mxu0 %v7473_v20  ;;  %3656 = vmatprep.mubr.bf16.mxu1 %v3428_v27  ;;  %v8883_v55 = vpack.c.bf16 %v8873_v25, %v8863_v17  ;;  %v3911_v34 = vrot.slane %v8832_v18, 2  ;;  %v4181_v4 = vpack.c.bf16 %v8830_v26, %v8825_v61  ;;  %v8893_v6 = vsel %vm635_vm1, %v3413_v39, %v3414_v42  ;;  %v7482_v26 = vld [vmem:[#allocation8 + $0x254] ss:$8 sps:$4 sm:$0xff]   ;;  %v3337_v24 = vld [vmem:[#allocation2 + $0x30] sm:$0x3] }
 0x4a9   : > { %3657 = vmatmul.mubr.bf16.vlgmr.msra.gmra.mxu1 %v3427_v29  ;;  %v3912_v58 = vrot.slane %v3334_v19, 2  ;;  %v8898_v33 = vsel %vm1131_vm0, %v3905_v50, %v3906_v49  ;;  %v3903_v44 = vrot.slane %v8812_v7, 2  ;;  %v3908_v38 = vrot.slane %v8810_v40, 2  ;;  %v7480_v42 = vld [vmem:[#allocation8 + $0x250] ss:$8 sps:$4 sm:$0xff]  }
 0x4aa   : > { %4120 = vmatpush1.bf16.msra.mxu1 %v7468_v47  ;;  %3666 = vmatprep.mubr.bf16.mxu1 %v8883_v55  ;;  %v3909_v61 = vrot.slane %v8817_v14, 2  ;;  %v8904_v45 = vsel %vm1131_vm0, %v3899_v60, %v3900_v30  ;;  %v4451_v21 = vpack.c.bf16 %v8863_v17, %v8860_v9  ;;  %v4711_v7 = vrot.slane %v8885_v31, 2  ;;  %v7483_v60 = vld [vmem:[#allocation8 + $0x340] ss:$8 sps:$4 sm:$0xff]   ;;  %v7488_v30 = vld [vmem:[#allocation8 + $0x244] ss:$8 sps:$4 sm:$0xff]  }
 0x4ab   : > { %4380 = vmatpush1.bf16.msra.mxu0 %v7471_v54  ;;  %4121 = vmatprep.subr.bf16.mxu1 %v7476_v41  ;;  %v8907_v20 = vsel %vm1131_vm0, %v3911_v34, %v3912_v58  ;;  %v8919_v28 = vsel %vm1131_vm0, %v3902_v63, %v3903_v44  ;;  %v4712_v19 = vrot.slane %v3338_v11, 2  ;;  %v4445_v37 = vrot.slane %v8885_v31, 1  ;;  %v7489_v44 = vld [vmem:[#allocation8 + $0x330] ss:$8 sps:$4 sm:$0xff]   ;;  %v7602_v17 = vld [vmem:[#allocation8 + $0x414] ss:$8 sps:$4 sm:$0xff]  }
 0x4ac   : > { %4381 = vmatprep.subr.bf16.mxu0 %v7479_v3  ;;  %v8916_v14 = vpack.c.bf16 %v8907_v20, %v8898_v33  ;;  %v8922_v35 = vsel %vm1131_vm0, %v3908_v38, %v3909_v61  ;;  %v4716_v15 = vpack.c.bf16 %v8919_v28, %v8878_v43  ;;  %v4446_v39 = vrot.slane %v3338_v11, 1  ;;  %v7494_v38 = vld [vmem:[#allocation8 + $0x234] ss:$8 sps:$4 sm:$0xff]   ;;  %v7497_v61 = vld [vmem:[#allocation8 + $0x324] ss:$8 sps:$4 sm:$0xff]  }
 0x4ad   : > { %v8927_v51 = vpack.c.bf16 %v8922_v35, %v8919_v28  ;;  %v8933_v27 = vsel %vm1131_vm0, %v4711_v7, %v4712_v19  ;;  %v4708_v47 = vrot.slane %v8909_v36, 2  ;;  %v4709_v29 = vrot.slane %v3337_v24, 2  ;;  %v7500_v7 = vld [vmem:[#allocation8 + $0x224] ss:$8 sps:$4 sm:$0xff]   ;;  %v7498_v19 = vld [vmem:[#allocation8 + $0x220] ss:$8 sps:$4 sm:$0xff]  }
 0x4ae   : > { %3880 = vmatmul.mubr.bf16.gmra.mxu0 %v8847_v22  ;;  %4122 = vmatpush1.bf16.msra.mxu1 %v7474_v57  ;;  %v8939_v54 = vsel %vm1131_vm0, %v5501_v12, %v5502_v32  ;;  %v8943_v41 = vpack.c.bf16 %v8893_v6, %v8856_v2  ;;  %v8946_v50 = vsel %vm635_vm1, %v4445_v37, %v4446_v39  ;;  %v4442_v3 = vrot.slane %v8909_v36, 1  ;;  %v7491_v12 = vld [vmem:[#allocation8 + $0x334] ss:$8 sps:$4 sm:$0xff]   ;;  %v7509_v39 = vld [vmem:[#allocation8 + $0x304] ss:$8 sps:$4 sm:$0xff]  }
 0x4af   : > { %4409 = vmatprep.mubr.bf16.mxu0 %v4181_v4  ;;  %4382 = vmatpush1.bf16.msra.mxu0 %v7477_v0  ;;  %v4443_v49 = vrot.slane %v3337_v24, 1  ;;  %v3923_v34 = vpack.c.bf16 %v8904_v45, %v8815_v8  ;;  %v4453_v32 = vpack.c.bf16 %v8946_v50, %v8873_v25  ;;  %v8954_v4 = vsel %vm1131_vm0, %v4708_v47, %v4709_v29  ;;  %v7486_v8 = vld [vmem:[#allocation8 + $0x240] ss:$8 sps:$4 sm:$0xff]   ;;  %v7492_v0 = vld [vmem:[#allocation8 + $0x230] ss:$8 sps:$4 sm:$0xff]  }
 0x4b0   : > { %4123 = vmatprep.subr.bf16.mxu1 %v7482_v26  ;;  %4383 = vmatprep.subr.bf16.mxu0 %v7485_v46  ;;  %v7495_v26 = vld [vmem:[#allocation8 + $0x320] ss:$8 sps:$4 sm:$0xff]   ;;  %v7503_v46 = vld [vmem:[#allocation8 + $0x314] ss:$8 sps:$4 sm:$0xff]   ;;  %v7501_v24 = vld [vmem:[#allocation8 + $0x310] ss:$8 sps:$4 sm:$0xff]   ;;  %v4718_v28 = vpack.c.bf16 %v8954_v4, %v8922_v35 }
 0x4b1   : > { %3667 = vmatmul.mubr.bf16.gmra.mxu1 %v8943_v41  ;;  %v8958_v58 = vsel %vm635_vm1, %v4442_v3, %v4443_v49  ;;  %v7506_v37 = vld [vmem:[#allocation8 + $0x214] ss:$8 sps:$4 sm:$0xff]   ;;  %v7507_v47 = vld [vmem:[#allocation8 + $0x300] ss:$8 sps:$4 sm:$0xff]   ;;  %v7512_v29 = vld [vmem:[#allocation8 + $0x204] ss:$8 sps:$4 sm:$0xff]  }
 0x4b2   : > { %4124 = vmatpush1.bf16.msra.mxu1 %v7480_v42  ;;  %4151 = vmatprep.mubr.bf16.mxu1 %v3923_v34  ;;  %v4452_v57 = vpack.c.bf16 %v8958_v58, %v8893_v6  ;;  %v7504_v42 = vld [vmem:[#allocation8 + $0x210] ss:$8 sps:$4 sm:$0xff]   ;;  %v7518_v49 = vld [vmem:[#allocation8 + $0x2f4] ss:$8 sps:$4 sm:$0xff]   ;;  %v7521_v34 = vld [vmem:[#allocation8 + $0x3e4] ss:$8 sps:$4 sm:$0xff]  }
 0x4b3   : > { %4384 = vmatpush1.bf16.msra.mxu0 %v7483_v60  ;;  %4125 = vmatprep.subr.bf16.mxu1 %v7488_v30  ;;  %v7515_v60 = vld [vmem:[#allocation8 + $0x3f4] ss:$8 sps:$4 sm:$0xff]   ;;  %v7510_v30 = vld [vmem:[#allocation8 + $0x200] ss:$8 sps:$4 sm:$0xff]   ;;  %v7513_v3 = vld [vmem:[#allocation8 + $0x3f0] ss:$8 sps:$4 sm:$0xff]  }
 0x4b4   : > { %4385 = vmatprep.subr.bf16.mxu0 %v7491_v12  ;;  %v7516_v12 = vld [vmem:[#allocation8 + $0x2f0] ss:$8 sps:$4 sm:$0xff]   ;;  %v7675_v23 = vld [vmem:[#allocation8 + $0x740] ss:$8 sps:$4 sm:$0xff]   ;;  %v7680_v2 = vld [vmem:[#allocation8 + $0x644] ss:$8 sps:$4 sm:$0xff]  }
 0x4b5   : > { %v7576_v10 = vld [vmem:[#allocation8 + $0x450] ss:$8 sps:$4 sm:$0xff]   ;;  %v7678_v25 = vld [vmem:[#allocation8 + $0x640] ss:$8 sps:$4 sm:$0xff]  }
 0x4b6   : > { %4126 = vmatpush1.bf16.msra.mxu1 %v7486_v8  ;;  %v7519_v8 = vld [vmem:[#allocation8 + $0x3e0] ss:$8 sps:$4 sm:$0xff]   ;;  %v7597_v9 = vld [vmem:[#allocation8 + $0x510] ss:$8 sps:$4 sm:$0xff]  }
 0x4b7   : > { %4386 = vmatpush1.bf16.msra.mxu0 %v7489_v44  ;;  %4127 = vmatprep.subr.bf16.mxu1 %v7494_v38  ;;  %v7524_v44 = vld [vmem:[#allocation8 + $0x2e4] ss:$8 sps:$4 sm:$0xff]   ;;  %v7527_v38 = vld [vmem:[#allocation8 + $0x3d4] ss:$8 sps:$4 sm:$0xff]   ;;  %v7669_v43 = vld [vmem:[#allocation8 + $0x750] ss:$8 sps:$4 sm:$0xff]  }
 0x4b8   : > { %4387 = vmatprep.subr.bf16.mxu0 %v7497_v61  ;;  %v7522_v61 = vld [vmem:[#allocation8 + $0x2e0] ss:$8 sps:$4 sm:$0xff]   ;;  %v7681_v35 = vld [vmem:[#allocation8 + $0x730] ss:$8 sps:$4 sm:$0xff]  }
 0x4b9   : > { %v7690_v6 = vld [vmem:[#allocation8 + $0x620] ss:$8 sps:$4 sm:$0xff]   ;;  %v9167_v63 = vld [vmem:[#allocation9 + $0x158] sm:$0xff] }
 0x4ba   : > { %4128 = vmatpush1.bf16.msra.mxu1 %v7492_v0  ;;  %v7525_v0 = vld [vmem:[#allocation8 + $0x3d0] ss:$8 sps:$4 sm:$0xff]   ;;  %v9164_v11 = vld [vmem:[#allocation9 + $0x160] sm:$0xff] }
 0x4bb   : > { %4388 = vmatpush1.bf16.msra.mxu0 %v7495_v26  ;;  %4129 = vmatprep.subr.bf16.mxu1 %v7500_v7  ;;  %v7530_v26 = vld [vmem:[#allocation8 + $0x2d4] ss:$8 sps:$4 sm:$0xff]   ;;  %v7533_v7 = vld [vmem:[#allocation8 + $0x3c4] ss:$8 sps:$4 sm:$0xff]   ;;  %9406 = vst [vmem:[#allocation27_spill] sm:$0xff] %v9164_v11 }
 0x4bc   : > { %4389 = vmatprep.subr.bf16.mxu0 %v7503_v46  ;;  %v7528_v46 = vld [vmem:[#allocation8 + $0x2d0] ss:$8 sps:$4 sm:$0xff]  }
 0x4be   : > { %4130 = vmatpush1.bf16.msra.mxu1 %v7498_v19  ;;  %v7531_v19 = vld [vmem:[#allocation8 + $0x3c0] ss:$8 sps:$4 sm:$0xff]  }
 0x4bf   : > { %4390 = vmatpush1.bf16.msra.mxu0 %v7501_v24  ;;  %4131 = vmatprep.subr.bf16.mxu1 %v7506_v37  ;;  %v7536_v24 = vld [vmem:[#allocation8 + $0x2c4] ss:$8 sps:$4 sm:$0xff]   ;;  %v7539_v37 = vld [vmem:[#allocation8 + $0x3b4] ss:$8 sps:$4 sm:$0xff]  }
 0x4c0   : > { %4391 = vmatprep.subr.bf16.mxu0 %v7509_v39  ;;  %v7534_v39 = vld [vmem:[#allocation8 + $0x2c0] ss:$8 sps:$4 sm:$0xff]  }
 0x4c2   : > { %4132 = vmatpush1.bf16.msra.mxu1 %v7504_v42  ;;  %v7537_v42 = vld [vmem:[#allocation8 + $0x3b0] ss:$8 sps:$4 sm:$0xff]  }
 0x4c3   : > { %4392 = vmatpush1.bf16.msra.mxu0 %v7507_v47  ;;  %4133 = vmatprep.subr.bf16.mxu1 %v7512_v29  ;;  %v7542_v47 = vld [vmem:[#allocation8 + $0x2b4] ss:$8 sps:$4 sm:$0xff]   ;;  %v7545_v29 = vld [vmem:[#allocation8 + $0x3a4] ss:$8 sps:$4 sm:$0xff]  }
 0x4c4   : > { %4393 = vmatprep.subr.bf16.mxu0 %v7515_v60  ;;  %v7540_v60 = vld [vmem:[#allocation8 + $0x2b0] ss:$8 sps:$4 sm:$0xff]  }
 0x4c6   : > { %4134 = vmatpush1.bf16.msra.mxu1 %v7510_v30  ;;  %v7543_v30 = vld [vmem:[#allocation8 + $0x3a0] ss:$8 sps:$4 sm:$0xff]  }
 0x4c7   : > { %4394 = vmatpush2.bf16.msra.mxu0 %v7513_v3  ;;  %4135 = vmatprep.subr.bf16.mxu1 %v7518_v49  ;;  %v7548_v3 = vld [vmem:[#allocation8 + $0x2a4] ss:$8 sps:$4 sm:$0xff]   ;;  %v7551_v49 = vld [vmem:[#allocation8 + $0x394] ss:$8 sps:$4 sm:$0xff]  }
 0x4c8   : > { %4395 = vmatprep.subr.bf16.mxu0 %v7521_v34  ;;  %v7546_v34 = vld [vmem:[#allocation8 + $0x2a0] ss:$8 sps:$4 sm:$0xff]  }
 0x4ca   : > { %4136 = vmatpush2.bf16.msra.mxu1 %v7516_v12  ;;  %v7549_v12 = vld [vmem:[#allocation8 + $0x390] ss:$8 sps:$4 sm:$0xff]  }
 0x4cb   : > { %4396 = vmatpush2.bf16.msra.mxu0 %v7519_v8  ;;  %4137 = vmatprep.subr.bf16.mxu1 %v7524_v44  ;;  %v7554_v8 = vld [vmem:[#allocation8 + $0x294] ss:$8 sps:$4 sm:$0xff]   ;;  %v7557_v44 = vld [vmem:[#allocation8 + $0x384] ss:$8 sps:$4 sm:$0xff]  }
 0x4cc   : > { %4397 = vmatprep.subr.bf16.mxu0 %v7527_v38  ;;  %v7552_v38 = vld [vmem:[#allocation8 + $0x290] ss:$8 sps:$4 sm:$0xff]  }
 0x4ce   : > { %4138 = vmatpush2.bf16.msra.mxu1 %v7522_v61  ;;  %v7555_v61 = vld [vmem:[#allocation8 + $0x380] ss:$8 sps:$4 sm:$0xff]  }
 0x4cf   : > { %4398 = vmatpush2.bf16.msra.mxu0 %v7525_v0  ;;  %4139 = vmatprep.subr.bf16.mxu1 %v7530_v26  ;;  %v7560_v0 = vld [vmem:[#allocation8 + $0x284] ss:$8 sps:$4 sm:$0xff]   ;;  %v7563_v26 = vld [vmem:[#allocation8 + $0x574] ss:$8 sps:$4 sm:$0xff]  }
 0x4d0   : > { %4399 = vmatprep.subr.bf16.mxu0 %v7533_v7  ;;  %v7558_v7 = vld [vmem:[#allocation8 + $0x280] ss:$8 sps:$4 sm:$0xff]  }
 0x4d2   : > { %4140 = vmatpush2.bf16.msra.mxu1 %v7528_v46  ;;  %v7561_v46 = vld [vmem:[#allocation8 + $0x570] ss:$8 sps:$4 sm:$0xff]  }
 0x4d3   : > { %4400 = vmatpush2.bf16.msra.mxu0 %v7531_v19  ;;  %4141 = vmatprep.subr.bf16.mxu1 %v7536_v24  ;;  %v4180_v19 = vpack.c.bf16 %v8806_v5, %v8801_v1  ;;  %v7566_v24 = vld [vmem:[#allocation8 + $0x474] ss:$8 sps:$4 sm:$0xff]   ;;  %v7570_v1 = vld [vmem:[#allocation8 + $0x460] ss:$8 sps:$4 sm:$0xff]   ;;  %v7573_v5 = vld [vmem:[#allocation8 + $0x550] ss:$8 sps:$4 sm:$0xff]  }
 0x4d4   : > { %4401 = vmatprep.subr.bf16.mxu0 %v7539_v37  ;;  %v7569_v37 = vld [vmem:[#allocation8 + $0x564] ss:$8 sps:$4 sm:$0xff]  }
 0x4d6   : > { %4142 = vmatpush2.bf16.msra.mxu1 %v7534_v39  ;;  %v4183_v39 = vpack.c.bf16 %v8885_v31, %v8832_v18  ;;  %v4182_v18 = vpack.c.bf16 %v8909_v36, %v8810_v40  ;;  %v7582_v40 = vld [vmem:[#allocation8 + $0x440] ss:$8 sps:$4 sm:$0xff]  }
 0x4d7   : > { %4402 = vmatpush2.bf16.msra.mxu0 %v7537_v42  ;;  %4143 = vmatprep.subr.bf16.mxu1 %v7542_v47  ;;  %v7564_v42 = vld [vmem:[#allocation8 + $0x470] ss:$8 sps:$4 sm:$0xff]   ;;  %v7567_v47 = vld [vmem:[#allocation8 + $0x560] ss:$8 sps:$4 sm:$0xff]  }
 0x4d8   : > { %4403 = vmatprep.subr.bf16.mxu0 %v7545_v29  ;;  %v7572_v29 = vld [vmem:[#allocation8 + $0x464] ss:$8 sps:$4 sm:$0xff]  }
 0x4da   : > { %4144 = vmatpush2.bf16.msra.mxu1 %v7540_v60  ;;  %v7575_v60 = vld [vmem:[#allocation8 + $0x554] ss:$8 sps:$4 sm:$0xff]  }
 0x4db   : > { %4404 = vmatpush2.bf16.msra.mxu0 %v7543_v30  ;;  %4145 = vmatprep.subr.bf16.mxu1 %v7548_v3  ;;  %v7578_v30 = vld [vmem:[#allocation8 + $0x454] ss:$8 sps:$4 sm:$0xff]   ;;  %v7581_v3 = vld [vmem:[#allocation8 + $0x544] ss:$8 sps:$4 sm:$0xff]  }
 0x4dc   : > { %4405 = vmatprep.subr.bf16.mxu0 %v7551_v49  ;;  %v4717_v49 = vpack.c.bf16 %v8898_v33, %v8904_v45  ;;  %v7585_v33 = vld [vmem:[#allocation8 + $0x530] ss:$8 sps:$4 sm:$0xff]   ;;  %v7590_v45 = vld [vmem:[#allocation8 + $0x434] ss:$8 sps:$4 sm:$0xff]  }
 0x4de   : > { %4146 = vmatpush2.bf16.msra.mxu1 %v7546_v34  ;;  %v7584_v34 = vld [vmem:[#allocation8 + $0x444] ss:$8 sps:$4 sm:$0xff]  }
 0x4df   : > { %4406 = vmatpush2.bf16.msra.mxu0 %v7549_v12  ;;  %4147 = vmatprep.subr.bf16.mxu1 %v7554_v8  ;;  %v7587_v12 = vld [vmem:[#allocation8 + $0x534] ss:$8 sps:$4 sm:$0xff]   ;;  %v7593_v8 = vld [vmem:[#allocation8 + $0x524] ss:$8 sps:$4 sm:$0xff]  }
 0x4e0   : > { %4407 = vmatprep.subr.bf16.mxu0 %v7557_v44  ;;  %v7588_v44 = vld [vmem:[#allocation8 + $0x430] ss:$8 sps:$4 sm:$0xff]  }
 0x4e2   : > { %4148 = vmatpush2.bf16.msra.mxu1 %v7552_v38  ;;  %v7591_v38 = vld [vmem:[#allocation8 + $0x520] ss:$8 sps:$4 sm:$0xff]  }
 0x4e3   : > { %4408 = vmatpush2.bf16.msra.mxu0 %v7555_v61  ;;  %4149 = vmatprep.subr.bf16.mxu1 %v7560_v0  ;;  %v7596_v61 = vld [vmem:[#allocation8 + $0x424] ss:$8 sps:$4 sm:$0xff]   ;;  %v7599_v0 = vld [vmem:[#allocation8 + $0x514] ss:$8 sps:$4 sm:$0xff]  }
 0x4e4   : > { %4913 = vmatprep.subr.bf16.mxu0 %v7563_v26  ;;  %v7594_v26 = vld [vmem:[#allocation8 + $0x420] ss:$8 sps:$4 sm:$0xff]  }
 0x4e6   : > { %4150 = vmatpush2.bf16.msra.mxu1 %v7558_v7  ;;  %4410 = vmatmul.mubr.bf16.vlgmr.msra.gmra.mxu0 %v4180_v19  ;;  %v7600_v7 = vld [vmem:[#allocation8 + $0x410] ss:$8 sps:$4 sm:$0xff]   ;;  %v7608_v19 = vld [vmem:[#allocation8 + $0x404] ss:$8 sps:$4 sm:$0xff]  }
 0x4e7   : > { %4419 = vmatprep.mubr.bf16.mxu0 %v4183_v39  ;;  %4914 = vmatpush1.bf16.msra.mxu0 %v7561_v46  ;;  %v7603_v46 = vld [vmem:[#allocation8 + $0x500] ss:$8 sps:$4 sm:$0xff]   ;;  %v7609_v39 = vld [vmem:[#allocation8 + $0x5f0] ss:$8 sps:$4 sm:$0xff]  }
 0x4e8   : > { %4647 = vmatprep.subr.bf16.mxu1 %v7566_v24  ;;  %4915 = vmatprep.subr.bf16.mxu0 %v7569_v37  ;;  %v7611_v24 = vld [vmem:[#allocation8 + $0x5f4] ss:$8 sps:$4 sm:$0xff]   ;;  %v7606_v37 = vld [vmem:[#allocation8 + $0x400] ss:$8 sps:$4 sm:$0xff]  }
 0x4e9   : > { %4152 = vmatmul.mubr.bf16.vlgmr.msra.gmra.mxu1 %v3922_v53  ;;  %v7579_v53 = vld [vmem:[#allocation8 + $0x540] ss:$8 sps:$4 sm:$0xff]  }
 0x4ea   : > { %4161 = vmatprep.mubr.bf16.mxu1 %v8916_v14  ;;  %4648 = vmatpush1.bf16.msra.mxu1 %v7564_v42  ;;  %v7614_v42 = vld [vmem:[#allocation8 + $0x4f4] ss:$8 sps:$4 sm:$0xff]  }
 0x4eb   : > { %4916 = vmatpush1.bf16.msra.mxu0 %v7567_v47  ;;  %4649 = vmatprep.subr.bf16.mxu1 %v7572_v29  ;;  %v7617_v47 = vld [vmem:[#allocation8 + $0x5e4] ss:$8 sps:$4 sm:$0xff]   ;;  %v7612_v29 = vld [vmem:[#allocation8 + $0x4f0] ss:$8 sps:$4 sm:$0xff]  }
 0x4ec   : > { %4917 = vmatprep.subr.bf16.mxu0 %v7575_v60  ;;  %v7615_v60 = vld [vmem:[#allocation8 + $0x5e0] ss:$8 sps:$4 sm:$0xff]  }
 0x4ee   : > { %4420 = vmatmul.mubr.bf16.gmra.mxu0 %v4182_v18  ;;  %4650 = vmatpush1.bf16.msra.mxu1 %v7570_v1  ;;  %v7620_v1 = vld [vmem:[#allocation8 + $0x4e4] ss:$8 sps:$4 sm:$0xff]   ;;  %v7618_v18 = vld [vmem:[#allocation8 + $0x4e0] ss:$8 sps:$4 sm:$0xff]  }
 0x4ef   : > { %4918 = vmatpush1.bf16.msra.mxu0 %v7573_v5  ;;  %4945 = vmatprep.mubr.bf16.mxu0 %v4717_v49  ;;  %v7623_v5 = vld [vmem:[#allocation8 + $0x5d4] ss:$8 sps:$4 sm:$0xff]   ;;  %v7629_v49 = vld [vmem:[#allocation8 + $0x5c4] ss:$8 sps:$4 sm:$0xff]  }
 0x4f0   : > { %4651 = vmatprep.subr.bf16.mxu1 %v7578_v30  ;;  %4919 = vmatprep.subr.bf16.mxu0 %v7581_v3  ;;  %v7621_v30 = vld [vmem:[#allocation8 + $0x5d0] ss:$8 sps:$4 sm:$0xff]   ;;  %v7626_v3 = vld [vmem:[#allocation8 + $0x4d4] ss:$8 sps:$4 sm:$0xff]  }
 0x4f1   : > { %4162 = vmatmul.mubr.bf16.gmra.mxu1 %v8927_v51 }
 0x4f2   : > { %4652 = vmatpush1.bf16.msra.mxu1 %v7576_v10  ;;  %4679 = vmatprep.mubr.bf16.mxu1 %v4451_v21  ;;  %v7605_v21 = vld [vmem:[#allocation8 + $0x504] ss:$8 sps:$4 sm:$0xff]   ;;  %v7624_v10 = vld [vmem:[#allocation8 + $0x4d0] ss:$8 sps:$4 sm:$0xff]  }
 0x4f3   : > { %4920 = vmatpush1.bf16.msra.mxu0 %v7579_v53  ;;  %4653 = vmatprep.subr.bf16.mxu1 %v7584_v34  ;;  %v7627_v53 = vld [vmem:[#allocation8 + $0x5c0] ss:$8 sps:$4 sm:$0xff]   ;;  %v7632_v34 = vld [vmem:[#allocation8 + $0x4c4] ss:$8 sps:$4 sm:$0xff]  }
 0x4f4   : > { %4921 = vmatprep.subr.bf16.mxu0 %v7587_v12  ;;  %v7635_v12 = vld [vmem:[#allocation8 + $0x5b4] ss:$8 sps:$4 sm:$0xff]  }
 0x4f6   : > { %4654 = vmatpush1.bf16.msra.mxu1 %v7582_v40  ;;  %v7630_v40 = vld [vmem:[#allocation8 + $0x4c0] ss:$8 sps:$4 sm:$0xff]  }
 0x4f7   : > { %4922 = vmatpush1.bf16.msra.mxu0 %v7585_v33  ;;  %4655 = vmatprep.subr.bf16.mxu1 %v7590_v45  ;;  %v7633_v33 = vld [vmem:[#allocation8 + $0x5b0] ss:$8 sps:$4 sm:$0xff]   ;;  %v7638_v45 = vld [vmem:[#allocation8 + $0x4b4] ss:$8 sps:$4 sm:$0xff]  }
 0x4f8   : > { %4923 = vmatprep.subr.bf16.mxu0 %v7593_v8  ;;  %v7641_v8 = vld [vmem:[#allocation8 + $0x5a4] ss:$8 sps:$4 sm:$0xff]  }
 0x4fa   : > { %4656 = vmatpush1.bf16.msra.mxu1 %v7588_v44  ;;  %v7636_v44 = vld [vmem:[#allocation8 + $0x4b0] ss:$8 sps:$4 sm:$0xff]  }
 0x4fb   : > { %4924 = vmatpush1.bf16.msra.mxu0 %v7591_v38  ;;  %4657 = vmatprep.subr.bf16.mxu1 %v7596_v61  ;;  %v7639_v38 = vld [vmem:[#allocation8 + $0x5a0] ss:$8 sps:$4 sm:$0xff]   ;;  %v7644_v61 = vld [vmem:[#allocation8 + $0x4a4] ss:$8 sps:$4 sm:$0xff]  }
 0x4fc   : > { %4925 = vmatprep.subr.bf16.mxu0 %v7599_v0  ;;  %v7647_v0 = vld [vmem:[#allocation8 + $0x594] ss:$8 sps:$4 sm:$0xff]  }
 0x4fe   : > { %4658 = vmatpush1.bf16.msra.mxu1 %v7594_v26  ;;  %v7642_v26 = vld [vmem:[#allocation8 + $0x4a0] ss:$8 sps:$4 sm:$0xff]  }
 0x4ff   : > { %4926 = vmatpush1.bf16.msra.mxu0 %v7597_v9  ;;  %4659 = vmatprep.subr.bf16.mxu1 %v7602_v17  ;;  %v7645_v9 = vld [vmem:[#allocation8 + $0x590] ss:$8 sps:$4 sm:$0xff]   ;;  %v7650_v17 = vld [vmem:[#allocation8 + $0x494] ss:$8 sps:$4 sm:$0xff]  }
 0x500   : > { %4927 = vmatprep.subr.bf16.mxu0 %v7605_v21  ;;  %v7653_v21 = vld [vmem:[#allocation8 + $0x584] ss:$8 sps:$4 sm:$0xff]  }
 0x502   : > { %4660 = vmatpush1.bf16.msra.mxu1 %v7600_v7  ;;  %v7648_v7 = vld [vmem:[#allocation8 + $0x490] ss:$8 sps:$4 sm:$0xff]  }
 0x503   : > { %4928 = vmatpush1.bf16.msra.mxu0 %v7603_v46  ;;  %4661 = vmatprep.subr.bf16.mxu1 %v7608_v19  ;;  %v7651_v46 = vld [vmem:[#allocation8 + $0x580] ss:$8 sps:$4 sm:$0xff]   ;;  %v7656_v19 = vld [vmem:[#allocation8 + $0x484] ss:$8 sps:$4 sm:$0xff]  }
 0x504   : > { %4929 = vmatprep.subr.bf16.mxu0 %v7611_v24  ;;  %v7659_v24 = vld [vmem:[#allocation8 + $0x774] ss:$8 sps:$4 sm:$0xff]  }
 0x506   : > { %4662 = vmatpush1.bf16.msra.mxu1 %v7606_v37  ;;  %v7654_v37 = vld [vmem:[#allocation8 + $0x480] ss:$8 sps:$4 sm:$0xff]  }
 0x507   : > { %4930 = vmatpush2.bf16.msra.mxu0 %v7609_v39  ;;  %4663 = vmatprep.subr.bf16.mxu1 %v7614_v42  ;;  %v7657_v39 = vld [vmem:[#allocation8 + $0x770] ss:$8 sps:$4 sm:$0xff]   ;;  %v7662_v42 = vld [vmem:[#allocation8 + $0x674] ss:$8 sps:$4 sm:$0xff]  }
 0x508   : > { %4931 = vmatprep.subr.bf16.mxu0 %v7617_v47  ;;  %v7665_v47 = vld [vmem:[#allocation8 + $0x764] ss:$8 sps:$4 sm:$0xff]  }
 0x50a   : > { %4664 = vmatpush2.bf16.msra.mxu1 %v7612_v29  ;;  %v4719_v29 = vpack.c.bf16 %v8933_v27, %v8907_v20  ;;  %v7666_v20 = vld [vmem:[#allocation8 + $0x660] ss:$8 sps:$4 sm:$0xff]  }
 0x50b   : > { %4932 = vmatpush2.bf16.msra.mxu0 %v7615_v60  ;;  %4665 = vmatprep.subr.bf16.mxu1 %v7620_v1  ;;  %v7660_v60 = vld [vmem:[#allocation8 + $0x670] ss:$8 sps:$4 sm:$0xff]   ;;  %v7663_v1 = vld [vmem:[#allocation8 + $0x760] ss:$8 sps:$4 sm:$0xff]  }
 0x50c   : > { %4933 = vmatprep.subr.bf16.mxu0 %v7623_v5  ;;  %v7668_v5 = vld [vmem:[#allocation8 + $0x664] ss:$8 sps:$4 sm:$0xff]  }
 0x50e   : > { %4666 = vmatpush2.bf16.msra.mxu1 %v7618_v18  ;;  %v7671_v18 = vld [vmem:[#allocation8 + $0x754] ss:$8 sps:$4 sm:$0xff]  }
 0x50f   : > { %4934 = vmatpush2.bf16.msra.mxu0 %v7621_v30  ;;  %4667 = vmatprep.subr.bf16.mxu1 %v7626_v3  ;;  %v7677_v30 = vld [vmem:[#allocation8 + $0x744] ss:$8 sps:$4 sm:$0xff]   ;;  %v7672_v3 = vld [vmem:[#allocation8 + $0x650] ss:$8 sps:$4 sm:$0xff]  }
 0x510   : > { %4935 = vmatprep.subr.bf16.mxu0 %v7629_v49  ;;  %v7689_v49 = vld [vmem:[#allocation8 + $0x724] ss:$8 sps:$4 sm:$0xff]  }
 0x512   : > { %4668 = vmatpush2.bf16.msra.mxu1 %v7624_v10  ;;  %v7687_v10 = vld [vmem:[#allocation8 + $0x720] ss:$8 sps:$4 sm:$0xff]  }
 0x513   : > { %4936 = vmatpush2.bf16.msra.mxu0 %v7627_v53  ;;  %4669 = vmatprep.subr.bf16.mxu1 %v7632_v34  ;;  %v7692_v53 = vld [vmem:[#allocation8 + $0x624] ss:$8 sps:$4 sm:$0xff]   ;;  %v7695_v34 = vld [vmem:[#allocation8 + $0x714] ss:$8 sps:$4 sm:$0xff]  }
 0x514   : > { %4937 = vmatprep.subr.bf16.mxu0 %v7635_v12  ;;  %v7701_v12 = vld [vmem:[#allocation8 + $0x704] ss:$8 sps:$4 sm:$0xff]  }
 0x516   : > { %4670 = vmatpush2.bf16.msra.mxu1 %v7630_v40  ;;  %v7696_v40 = vld [vmem:[#allocation8 + $0x610] ss:$8 sps:$4 sm:$0xff]  }
 0x517   : > { %4938 = vmatpush2.bf16.msra.mxu0 %v7633_v33  ;;  %4671 = vmatprep.subr.bf16.mxu1 %v7638_v45  ;;  %v7699_v33 = vld [vmem:[#allocation8 + $0x700] ss:$8 sps:$4 sm:$0xff]   ;;  %v7704_v45 = vld [vmem:[#allocation8 + $0x604] ss:$8 sps:$4 sm:$0xff]  }
 0x518   : > { %4939 = vmatprep.subr.bf16.mxu0 %v7641_v8  ;;  %v7707_v8 = vld [vmem:[#allocation8 + $0x7f4] ss:$8 sps:$4 sm:$0xff]  }
 0x51a   : > { %4672 = vmatpush2.bf16.msra.mxu1 %v7636_v44  ;;  %v7702_v44 = vld [vmem:[#allocation8 + $0x600] ss:$8 sps:$4 sm:$0xff]  }
 0x51b   : > { %4940 = vmatpush2.bf16.msra.mxu0 %v7639_v38  ;;  %4673 = vmatprep.subr.bf16.mxu1 %v7644_v61  ;;  %v7705_v38 = vld [vmem:[#allocation8 + $0x7f0] ss:$8 sps:$4 sm:$0xff]   ;;  %v7710_v61 = vld [vmem:[#allocation8 + $0x6f4] ss:$8 sps:$4 sm:$0xff]  }
 0x51c   : > { %4941 = vmatprep.subr.bf16.mxu0 %v7647_v0  ;;  %v7713_v0 = vld [vmem:[#allocation8 + $0x7e4] ss:$8 sps:$4 sm:$0xff]  }
 0x51e   : > { %4674 = vmatpush2.bf16.msra.mxu1 %v7642_v26  ;;  %v7708_v26 = vld [vmem:[#allocation8 + $0x6f0] ss:$8 sps:$4 sm:$0xff]  }
 0x51f   : > { %4942 = vmatpush2.bf16.msra.mxu0 %v7645_v9  ;;  %4675 = vmatprep.subr.bf16.mxu1 %v7650_v17  ;;  %v7711_v9 = vld [vmem:[#allocation8 + $0x7e0] ss:$8 sps:$4 sm:$0xff]   ;;  %v7716_v17 = vld [vmem:[#allocation8 + $0x6e4] ss:$8 sps:$4 sm:$0xff]  }
 0x520   : > { %4943 = vmatprep.subr.bf16.mxu0 %v7653_v21  ;;  %v7719_v21 = vld [vmem:[#allocation8 + $0x7d4] ss:$8 sps:$4 sm:$0xff]  }
 0x522   : > { %4676 = vmatpush2.bf16.msra.mxu1 %v7648_v7  ;;  %v7714_v7 = vld [vmem:[#allocation8 + $0x6e0] ss:$8 sps:$4 sm:$0xff]  }
 0x523   : > { %4944 = vmatpush2.bf16.msra.mxu0 %v7651_v46  ;;  %4677 = vmatprep.subr.bf16.mxu1 %v7656_v19  ;;  %v7717_v46 = vld [vmem:[#allocation8 + $0x7d0] ss:$8 sps:$4 sm:$0xff]   ;;  %v7722_v19 = vld [vmem:[#allocation8 + $0x6d4] ss:$8 sps:$4 sm:$0xff]  }
 0x524   : > { %5437 = vmatprep.subr.bf16.mxu0 %v7659_v24  ;;  %v7725_v24 = vld [vmem:[#allocation8 + $0x7c4] ss:$8 sps:$4 sm:$0xff]  }
 0x526   : > { %4678 = vmatpush2.bf16.msra.mxu1 %v7654_v37  ;;  %4946 = vmatmul.mubr.bf16.vlgmr.msra.gmra.mxu0 %v4716_v15  ;;  %v7674_v15 = vld [vmem:[#allocation8 + $0x654] ss:$8 sps:$4 sm:$0xff]   ;;  %v7720_v37 = vld [vmem:[#allocation8 + $0x6d0] ss:$8 sps:$4 sm:$0xff]  }
 0x527   : > { %4955 = vmatprep.mubr.bf16.mxu0 %v4719_v29  ;;  %5438 = vmatpush1.bf16.msra.mxu0 %v7657_v39  ;;  %v7723_v39 = vld [vmem:[#allocation8 + $0x7c0] ss:$8 sps:$4 sm:$0xff]  }
 0x528   : > { %5169 = vmatprep.subr.bf16.mxu1 %v7662_v42  ;;  %5439 = vmatprep.subr.bf16.mxu0 %v7665_v47  ;;  %v7728_v42 = vld [vmem:[#allocation8 + $0x6c4] ss:$8 sps:$4 sm:$0xff]   ;;  %v7731_v47 = vld [vmem:[#allocation8 + $0x7b4] ss:$8 sps:$4 sm:$0xff]   ;;  %v7726_v29 = vld [vmem:[#allocation8 + $0x6c0] ss:$8 sps:$4 sm:$0xff]  }
 0x529   : > { %4680 = vmatmul.mubr.bf16.vlgmr.msra.gmra.mxu1 %v4450_v56  ;;  %v7683_v56 = vld [vmem:[#allocation8 + $0x734] ss:$8 sps:$4 sm:$0xff]  }
 0x52a   : > { %4689 = vmatprep.mubr.bf16.mxu1 %v4453_v32  ;;  %5170 = vmatpush1.bf16.msra.mxu1 %v7660_v60  ;;  %v7686_v32 = vld [vmem:[#allocation8 + $0x634] ss:$8 sps:$4 sm:$0xff]   ;;  %v7729_v60 = vld [vmem:[#allocation8 + $0x7b0] ss:$8 sps:$4 sm:$0xff]  }
 0x52b   : > { %5440 = vmatpush1.bf16.msra.mxu0 %v7663_v1  ;;  %5171 = vmatprep.subr.bf16.mxu1 %v7668_v5  ;;  %v7734_v1 = vld [vmem:[#allocation8 + $0x6b4] ss:$8 sps:$4 sm:$0xff]   ;;  %v7737_v5 = vld [vmem:[#allocation8 + $0x7a4] ss:$8 sps:$4 sm:$0xff]  }
 0x52c   : > { %5441 = vmatprep.subr.bf16.mxu0 %v7671_v18  ;;  %v7732_v18 = vld [vmem:[#allocation8 + $0x6b0] ss:$8 sps:$4 sm:$0xff]  }
 0x52e   : > { %4956 = vmatmul.mubr.bf16.gmra.mxu0 %v4718_v28  ;;  %5172 = vmatpush1.bf16.msra.mxu1 %v7666_v20  ;;  %v7735_v20 = vld [vmem:[#allocation8 + $0x7a0] ss:$8 sps:$4 sm:$0xff]   ;;  %v7743_v28 = vld [vmem:[#allocation8 + $0x794] ss:$8 sps:$4 sm:$0xff]  }
 0x52f   : > { %5442 = vmatpush1.bf16.msra.mxu0 %v7669_v43  ;;  %5469 = vmatprep.mubr.bf16.mxu0 %v8883_v55  ;;  %v7684_v55 = vld [vmem:[#allocation8 + $0x630] ss:$8 sps:$4 sm:$0xff]   ;;  %v7740_v43 = vld [vmem:[#allocation8 + $0x6a4] ss:$8 sps:$4 sm:$0xff]  }
 0x530   : > { %5173 = vmatprep.subr.bf16.mxu1 %v7674_v15  ;;  %5443 = vmatprep.subr.bf16.mxu0 %v7677_v30  ;;  %v7738_v15 = vld [vmem:[#allocation8 + $0x6a0] ss:$8 sps:$4 sm:$0xff]   ;;  %v7741_v30 = vld [vmem:[#allocation8 + $0x790] ss:$8 sps:$4 sm:$0xff]  }
 0x531   : > { %4690 = vmatmul.mubr.bf16.gmra.mxu1 %v4452_v57  ;;  %v7698_v57 = vld [vmem:[#allocation8 + $0x614] ss:$8 sps:$4 sm:$0xff]  }
 0x532   : > { %5174 = vmatpush1.bf16.msra.mxu1 %v7672_v3  ;;  %5201 = vmatprep.mubr.bf16.mxu1 %v8853_v48  ;;  %v7693_v48 = vld [vmem:[#allocation8 + $0x710] ss:$8 sps:$4 sm:$0xff]   ;;  %v7746_v3 = vld [vmem:[#allocation8 + $0x694] ss:$8 sps:$4 sm:$0xff]  }
 0x533   : > { %5444 = vmatpush1.bf16.msra.mxu0 %v7675_v23  ;;  %5175 = vmatprep.subr.bf16.mxu1 %v7680_v2  ;;  %v7749_v23 = vld [vmem:[#allocation8 + $0x784] ss:$8 sps:$4 sm:$0xff]   ;;  %v7744_v2 = vld [vmem:[#allocation8 + $0x690] ss:$8 sps:$4 sm:$0xff]  }
 0x534   : > { %5445 = vmatprep.subr.bf16.mxu0 %v7683_v56  ;;  %v5237_v56 = vrot.slane %v8799_v16, 1 }
 0x536   : > { %5176 = vmatpush1.bf16.msra.mxu1 %v7678_v25  ;;  %v5238_v25 = vrot.slane %v8834_v59, 1 }
 0x537   : > { %5446 = vmatpush1.bf16.msra.mxu0 %v7681_v35  ;;  %5177 = vmatprep.subr.bf16.mxu1 %v7686_v32  ;;  %v7747_v35 = vld [vmem:[#allocation8 + $0x780] ss:$8 sps:$4 sm:$0xff]   ;;  %v7752_v32 = vld [vmem:[#allocation8 + $0x684] ss:$8 sps:$4 sm:$0xff]  }
 0x538   : > { %5447 = vmatprep.subr.bf16.mxu0 %v7689_v49  ;;  %v7750_v49 = vld [vmem:[#allocation8 + $0x680] ss:$8 sps:$4 sm:$0xff]  }
 0x53a   : > { %5178 = vmatpush1.bf16.msra.mxu1 %v7684_v55  ;;  %v5239_v55 = vsel %vm635_vm1, %v5237_v56, %v5238_v25  ;;  %v7774_v56 = vld [vmem:[#allocation8 + $0x800] ss:$8 sps:$4 sm:$0xff]   ;;  %v9083_v25 = vld [vmem:[#allocation9 + $0x38] sm:$0xff] }
 0x53b   : > { %5448 = vmatpush1.bf16.msra.mxu0 %v7687_v10  ;;  %5179 = vmatprep.subr.bf16.mxu1 %v7692_v53  ;;  %v7755_v10 = vld [vmem:[#allocation8 + $0x874] ss:$8 sps:$4 sm:$0xff]   ;;  %v5243_v16 = vpack.c.bf16 %v5239_v55, %v8946_v50  ;;  %v9092_v55 = vld [vmem:[#allocation9 + $0x20] sm:$0xff] }
 0x53c   : > { %5449 = vmatprep.subr.bf16.mxu0 %v7695_v34  ;;  %v9003_v53 = vld [vmem:[#allocation9 + $0xf8] sm:$0xff]  ;;  %v7812_v34 = vld [vmem:[#allocation2 + $0x80] sm:$0xff] }
 0x53d   : > { %v5234_v59 = vrot.slane %v7812_v34, 1 }
 0x53e   : > { %5180 = vmatpush1.bf16.msra.mxu1 %v7690_v6  ;;  %v7813_v6 = vld [vmem:[#allocation2 + $0x20] sm:$0x3] }
 0x53f   : > { %5450 = vmatpush1.bf16.msra.mxu0 %v7693_v48  ;;  %5181 = vmatprep.subr.bf16.mxu1 %v7698_v57  ;;  %v5235_v48 = vrot.slane %v7813_v6, 1  ;;  %v7753_v57 = vld [vmem:[#allocation8 + $0x870] ss:$8 sps:$4 sm:$0xff]   ;;  %v9101_v6 = vld [vmem:[#allocation9 + $0x8] sm:$0xff] }
 0x540   : > { %5451 = vmatprep.subr.bf16.mxu0 %v7701_v12  ;;  %v7758_v12 = vld [vmem:[#allocation8 + $0x864] ss:$8 sps:$4 sm:$0xff]  }
 0x541   : > { %v5236_v50 = vsel %vm635_vm1, %v5234_v59, %v5235_v48  ;;  %v9098_v59 = vld [vmem:[#allocation9 + $0x10] sm:$0xff]  ;;  %v9104_v48 = vld [vmem:[#allocation9] sm:$0xff] }
 0x542   : > { %5182 = vmatpush1.bf16.msra.mxu1 %v7696_v40  ;;  %v7814_v40 = vld [vmem:[#allocation2 + $0xb8] sm:$0xff] }
 0x543   : > { %5452 = vmatpush1.bf16.msra.mxu0 %v7699_v33  ;;  %5183 = vmatprep.subr.bf16.mxu1 %v7704_v45  ;;  %v4975_v33 = vpack.c.bf16 %v7814_v40, %v8885_v31  ;;  %v9009_v45 = vld [vmem:[#allocation9 + $0xf0] sm:$0xff]  ;;  %v5242_v31 = vpack.c.bf16 %v5236_v50, %v8958_v58  ;;  %v9031_v58 = vld [vmem:[#allocation9 + $0xc0] sm:$0xff]  ;;  %v9113_v50 = vld [vmem:[#allocation9 + $0x1e8] sm:$0xff] }
 0x544   : > { %5453 = vmatprep.subr.bf16.mxu0 %v7707_v8  ;;  %v9014_v8 = vld [vmem:[#allocation9 + $0xe8] sm:$0xff]  ;;  %v7785_v40 = vld [vmem:[#allocation8 + $0x8d4] ss:$8 sps:$4 sm:$0xff]  }
 0x546   : > { %5184 = vmatpush1.bf16.msra.mxu1 %v7702_v44  ;;  %v7761_v44 = vld [vmem:[#allocation8 + $0x854] ss:$8 sps:$4 sm:$0xff]  }
 0x547   : > { %5454 = vmatpush2.bf16.msra.mxu0 %v7705_v38  ;;  %5185 = vmatprep.subr.bf16.mxu1 %v7710_v61  ;;  %v9017_v38 = vld [vmem:[#allocation9 + $0xe0] sm:$0xff]  ;;  %v9021_v61 = vld [vmem:[#allocation9 + $0xd8] sm:$0xff] }
 0x548   : > { %5455 = vmatprep.subr.bf16.mxu0 %v7713_v0  ;;  %v7759_v0 = vld [vmem:[#allocation8 + $0x850] ss:$8 sps:$4 sm:$0xff]  }
 0x54a   : > { %5186 = vmatpush2.bf16.msra.mxu1 %v7708_v26  ;;  %v4974_v26 = vpack.c.bf16 %v7812_v34, %v8909_v36  ;;  %v7767_v36 = vld [vmem:[#allocation8 + $0x834] ss:$8 sps:$4 sm:$0xff]   ;;  %v7782_v34 = vld [vmem:[#allocation8 + $0x8e4] ss:$8 sps:$4 sm:$0xff]  }
 0x54b   : > { %5456 = vmatpush2.bf16.msra.mxu0 %v7711_v9  ;;  %5187 = vmatprep.subr.bf16.mxu1 %v7716_v17  ;;  %v7764_v9 = vld [vmem:[#allocation8 + $0x844] ss:$8 sps:$4 sm:$0xff]  }
 0x54c   : > { %5457 = vmatprep.subr.bf16.mxu0 %v7719_v21  ;;  %v9028_v17 = vld [vmem:[#allocation9 + $0xc8] sm:$0xff]  ;;  %v9034_v21 = vld [vmem:[#allocation9 + $0xb8] sm:$0xff] }
 0x54e   : > { %5188 = vmatpush2.bf16.msra.mxu1 %v7714_v7  ;;  %v7762_v7 = vld [vmem:[#allocation8 + $0x840] ss:$8 sps:$4 sm:$0xff]  }
 0x54f   : > { %5458 = vmatpush2.bf16.msra.mxu0 %v7717_v46  ;;  %5189 = vmatprep.subr.bf16.mxu1 %v7722_v19  ;;  %v9038_v46 = vld [vmem:[#allocation9 + $0xb0] sm:$0xff]  ;;  %v9041_v19 = vld [vmem:[#allocation9 + $0xa8] sm:$0xff] }
 0x550   : > { %5459 = vmatprep.subr.bf16.mxu0 %v7725_v24  ;;  %v9044_v24 = vld [vmem:[#allocation9 + $0xa0] sm:$0xff] }
 0x552   : > { %5190 = vmatpush2.bf16.msra.mxu1 %v7720_v37  ;;  %v7765_v37 = vld [vmem:[#allocation8 + $0x830] ss:$8 sps:$4 sm:$0xff]  }
 0x553   : > { %5460 = vmatpush2.bf16.msra.mxu0 %v7723_v39  ;;  %5191 = vmatprep.subr.bf16.mxu1 %v7728_v42  ;;  %v9047_v39 = vld [vmem:[#allocation9 + $0x98] sm:$0xff]  ;;  %v9050_v42 = vld [vmem:[#allocation9 + $0x90] sm:$0xff] }
 0x554   : > { %5461 = vmatprep.subr.bf16.mxu0 %v7731_v47  ;;  %v9053_v47 = vld [vmem:[#allocation9 + $0x88] sm:$0xff] }
 0x556   : > { %5192 = vmatpush2.bf16.msra.mxu1 %v7726_v29  ;;  %v9056_v29 = vld [vmem:[#allocation9 + $0x80] sm:$0xff] }
 0x557   : > { %5462 = vmatpush2.bf16.msra.mxu0 %v7729_v60  ;;  %5193 = vmatprep.subr.bf16.mxu1 %v7734_v1  ;;  %v7768_v60 = vld [vmem:[#allocation8 + $0x820] ss:$8 sps:$4 sm:$0xff]   ;;  %v9059_v1 = vld [vmem:[#allocation9 + $0x78] sm:$0xff] }
 0x558   : > { %5463 = vmatprep.subr.bf16.mxu0 %v7737_v5  ;;  %v7773_v5 = vld [vmem:[#allocation8 + $0x814] ss:$8 sps:$4 sm:$0xff]  }
 0x55a   : > { %5194 = vmatpush2.bf16.msra.mxu1 %v7732_v18  ;;  %v9062_v18 = vld [vmem:[#allocation9 + $0x70] sm:$0xff] }
 0x55b   : > { %5464 = vmatpush2.bf16.msra.mxu0 %v7735_v20  ;;  %5195 = vmatprep.subr.bf16.mxu1 %v7740_v43  ;;  %v9065_v20 = vld [vmem:[#allocation9 + $0x68] sm:$0xff]  ;;  %v9068_v43 = vld [vmem:[#allocation9 + $0x60] sm:$0xff] }
 0x55c   : > { %5465 = vmatprep.subr.bf16.mxu0 %v7743_v28  ;;  %v7771_v28 = vld [vmem:[#allocation8 + $0x810] ss:$8 sps:$4 sm:$0xff]  }
 0x55e   : > { %5196 = vmatpush2.bf16.msra.mxu1 %v7738_v15  ;;  %v9071_v15 = vld [vmem:[#allocation9 + $0x58] sm:$0xff] }
 0x55f   : > { %5466 = vmatpush2.bf16.msra.mxu0 %v7741_v30  ;;  %5197 = vmatprep.subr.bf16.mxu1 %v7746_v3  ;;  %v7776_v30 = vld [vmem:[#allocation8 + $0x804] ss:$8 sps:$4 sm:$0xff]   ;;  %v9074_v3 = vld [vmem:[#allocation9 + $0x50] sm:$0xff] }
 0x560   : > { %5467 = vmatprep.subr.bf16.mxu0 %v7749_v23  ;;  %v9077_v23 = vld [vmem:[#allocation9 + $0x48] sm:$0xff] }
 0x562   : > { %5198 = vmatpush2.bf16.msra.mxu1 %v7744_v2  ;;  %v9080_v2 = vld [vmem:[#allocation9 + $0x40] sm:$0xff] }
 0x563   : > { %5468 = vmatpush2.bf16.msra.mxu0 %v7747_v35  ;;  %5199 = vmatprep.subr.bf16.mxu1 %v7752_v32  ;;  %v7779_v35 = vld [vmem:[#allocation8 + $0x8f4] ss:$8 sps:$4 sm:$0xff]  }
 0x564   : > { %5782 = vmatprep.subr.mxu0 %v9003_v53  ;;  %v9086_v32 = vld [vmem:[#allocation9 + $0x30] sm:$0xff] }
 0x566   : > { %5200 = vmatpush2.bf16.msra.mxu1 %v7750_v49  ;;  %5470 = vmatmul.mubr.bf16.vlgmr.msra.gmra.mxu0 %v8943_v41  ;;  %v7756_v41 = vld [vmem:[#allocation8 + $0x860] ss:$8 sps:$4 sm:$0xff]  }
 0x567   : > { %5479 = vmatprep.mubr.bf16.mxu0 %v5243_v16  ;;  %5701 = vmatprep.subr.bf16.mxu1 %v7755_v10  ;;  %v9089_v49 = vld [vmem:[#allocation9 + $0x28] sm:$0xff]  ;;  %v7777_v10 = vld [vmem:[#allocation8 + $0x8f0] ss:$8 sps:$4 sm:$0xff]  }
 0x568   : > { %5783 = vmatpush1.msra.mxu0 %v9009_v45  ;;  %v9095_v16 = vld [vmem:[#allocation9 + $0x18] sm:$0xff] }
 0x569   : > { %5202 = vmatmul.mubr.bf16.vlgmr.msra.gmra.mxu1 %v8847_v22  ;;  %5784 = vmatprep.subr.mxu0 %v9014_v8  ;;  %v9024_v22 = vld [vmem:[#allocation9 + $0xd0] sm:$0xff] }
 0x56a   : > { %5211 = vmatprep.mubr.bf16.mxu1 %v4975_v33  ;;  %5702 = vmatpush1.bf16.msra.mxu1 %v7753_v57  ;;  %v7780_v57 = vld [vmem:[#allocation8 + $0x8e0] ss:$8 sps:$4 sm:$0xff]   ;;  %v9110_v33 = vld [vmem:[#allocation9 + $0x1f0] sm:$0xff] }
 0x56b   : > { %5703 = vmatprep.subr.bf16.mxu1 %v7758_v12  ;;  %5785 = vmatpush1.msra.mxu0 %v9017_v38  ;;  %v9107_v12 = vld [vmem:[#allocation9 + $0x1f8] sm:$0xff] }
 0x56c   : > { %5786 = vmatprep.subr.mxu0 %v9021_v61 }
 0x56d   : > { %5787 = vmatpush1.msra.mxu0 %v9024_v22 }
 0x56e   : > { %5480 = vmatmul.mubr.bf16.gmra.mxu0 %v5242_v31  ;;  %5704 = vmatpush1.bf16.msra.mxu1 %v7756_v41  ;;  %v9116_v41 = vld [vmem:[#allocation9 + $0x1e0] sm:$0xff]  ;;  %v9119_v31 = vld [vmem:[#allocation9 + $0x1d8] sm:$0xff] }
 0x56f   : > { %5705 = vmatprep.subr.bf16.mxu1 %v7761_v44  ;;  %5788 = vmatprep.subr.mxu0 %v9028_v17  ;;  %v7783_v44 = vld [vmem:[#allocation8 + $0x8d0] ss:$8 sps:$4 sm:$0xff]  }
 0x570   : > { %5789 = vmatpush1.msra.mxu0 %v9031_v58 }
 0x571   : > { %5212 = vmatmul.mubr.bf16.gmra.mxu1 %v4974_v26  ;;  %5790 = vmatprep.subr.mxu0 %v9034_v21  ;;  %v9122_v26 = vld [vmem:[#allocation9 + $0x1d0] sm:$0xff] }
 0x572   : > { %5706 = vmatpush1.bf16.msra.mxu1 %v7759_v0  ;;  %5733 = vmatprep.mubr.bf16.mxu1 %v8916_v14  ;;  %v7770_v14 = vld [vmem:[#allocation8 + $0x824] ss:$8 sps:$4 sm:$0xff]  }
 0x573   : > { %5707 = vmatprep.subr.bf16.mxu1 %v7764_v9  ;;  %5791 = vmatpush1.msra.mxu0 %v9038_v46  ;;  %v7788_v0 = vld [vmem:[#allocation8 + $0x8c4] ss:$8 sps:$4 sm:$0xff]  }
 0x574   : > { %5792 = vmatprep.subr.mxu0 %v9041_v19  ;;  %v9125_v9 = vld [vmem:[#allocation9 + $0x1c8] sm:$0xff] }
 0x575   : > { %5793 = vmatpush1.msra.mxu0 %v9044_v24 }
 0x576   : > { %5708 = vmatpush1.bf16.msra.mxu1 %v7762_v7  ;;  %5794 = vmatprep.subr.mxu0 %v9047_v39  ;;  %v9128_v7 = vld [vmem:[#allocation9 + $0x1c0] sm:$0xff] }
 0x577   : > { %5709 = vmatprep.subr.bf16.mxu1 %v7767_v36  ;;  %5795 = vmatpush1.msra.mxu0 %v9050_v42  ;;  %v7786_v36 = vld [vmem:[#allocation8 + $0x8c0] ss:$8 sps:$4 sm:$0xff]  }
 0x578   : > { %5796 = vmatprep.subr.mxu0 %v9053_v47 }
 0x579   : > { %5797 = vmatpush1.msra.mxu0 %v9056_v29 }
 0x57a   : > { %5710 = vmatpush1.bf16.msra.mxu1 %v7765_v37  ;;  %5798 = vmatprep.subr.mxu0 %v9059_v1  ;;  %v9131_v37 = vld [vmem:[#allocation9 + $0x1b8] sm:$0xff] }
 0x57b   : > { %5711 = vmatprep.subr.bf16.mxu1 %v7770_v14  ;;  %5799 = vmatpush1.msra.mxu0 %v9062_v18  ;;  %v7791_v14 = vld [vmem:[#allocation8 + $0x8b4] ss:$8 sps:$4 sm:$0xff]  }
 0x57c   : > { %5800 = vmatprep.subr.mxu0 %v9065_v20 }
 0x57d   : > { %5801 = vmatpush1.msra.mxu0 %v9068_v43 }
 0x57e   : > { %5712 = vmatpush1.bf16.msra.mxu1 %v7768_v60  ;;  %5802 = vmatprep.subr.mxu0 %v9071_v15  ;;  %v9134_v60 = vld [vmem:[#allocation9 + $0x1b0] sm:$0xff] }
 0x57f   : > { %5713 = vmatprep.subr.bf16.mxu1 %v7773_v5  ;;  %5803 = vmatpush1.msra.mxu0 %v9074_v3  ;;  %v9137_v5 = vld [vmem:[#allocation9 + $0x1a8] sm:$0xff] }
 0x580   : > { %5804 = vmatprep.subr.mxu0 %v9077_v23 }
 0x581   : > { %5805 = vmatpush1.msra.mxu0 %v9080_v2 }
 0x582   : > { %5714 = vmatpush1.bf16.msra.mxu1 %v7771_v28  ;;  %5806 = vmatprep.subr.mxu0 %v9083_v25  ;;  %v9140_v28 = vld [vmem:[#allocation9 + $0x1a0] sm:$0xff] }
 0x583   : > { %5715 = vmatprep.subr.bf16.mxu1 %v7776_v30  ;;  %5807 = vmatpush1.msra.mxu0 %v9086_v32  ;;  %v7789_v30 = vld [vmem:[#allocation8 + $0x8b0] ss:$8 sps:$4 sm:$0xff]  }
 0x584   : > { %5808 = vmatprep.subr.mxu0 %v9089_v49 }
 0x585   : > { %5809 = vmatpush1.msra.mxu0 %v9092_v55 }
 0x586   : > { %5716 = vmatpush1.bf16.msra.mxu1 %v7774_v56  ;;  %5810 = vmatprep.subr.mxu0 %v9095_v16  ;;  %v9143_v56 = vld [vmem:[#allocation9 + $0x198] sm:$0xff] }
 0x587   : > { %5717 = vmatprep.subr.bf16.mxu1 %v7779_v35  ;;  %5811 = vmatpush1.msra.mxu0 %v9098_v59  ;;  %v7794_v35 = vld [vmem:[#allocation8 + $0x8a4] ss:$8 sps:$4 sm:$0xff]  }
 0x588   : > { %5812 = vmatprep.subr.mxu0 %v9101_v6 }
 0x589   : > { %5813 = vmatpush1.msra.mxu0 %v9104_v48 }
 0x58a   : > { %5718 = vmatpush2.bf16.msra.mxu1 %v7777_v10  ;;  %5814 = vmatprep.subr.mxu0 %v9107_v12  ;;  %v9146_v10 = vld [vmem:[#allocation9 + $0x190] sm:$0xff] }
 0x58b   : > { %5719 = vmatprep.subr.bf16.mxu1 %v7782_v34  ;;  %5815 = vmatpush2.msra.mxu0 %v9110_v33  ;;  %v9149_v34 = vld [vmem:[#allocation9 + $0x188] sm:$0xff] }
 0x58c   : > { %5816 = vmatprep.subr.mxu0 %v9113_v50 }
 0x58d   : > { %5817 = vmatpush2.msra.mxu0 %v9116_v41 }
 0x58e   : > { %5720 = vmatpush2.bf16.msra.mxu1 %v7780_v57  ;;  %5818 = vmatprep.subr.mxu0 %v9119_v31  ;;  %v9152_v57 = vld [vmem:[#allocation9 + $0x180] sm:$0xff] }
 0x58f   : > { %5721 = vmatprep.subr.bf16.mxu1 %v7785_v40  ;;  %5819 = vmatpush2.msra.mxu0 %v9122_v26  ;;  %v7792_v40 = vld [vmem:[#allocation8 + $0x8a0] ss:$8 sps:$4 sm:$0xff]  }
 0x590   : > { %5820 = vmatprep.subr.mxu0 %v9125_v9 }
 0x591   : > { %5821 = vmatpush2.msra.mxu0 %v9128_v7 }
 0x592   : > { %5722 = vmatpush2.bf16.msra.mxu1 %v7783_v44  ;;  %5822 = vmatprep.subr.mxu0 %v9131_v37  ;;  %v9155_v44 = vld [vmem:[#allocation9 + $0x178] sm:$0xff] }
 0x593   : > { %5723 = vmatprep.subr.bf16.mxu1 %v7788_v0  ;;  %5823 = vmatpush2.msra.mxu0 %v9134_v60  ;;  %v7797_v0 = vld [vmem:[#allocation8 + $0x894] ss:$8 sps:$4 sm:$0xff]  }
 0x594   : > { %5824 = vmatprep.subr.mxu0 %v9137_v5 }
 0x595   : > { %5825 = vmatpush2.msra.mxu0 %v9140_v28 }
 0x596   : > { %5724 = vmatpush2.bf16.msra.mxu1 %v7786_v36  ;;  %5826 = vmatprep.subr.mxu0 %v9143_v56  ;;  %v9158_v36 = vld [vmem:[#allocation9 + $0x170] sm:$0xff] }
 0x597   : > { %5725 = vmatprep.subr.bf16.mxu1 %v7791_v14  ;;  %5827 = vmatpush2.msra.mxu0 %v9146_v10  ;;  %v9161_v14 = vld [vmem:[#allocation9 + $0x168] sm:$0xff] }
 0x598   : > { %5828 = vmatprep.subr.mxu0 %v9149_v34  ;;  %9405 = vst [vmem:[#allocation26_spill] sm:$0xff] %v9161_v14 }
 0x599   : > { %5829 = vmatpush2.msra.mxu0 %v9152_v57 }
 0x59a   : > { %5726 = vmatpush2.bf16.msra.mxu1 %v7789_v30  ;;  %5830 = vmatprep.subr.mxu0 %v9155_v44  ;;  %v7795_v30 = vld [vmem:[#allocation8 + $0x890] ss:$8 sps:$4 sm:$0xff]  }
 0x59b   : > { %5727 = vmatprep.subr.bf16.mxu1 %v7794_v35  ;;  %5831 = vmatpush2.msra.mxu0 %v9158_v36  ;;  %v7800_v35 = vld [vmem:[#allocation8 + $0x884] ss:$8 sps:$4 sm:$0xff]  }
 0x59c   : > { %5832 = vmatprep.subr.mxu0 %v9161_v14  ;;  %v9176_v14 = vld [vmem:[#allocation9 + $0x140] sm:$0xff] }
 0x59d   : > { %5833 = vmatpush2.msra.mxu0 %v9164_v11  ;;  %9409 = vst [vmem:[#allocation30_spill] sm:$0xff] %v9176_v14  ;;  %v9179_v11 = vld [vmem:[#allocation9 + $0x138] sm:$0xff] }
 0x59e   : > { %5728 = vmatpush2.bf16.msra.mxu1 %v7792_v40  ;;  %5834 = vmatprep.subr.mxu0 %v9167_v63  ;;  %v7798_v40 = vld [vmem:[#allocation8 + $0x880] ss:$8 sps:$4 sm:$0xff]  }
 0x59f   : > { %5729 = vmatprep.subr.bf16.mxu1 %v7797_v0  ;;  %5835 = vmatpush2.msra.mxu0 %v9170_v62  ;;  %v9182_v0 = vld [vmem:[#allocation9 + $0x130] sm:$0xff]  ;;  %v9185_v62 = vld [vmem:[#allocation9 + $0x128] sm:$0xff] }
 0x5a0   : > { %5836 = vmatprep.subr.mxu0 %v9173_v13  ;;  %9410 = vst [vmem:[#allocation31_spill] sm:$0xff] %v9185_v62  ;;  %v9188_v13 = vld [vmem:[#allocation9 + $0x120] sm:$0xff] }
 0x5a1   : > { %5837 = vmatpush2.msra.mxu0 %v9176_v14  ;;  %v9194_v14 = vld [vmem:[#allocation9 + $0x110] sm:$0xff] }
 0x5a2   : > { %5730 = vmatpush2.bf16.msra.mxu1 %v7795_v30  ;;  %5838 = vmatprep.subr.mxu0 %v9179_v11  ;;  %v9191_v30 = vld [vmem:[#allocation9 + $0x118] sm:$0xff] }
 0x5a3   : > { %5731 = vmatprep.subr.bf16.mxu1 %v7800_v35  ;;  %5839 = vmatpush2.msra.mxu0 %v9182_v0  ;;  %v9198_v35 = vld [vmem:[#allocation9 + $0x108] sm:$0xff] }
 0x5a4   : > { %5840 = vmatprep.subr.mxu0 %v9185_v62  ;;  %v9202_v62 = vld [vmem:[#allocation9 + $0x100] sm:$0xff] }
 0x5a5   : > { %5841 = vmatpush2.msra.mxu0 %v9188_v13 }
 0x5a6   : > { %5732 = vmatpush2.bf16.msra.mxu1 %v7798_v40  ;;  %5842 = vmatprep.subr.mxu0 %v9191_v30  ;;  %v9411_v40 = vpack.c.bf16 %v8939_v54, %v8933_v27  ;;  %v9414_v27 = vld [vmem:[#allocation27_spill] sm:$0xff]  ;;  %v9415_v54 = vld [vmem:[#allocation28_spill] sm:$0xff] }
 0x5a7   : > { %5843 = vmatpush2.msra.mxu0 %v9194_v14  ;;  %5897 = vmatprep.subr.mxu1 %v9003_v53  ;;  %v9417_v53 = vld [vmem:[#allocation30_spill] sm:$0xff] }
 0x5a8   : > { %5844 = vmatprep.subr.mxu0 %v9198_v35 }
 0x5a9   : > { %5734 = vmatmul.mubr.bf16.vlgmr.msra.gmra.mxu1 %v8927_v51  ;;  %5845 = vmatpush2.msra.mxu0 %v9202_v62  ;;  %v9412_v51 = vpack.c.bf16 %v8837_v52, %v8954_v4  ;;  %v9413_v52 = vld [vmem:[#allocation26_spill] sm:$0xff]  ;;  %v9416_v4 = vld [vmem:[#allocation29_spill] sm:$0xff] }
 0x5aa   : > { %5743 = vmatprep.mubr.bf16.mxu1 %v9411_v40  ;;  %5898 = vmatpush1.msra.mxu1 %v9009_v45  ;;  %v9418_v45 = vld [vmem:[#allocation31_spill] sm:$0xff] }
 0x5ab   : > { %5899 = vmatprep.subr.mxu1 %v9014_v8 }
 0x5ac   : > { %5900 = vmatpush1.msra.mxu1 %v9017_v38 }
 0x5ad   : > { %5901 = vmatprep.subr.mxu1 %v9021_v61 }
 0x5ae   : > { %5902 = vmatpush1.msra.mxu1 %v9024_v22  ;;  %v3871_v22 = vpop.f32.mrf.mxu0 }
 0x5af   : > { %5903 = vmatprep.subr.mxu1 %v9028_v17 }
 0x5b0   : > { %5904 = vmatpush1.msra.mxu1 %v9031_v58  ;;  %v3873_v17 = vpop.f32.mrf.mxu0 }
 0x5b1   : > { %5744 = vmatmul.mubr.bf16.gmra.mxu1 %v9412_v51  ;;  %5905 = vmatprep.subr.mxu1 %v9034_v21 }
 0x5b2   : > { %5906 = vmatpush1.msra.mxu1 %v9038_v46  ;;  %v3875_v21 = vpop.f32.mrf.mxu0 }
 0x5b3   : > { %5907 = vmatprep.subr.mxu1 %v9041_v19 }
 0x5b4   : > { %5908 = vmatpush1.msra.mxu1 %v9044_v24  ;;  %v3877_v19 = vpop.f32.mrf.mxu0 }
 0x5b5   : > { %5909 = vmatprep.subr.mxu1 %v9047_v39 }
 0x5b6   : > { %5910 = vmatpush1.msra.mxu1 %v9050_v42  ;;  %v3881_v24 = vpop.f32.mrf.mxu0 }
 0x5b7   : > { %5911 = vmatprep.subr.mxu1 %v9053_v47 }
 0x5b8   : > { %5912 = vmatpush1.msra.mxu1 %v9056_v29  ;;  %v3883_v42 = vpop.f32.mrf.mxu0 }
 0x5b9   : > { %5913 = vmatprep.subr.mxu1 %v9059_v1 }
 0x5ba   : > { %5914 = vmatpush1.msra.mxu1 %v9062_v18  ;;  %v3885_v29 = vpop.f32.mrf.mxu0 }
 0x5bb   : > { %5915 = vmatprep.subr.mxu1 %v9065_v20 }
 0x5bc   : > { %5916 = vmatpush1.msra.mxu1 %v9068_v43  ;;  %v3887_v18 = vpop.f32.mrf.mxu0 }
 0x5bd   : > { %5917 = vmatprep.subr.mxu1 %v9071_v15 }
 0x5be   : > { %5918 = vmatpush1.msra.mxu1 %v9074_v3  ;;  %v4411_v20 = vpop.f32.mrf.mxu0 }
 0x5bf   : > { %5919 = vmatprep.subr.mxu1 %v9077_v23 }
 0x5c0   : > { %5920 = vmatpush1.msra.mxu1 %v9080_v2  ;;  %v4413_v15 = vpop.f32.mrf.mxu0 }
 0x5c1   : > { %5921 = vmatprep.subr.mxu1 %v9083_v25 }
 0x5c2   : > { %5922 = vmatpush1.msra.mxu1 %v9086_v32  ;;  %v4415_v23 = vpop.f32.mrf.mxu0 }
 0x5c3   : > { %5923 = vmatprep.subr.mxu1 %v9089_v49 }
 0x5c4   : > { %5924 = vmatpush1.msra.mxu1 %v9092_v55  ;;  %v4417_v25 = vpop.f32.mrf.mxu0 }
 0x5c5   : > { %5925 = vmatprep.subr.mxu1 %v9095_v16 }
 0x5c6   : > { %5926 = vmatpush1.msra.mxu1 %v9098_v59  ;;  %v4421_v49 = vpop.f32.mrf.mxu0 }
 0x5c7   : > { %5927 = vmatprep.subr.mxu1 %v9101_v6 }
 0x5c8   : > { %5928 = vmatpush1.msra.mxu1 %v9104_v48  ;;  %v4423_v16 = vpop.f32.mrf.mxu0 }
 0x5c9   : > { %5929 = vmatprep.subr.mxu1 %v9107_v12 }
 0x5ca   : > { %5930 = vmatpush2.msra.mxu1 %v9110_v33  ;;  %v4425_v6 = vpop.f32.mrf.mxu0 }
 0x5cb   : > { %5931 = vmatprep.subr.mxu1 %v9113_v50 }
 0x5cc   : > { %5932 = vmatpush2.msra.mxu1 %v9116_v41  ;;  %v4427_v12 = vpop.f32.mrf.mxu0 }
 0x5cd   : > { %5933 = vmatprep.subr.mxu1 %v9119_v31 }
 0x5ce   : > { %5934 = vmatpush2.msra.mxu1 %v9122_v26 }
 0x5cf   : > { %5935 = vmatprep.subr.mxu1 %v9125_v9 }
 0x5d0   : > { %5936 = vmatpush2.msra.mxu1 %v9128_v7 }
 0x5d1   : > { %5937 = vmatprep.subr.mxu1 %v9131_v37 }
 0x5d2   : > { %5938 = vmatpush2.msra.mxu1 %v9134_v60 }
 0x5d3   : > { %5939 = vmatprep.subr.mxu1 %v9137_v5 }
 0x5d4   : > { %5940 = vmatpush2.msra.mxu1 %v9140_v28 }
 0x5d5   : > { %5941 = vmatprep.subr.mxu1 %v9143_v56 }
 0x5d6   : > { %5942 = vmatpush2.msra.mxu1 %v9146_v10 }
 0x5d7   : > { %5943 = vmatprep.subr.mxu1 %v9149_v34 }
 0x5d8   : > { %5944 = vmatpush2.msra.mxu1 %v9152_v57 }
 0x5d9   : > { %5945 = vmatprep.subr.mxu1 %v9155_v44 }
 0x5da   : > { %5946 = vmatpush2.msra.mxu1 %v9158_v36 }
 0x5db   : > { %5947 = vmatprep.subr.mxu1 %v9413_v52 }
 0x5dc   : > { %5948 = vmatpush2.msra.mxu1 %v9414_v27 }
 0x5dd   : > { %5949 = vmatprep.subr.mxu1 %v9167_v63  ;;  %v3658_v63 = vpop.f32.mrf.mxu1 }
 0x5de   : > { %5950 = vmatpush2.msra.mxu1 %v9415_v54 }
 0x5df   : > { %5951 = vmatprep.subr.mxu1 %v9416_v4  ;;  %v3660_v8 = vpop.f32.mrf.mxu1 }
 0x5e0   : > { %5952 = vmatpush2.msra.mxu1 %v9417_v53  ;;  %v3874_v54 = vadd.f32 %v3873_v17, %v3660_v8 }
 0x5e1   : > { %5953 = vmatprep.subr.mxu1 %v9179_v11  ;;  %v3662_v38 = vpop.f32.mrf.mxu1 }
 0x5e2   : > { %5954 = vmatpush2.msra.mxu1 %v9182_v0 }
 0x5e3   : > { %5955 = vmatprep.subr.mxu1 %v9418_v45  ;;  %v3664_v61 = vpop.f32.mrf.mxu1 }
 0x5e4   : > { %5956 = vmatpush2.msra.mxu1 %v9188_v13  ;;  %v3878_v51 = vadd.f32 %v3877_v19, %v3664_v61 }
 0x5e5   : > { %5957 = vmatprep.subr.mxu1 %v9191_v30  ;;  %v3668_v11 = vpop.f32.mrf.mxu1  ;;  %v3876_v30 = vadd.f32 %v3875_v21, %v3662_v38 }
 0x5e6   : > { %5958 = vmatpush2.msra.mxu1 %v9194_v14  ;;  %v4947_v50 = vpop.f32.mrf.mxu0  ;;  %v3882_v52 = vadd.f32 %v3881_v24, %v3668_v11 }
 0x5e7   : > { %5959 = vmatprep.subr.mxu1 %v9198_v35  ;;  %v3670_v58 = vpop.f32.mrf.mxu1  ;;  %v3872_v35 = vadd.f32 %v3871_v22, %v3658_v63 }
 0x5e8   : > { %5960 = vmatpush2.msra.mxu1 %v9202_v62  ;;  %v4949_v31 = vpop.f32.mrf.mxu0  ;;  %v3884_v4 = vadd.f32 %v3883_v42, %v3670_v58 }
 0x5e9   : > { %v3672_v46 = vpop.f32.mrf.mxu1 }
 0x5ea   : > { %v4951_v9 = vpop.f32.mrf.mxu0  ;;  %v3886_v19 = vadd.f32 %v3885_v29, %v3672_v46 }
 0x5eb   : > { %v3674_v13 = vpop.f32.mrf.mxu1 }
 0x5ec   : > { %v4953_v37 = vpop.f32.mrf.mxu0  ;;  %v3888_v11 = vadd.f32 %v3887_v18, %v3674_v13 }
 0x5ed   : > { %v4153_v39 = vpop.f32.mrf.mxu1 }
 0x5ee   : > { %v4957_v5 = vpop.f32.mrf.mxu0  ;;  %v4172_v53 = vadd.f32 %v4153_v39, %v3872_v35 }
 0x5ef   : > { %v4155_v47 = vpop.f32.mrf.mxu1 }
 0x5f0   : > { %v4959_v56 = vpop.f32.mrf.mxu0  ;;  %v4173_v22 = vadd.f32 %v4155_v47, %v3874_v54  ;;  %v4430_v24 = vadd.f32 %v4411_v20, %v4172_v53 }
 0x5f1   : > { %v4157_v1 = vpop.f32.mrf.mxu1 }
 0x5f2   : > { %v4961_v34 = vpop.f32.mrf.mxu0  ;;  %v4174_v27 = vadd.f32 %v4157_v1, %v3876_v30  ;;  %v4431_v39 = vadd.f32 %v4413_v15, %v4173_v22 }
 0x5f3   : > { %v4159_v62 = vpop.f32.mrf.mxu1 }
 0x5f4   : > { %v4963_v44 = vpop.f32.mrf.mxu0  ;;  %v4175_v21 = vadd.f32 %v4159_v62, %v3878_v51  ;;  %v4432_v61 = vadd.f32 %v4415_v23, %v4174_v27 }
 0x5f5   : > { %v4163_v43 = vpop.f32.mrf.mxu1 }
 0x5f6   : > { %v4176_v38 = vadd.f32 %v4163_v43, %v3882_v52  ;;  %v4433_v17 = vadd.f32 %v4417_v25, %v4175_v21 }
 0x5f7   : > { %v4165_v3 = vpop.f32.mrf.mxu1 }
 0x5f8   : > { %v4177_v63 = vadd.f32 %v4165_v3, %v3884_v4  ;;  %v4434_v42 = vadd.f32 %v4421_v49, %v4176_v38 }
 0x5f9   : > { %v4167_v2 = vpop.f32.mrf.mxu1 }
 0x5fa   : > { %v4178_v30 = vadd.f32 %v4167_v2, %v3886_v19  ;;  %v4435_v51 = vadd.f32 %v4423_v16, %v4177_v63 }
 0x5fb   : > { %v4169_v32 = vpop.f32.mrf.mxu1 }
 0x5fc   : > { %v4179_v58 = vadd.f32 %v4169_v32, %v3888_v11  ;;  %v4436_v4 = vadd.f32 %v4425_v6, %v4178_v30 }
 0x5fd   : > { %v4681_v55 = vpop.f32.mrf.mxu1 }
 0x5fe   : > { %v4700_v35 = vadd.f32 %v4681_v55, %v4430_v24  ;;  %v4437_v29 = vadd.f32 %v4427_v12, %v4179_v58 }
 0x5ff   : > { %v4683_v59 = vpop.f32.mrf.mxu1 }
 0x600   : > { %v4701_v47 = vadd.f32 %v4683_v59, %v4431_v39  ;;  %v4966_v13 = vadd.f32 %v4947_v50, %v4700_v35 }
 0x601   : > { %v4685_v48 = vpop.f32.mrf.mxu1 }
 0x602   : > { %v4702_v8 = vadd.f32 %v4685_v48, %v4432_v61  ;;  %v4967_v15 = vadd.f32 %v4949_v31, %v4701_v47 }
 0x603   : > { %v4687_v33 = vpop.f32.mrf.mxu1 }
 0x604   : > { %v4703_v43 = vadd.f32 %v4687_v33, %v4433_v17  ;;  %v4968_v46 = vadd.f32 %v4951_v9, %v4702_v8 }
 0x605   : > { %v4691_v41 = vpop.f32.mrf.mxu1 }
 0x606   : > { %v4704_v52 = vadd.f32 %v4691_v41, %v4434_v42  ;;  %v4969_v25 = vadd.f32 %v4953_v37, %v4703_v43 }
 0x607   : > { %v4693_v26 = vpop.f32.mrf.mxu1 }
 0x608   : > { %v4705_v54 = vadd.f32 %v4693_v26, %v4435_v51  ;;  %v4970_v49 = vadd.f32 %v4957_v5, %v4704_v52 }
 0x609   : > { %v4695_v7 = vpop.f32.mrf.mxu1 }
 0x60a   : > { %v4706_v23 = vadd.f32 %v4695_v7, %v4436_v4  ;;  %v4971_v16 = vadd.f32 %v4959_v56, %v4705_v54 }
 0x60b   : > { %v4697_v60 = vpop.f32.mrf.mxu1 }
 0x60c   : > { %v4707_v32 = vadd.f32 %v4697_v60, %v4437_v29  ;;  %v4972_v9 = vadd.f32 %v4961_v34, %v4706_v23  ;;  %v9421_v23 = vld [vmem:[#allocation24_spill] sm:$0xff] }
 0x60e   : > { %v4973_v50 = vadd.f32 %v4963_v44, %v4707_v32 }
 0x626   : > { %v5471_v14 = vpop.f32.mrf.mxu0 }
 0x628   : > { %v9274_v40 = vpop.f32.mrf.mxu0 }
 0x629   : > { %v5203_v28 = vpop.f32.mrf.mxu1  ;;  %9419 = vst [vmem:[#allocation26_spill] sm:$0xff] %v9274_v40 }
 0x62a   : > { %v5475_v40 = vpop.f32.mrf.mxu0  ;;  %v5222_v55 = vadd.f32 %v5203_v28, %v4966_v13 }
 0x62b   : > { %v5205_v10 = vpop.f32.mrf.mxu1 }
 0x62c   : > { %v5477_v62 = vpop.f32.mrf.mxu0  ;;  %v5223_v59 = vadd.f32 %v5205_v10, %v4967_v15  ;;  %v5490_v53 = vadd.f32 %v5471_v14, %v5222_v55 }
 0x62d   : > { %v5207_v57 = vpop.f32.mrf.mxu1 }
 0x62e   : > { %v5481_v18 = vpop.f32.mrf.mxu0  ;;  %v5224_v2 = vadd.f32 %v5207_v57, %v4968_v46 }
 0x62f   : > { %v5209_v36 = vpop.f32.mrf.mxu1 }
 0x630   : > { %v5225_v33 = vadd.f32 %v5209_v36, %v4969_v25  ;;  %v5483_v26 = vpop.f32.mrf.mxu0  ;;  %v5492_v12 = vadd.f32 %v5475_v40, %v5224_v2  ;;  %v9420_v28 = vld [vmem:[#allocation26_spill] sm:$0xff] }
 0x631   : > { %v5213_v0 = vpop.f32.mrf.mxu1  ;;  %v5491_v31 = vadd.f32 %v9420_v28, %v5223_v59 }
 0x632   : > { %v5226_v41 = vadd.f32 %v5213_v0, %v4970_v49  ;;  %v5493_v37 = vadd.f32 %v5477_v62, %v5225_v33  ;;  %v5485_v60 = vpop.f32.mrf.mxu0 }
 0x633   : > { %v5215_v45 = vpop.f32.mrf.mxu1 }
 0x634   : > { %v5227_v27 = vadd.f32 %v5215_v45, %v4971_v16  ;;  %v5494_v5 = vadd.f32 %v5481_v18, %v5226_v41  ;;  %v5487_v14 = vpop.f32.mrf.mxu0 }
 0x635   : > { %v5217_v1 = vpop.f32.mrf.mxu1 }
 0x636   : > { %v5228_v7 = vadd.f32 %v5217_v1, %v4972_v9  ;;  %v5495_v38 = vadd.f32 %v5483_v26, %v5227_v27 }
 0x637   : > { %v5219_v3 = vpop.f32.mrf.mxu1 }
 0x638   : > { %v5229_v36 = vadd.f32 %v5219_v3, %v4973_v50  ;;  %v5496_v44 = vadd.f32 %v5485_v60, %v5228_v7 }
 0x63a   : > { %v5497_v1 = vadd.f32 %v5487_v14, %v5229_v36 }
 0x669   : > { %v5735_v20 = vpop.f32.mrf.mxu1 }
 0x66a   : > { %v5754_v0 = vadd.f32 %v5735_v20, %v5490_v53 }
 0x66b   : > { %v5737_v48 = vpop.f32.mrf.mxu1 }
 0x66c   : > { %v5755_v63 = vadd.f32 %v5737_v48, %v5491_v31 }
 0x66d   : > { %v5739_v6 = vpop.f32.mrf.mxu1 }
 0x66e   : > { %v5756_v57 = vadd.f32 %v5739_v6, %v5492_v12 }
 0x66f   : > { %v5741_v21 = vpop.f32.mrf.mxu1 }
 0x670   : > { %v5757_v10 = vadd.f32 %v5741_v21, %v5493_v37  ;;  %v5764_v34 = vadd.f32 %v5756_v57, %v5754_v0 }
 0x671   : > { %v5745_v56 = vpop.f32.mrf.mxu1 }
 0x672   : > { %v5758_v22 = vadd.f32 %v5745_v56, %v5494_v5  ;;  %v5773_v61 = vadd.f32 %v5757_v10, %v5755_v63 }
 0x673   : > { %v5747_v45 = vpop.f32.mrf.mxu1 }
 0x674   : > { %v5759_v40 = vadd.f32 %v5747_v45, %v5495_v38  ;;  %v5765_v11 = vadd.f32 %v5764_v34, %v5758_v22 }
 0x675   : > { %v5749_v19 = vpop.f32.mrf.mxu1 }
 0x676   : > { %v5760_v24 = vadd.f32 %v5749_v19, %v5496_v44  ;;  %v5774_v8 = vadd.f32 %v5773_v61, %v5759_v40 }
 0x677   : > { %v5751_v30 = vpop.f32.mrf.mxu1 }
 0x678   : > { %v5766_v17 = vadd.f32 %v5765_v11, %v5760_v24  ;;  %v5761_v42 = vadd.f32 %v5751_v30, %v5497_v1  ;;  %v5762_v30 = vld [vmem:[#allocation14] sm:$0x3] }
 0x67a   : > { %v5767_v58 = vrot.slane %v5766_v17, 4  ;;  %v5775_v35 = vadd.f32 %v5774_v8, %v5761_v42  ;;  %v5763_v8 = vld [vmem:[#allocation15] sm:$0x3] }
 0x67c   : > { %v5768_v39 = vadd.f32 %v5767_v58, %v5766_v17  ;;  %v5776_v51 = vrot.slane %v5775_v35, 4  ;;  %v5994_v58 = vrot.slane %v5762_v30, %v9421_v23 }
 0x67e   : > { %v5769_v62 = vrot.slane %v5768_v39, 2  ;;  %v5777_v43 = vadd.f32 %v5776_v51, %v5775_v35 }
 0x680   : > { %v5770_v52 = vadd.f32 %v5769_v62, %v5768_v39  ;;  %v5778_v47 = vrot.slane %v5777_v43, 2  ;;  %v6013_v39 = vrot.slane %v5763_v8, %v9421_v23 }
 0x682   : > { %v5779_v54 = vadd.f32 %v5778_v47, %v5777_v43  ;;  %v5771_v3 = vrot.slane %v5770_v52, 1 }
 0x684   : > { %v5780_v4 = vrot.slane %v5779_v54, 1  ;;  %v5772_v29 = vadd.f32 %v5771_v3, %v5770_v52 }
 0x686   : > { %v5781_v46 = vadd.f32 %v5780_v4, %v5779_v54  ;;  %v9422_v54 = vld [vmem:[#allocation25_spill] sm:$0xff] }
 0x687   : > { %v5998_v3 = vrot.slane %v5762_v30, %v9422_v54  ;;  %v6017_v4 = vrot.slane %v5763_v8, %v9422_v54 }
 0x688   : > { %5846 = vmatprep.mubr.f32.mxu0 %v5781_v46 }
 0x689   : > { %5847 = vmatmul.mubr.f32.vlgmr.msra.gmra.mxu0 %v5772_v29 }
 0x749   : > { %v5848_v13 = vpop.f32.mrf.mxu0 }
 0x74a   : > { %v5853_v18 = vmul.f32 0.001953125, %v5848_v13 }
 0x74b   : > { %v5850_v20 = vpop.f32.mrf.mxu0 }
 0x74c   : > { %v5858_v2 = vrot.slane %v5853_v18, %v9421_v23  ;;  %v5854_v25 = vmul.f32 0.001953125, %v5850_v20 }
 0x74e   : > { %v5863_v49 = vsub.f32 %v5754_v0, %v5858_v2  ;;  %v5865_v32 = vsub.f32 %v5756_v57, %v5858_v2  ;;  %v5867_v55 = vsub.f32 %v5758_v22, %v5858_v2  ;;  %v5862_v15 = vrot.slane %v5854_v25, %v9421_v23 }
 0x74f   : > { %v5869_v16 = vsub.f32 %v5760_v24, %v5858_v2 }
 0x750   : > { %v5871_v48 = vmul.f32 %v5863_v49, %v5863_v49  ;;  %v5873_v33 = vmul.f32 %v5865_v32, %v5865_v32  ;;  %v5864_v41 = vsub.f32 %v5755_v63, %v5862_v15  ;;  %v5866_v59 = vsub.f32 %v5757_v10, %v5862_v15 }
 0x751   : > { %v5868_v26 = vsub.f32 %v5759_v40, %v5862_v15  ;;  %v5875_v27 = vmul.f32 %v5867_v55, %v5867_v55  ;;  %v5870_v9 = vsub.f32 %v5761_v42, %v5862_v15  ;;  %v5877_v53 = vmul.f32 %v5869_v16, %v5869_v16 }
 0x752   : > { %v5879_v6 = vadd.f32 %v5873_v33, %v5871_v48  ;;  %v5872_v12 = vmul.f32 %v5864_v41, %v5864_v41  ;;  %v5874_v50 = vmul.f32 %v5866_v59, %v5866_v59 }
 0x753   : > { %v5876_v7 = vmul.f32 %v5868_v26, %v5868_v26  ;;  %v5878_v57 = vmul.f32 %v5870_v9, %v5870_v9 }
 0x754   : > { %v5880_v21 = vadd.f32 %v5879_v6, %v5875_v27  ;;  %v5888_v37 = vadd.f32 %v5874_v50, %v5872_v12  ;;  %v7878_v6 = vld [vmem:[%s8428_s10] sm:$0xff]  ;;  %v7879_v50 = vld [vmem:[%s8428_s10 + $0x10] sm:$0xff] }
 0x756   : > { %v5881_v5 = vadd.f32 %v5880_v21, %v5877_v53  ;;  %v5889_v60 = vadd.f32 %v5888_v37, %v5876_v7  ;;  %v7880_v53 = vld [vmem:[%s8428_s10 + $0x20] sm:$0xff] }
 0x758   : > { %v5882_v28 = vrot.slane %v5881_v5, 4  ;;  %v5890_v31 = vadd.f32 %v5889_v60, %v5878_v57 }
 0x75a   : > { %v5883_v56 = vadd.f32 %v5882_v28, %v5881_v5  ;;  %v5891_v38 = vrot.slane %v5890_v31, 4 }
 0x75c   : > { %v5884_v36 = vrot.slane %v5883_v56, 2  ;;  %v5892_v0 = vadd.f32 %v5891_v38, %v5890_v31 }
 0x75e   : > { %v5885_v10 = vadd.f32 %v5884_v36, %v5883_v56  ;;  %v5893_v22 = vrot.slane %v5892_v0, 2  ;;  %v7882_v56 = vld [vmem:[%s8428_s10 + $0x8] sm:$0xff]  ;;  %v7883_v36 = vld [vmem:[%s8428_s10 + $0x18] sm:$0xff] }
 0x760   : > { %v5894_v45 = vadd.f32 %v5893_v22, %v5892_v0  ;;  %v5886_v63 = vrot.slane %v5885_v10, 1 }
 0x762   : > { %v5895_v34 = vrot.slane %v5894_v45, 1  ;;  %v5887_v44 = vadd.f32 %v5886_v63, %v5885_v10  ;;  %v7884_v10 = vld [vmem:[%s8428_s10 + $0x28] sm:$0xff] }
 0x764   : > { %v5896_v40 = vadd.f32 %v5895_v34, %v5894_v45  ;;  %v7885_v45 = vld [vmem:[%s8428_s10 + $0x38] sm:$0xff] }
 0x766   : > { %5961 = vmatprep.mubr.f32.mxu1 %v5896_v40 }
 0x767   : > { %5962 = vmatmul.mubr.f32.vlgmr.msra.gmra.mxu1 %v5887_v44 }
 0x827   : > { %v5963_v14 = vpop.f32.mrf.mxu1 }
 0x828   : > { %v5968_v19 = vmul.f32 0.001953125, %v5963_v14 }
 0x829   : > { %v5965_v61 = vpop.f32.mrf.mxu1 }
 0x82a   : > { %v5970_v11 = vadd.f32 1e-05, %v5968_v19  ;;  %v5969_v24 = vmul.f32 0.001953125, %v5965_v61 }
 0x82c   : > { %7805 = vrsqrt.f32 %v5970_v11  ;;  %v5971_v1 = vadd.f32 1e-05, %v5969_v24 }
 0x82e   : > { %7807 = vrsqrt.f32 %v5971_v1 }
 0x839   : > { %v7806_v17 = vpop.eup %7805 }
 0x83a   : > { %v5977_v42 = vrot.slane %v7806_v17, %v9421_v23 }
 0x83b   : > { %v7808_v35 = vpop.eup %7807 }
 0x83c   : > { %v5982_v51 = vmul.f32 %v5977_v42, %v5863_v49  ;;  %v5984_v62 = vmul.f32 %v5977_v42, %v5865_v32  ;;  %v5986_v43 = vmul.f32 %v5977_v42, %v5867_v55  ;;  %v5988_v52 = vmul.f32 %v5977_v42, %v5869_v16 }
 0x83d   : > { %v5981_v47 = vrot.slane %v7808_v35, %v9421_v23 }
 0x83e   : > { %v6001_v46 = vmul.f32 %v5994_v58, %v5982_v51  ;;  %v6003_v29 = vmul.f32 %v5994_v58, %v5984_v62  ;;  %v6005_v13 = vmul.f32 %v5994_v58, %v5986_v43  ;;  %v6007_v18 = vmul.f32 %v5994_v58, %v5988_v52 }
 0x83f   : > { %v5983_v20 = vmul.f32 %v5981_v47, %v5864_v41  ;;  %v5985_v2 = vmul.f32 %v5981_v47, %v5866_v59  ;;  %v5987_v25 = vmul.f32 %v5981_v47, %v5868_v26  ;;  %v5989_v49 = vmul.f32 %v5981_v47, %v5870_v9  ;;  %v7881_v26 = vld [vmem:[%s8428_s10 + $0x30] sm:$0xff] }
 0x840   : > { %v6020_v32 = vadd.f32 %v6013_v39, %v6001_v46  ;;  %v6022_v55 = vadd.f32 %v6013_v39, %v6003_v29  ;;  %v6024_v15 = vadd.f32 %v6013_v39, %v6005_v13  ;;  %v6026_v23 = vadd.f32 %v6013_v39, %v6007_v18 }
 0x841   : > { %v6002_v16 = vmul.f32 %v5998_v3, %v5983_v20  ;;  %v6004_v48 = vmul.f32 %v5998_v3, %v5985_v2  ;;  %v6006_v33 = vmul.f32 %v5998_v3, %v5987_v25  ;;  %v6008_v27 = vmul.f32 %v5998_v3, %v5989_v49 }
 0x842   : > { %v6028_v12 = vadd.f32 %v7878_v6, %v6020_v32  ;;  %v6030_v41 = vadd.f32 %v7879_v50, %v6022_v55  ;;  %v6032_v59 = vadd.f32 %v7880_v53, %v6024_v15  ;;  %v6034_v9 = vadd.f32 %v7881_v26, %v6026_v23 }
 0x843   : > { %v6021_v21 = vadd.f32 %v6017_v4, %v6002_v16  ;;  %v6023_v7 = vadd.f32 %v6017_v4, %v6004_v48  ;;  %v6025_v37 = vadd.f32 %v6017_v4, %v6006_v33  ;;  %v6027_v5 = vadd.f32 %v6017_v4, %v6008_v27 }
 0x844   : > { %v6036_v57 = vmax.f32 %v6028_v12, 0.0  ;;  %v6038_v60 = vmax.f32 %v6030_v41, 0.0  ;;  %v6040_v28 = vmax.f32 %v6032_v59, 0.0  ;;  %v6042_v31 = vmax.f32 %v6034_v9, 0.0 }
 0x845   : > { %v6029_v38 = vadd.f32 %v7882_v56, %v6021_v21  ;;  %v6031_v0 = vadd.f32 %v7883_v36, %v6023_v7  ;;  %v6033_v22 = vadd.f32 %v7884_v10, %v6025_v37  ;;  %v6035_v63 = vadd.f32 %v7885_v45, %v6027_v5 }
 0x846   : > { %6044 = vst [vmem:[%s8450_s12] sm:$0xff] %v6036_v57  ;;  %6046 = vst [vmem:[%s8450_s12 + $0x10] sm:$0xff] %v6038_v60 }
 0x847   : > { %6048 = vst [vmem:[%s8450_s12 + $0x20] sm:$0xff] %v6040_v28  ;;  %6050 = vst [vmem:[%s8450_s12 + $0x30] sm:$0xff] %v6042_v31  ;;  %v6037_v34 = vmax.f32 %v6029_v38, 0.0  ;;  %v6039_v40 = vmax.f32 %v6031_v0, 0.0  ;;  %v6041_v44 = vmax.f32 %v6033_v22, 0.0  ;;  %v6043_v14 = vmax.f32 %v6035_v63, 0.0 }
 0x849   : > { %6045 = vst [vmem:[%s8450_s12 + $0x8] sm:$0xff] %v6037_v34  ;;  %6047 = vst [vmem:[%s8450_s12 + $0x18] sm:$0xff] %v6039_v40 }
 0x84a   : > { %6049 = vst [vmem:[%s8450_s12 + $0x28] sm:$0xff] %v6041_v44  ;;  %6051 = vst [vmem:[%s8450_s12 + $0x38] sm:$0xff] %v6043_v14 }
 0x84b   : > { %8109 = shalt.err (!%p8106_p11)
}
 0x84c   : > { %s8110_s24 = scalar_lea.hbm %s9302_s19, 1024  ;;  %s8114_s10 = scalar_lea.hbm %s9359_s8, 2048 }
 0x84d   : > { %p8111_p4 = scmp.ne.s32.totalorder %s9302_s19, %s8110_s24  ;;  %p8115_p5 = scmp.lt.s32.totalorder %s9302_s19, %s9359_s8 }
 0x84e   : > { %p8116_p0 = scmp.lt.s32.totalorder %s8114_s10, %s8110_s24 }
 0x84f   : > { %p8112_p8 = pnand %p8111_p4, %p9423_p12 }
 0x850   : > { %p8117_p10 = por %p8116_p0, %p8115_p5 }
 0x851   : > { %p8113_p13 = pneg %p8112_p8 }
 0x853   : > { %p8118_p6 = pnand %p8117_p10, %p8113_p13 }
 0x855   : > { %8121 = shalt.err (!%p8118_p6)
}
 0x856   : > { %s8192_s11 = smov 256   ;;  %s8193_s13 = smov 16  }
 0x857   : > { %6843 = dma.vmem_to_hbm [thread:$0]  (%p9423_p12), %s9304_s20, 1024, %s9302_s19, %s6053_s18, %s8192_s11, %s8192_s11, %s8193_s13  }
 0x858 PF: > { %s6081_s16 = sand.u32 1, %s8164_s27   ;;  %p9424_p3 = scmp.ne.s32.totalorder %s9386_s23, 0 }
 0x859   : > { %p9425_p1 = scmp.ge.s32.totalorder %s8176_s30, 2  ;;  %s6082_s14 = scalar_lea.sflag [#allocation5], %s6081_s16 }
 0x85b   : > { %p6872_p2 = pnand %p9425_p1, %p9424_p3 }
 0x85d   : > { %p6873_p7 = pneg %p6872_p2 }
 0x85f   : > { %8159 = dma.done.wait (%p6873_p7), %s6082_s14, 1024  }
 0x860   : > { %8161 = vsyncadd (%p6873_p7), %s6082_s14, 4294966272  ;;  %p25_p9 = scmp.ge.s32.totalorder %s8355_s15, 4   ;;  %s9426_s27 = smov %s8168_s28 }
 0x861   : > { %s9427_s28 = smov %s8172_s29  ;;  %s9428_s29 = smov %s8367_s22 }
 0x862   : > { %s9429_s30 = smov %s8355_s15  ;;  %27 = sbr.rel (!%p25_p9) target bundleno = 12 (0xc), region = 146 }
 0x867   :  { %6087 = vsyncpa [#allocation4], 1 }
 0x868   :  { %6089 = vsyncpa [#allocation4 + $0x1], 1 }
 0x869   :  { %6090 = vsyncpa [#allocation7], 1 }
 0x86a   :  { %6091 = vsyncpa [#allocation10], 1 }
 0x86b   :  { %6092 = vsyncpa [#allocation13], 1 }
 0x86c   :  { %6093 = vsyncpa [#allocation16], 1 }
 0x86d   :  { %6094 = vsyncpa [#allocation5], 1 }
 0x86e   :  { %6096 = vsyncpa [#allocation5 + $0x1], 1 }

</bundles_post_ra>
